<compile_context>
chip_gen: v6e
topology: v6e:2x2x1
jax: 0.10.0
libtpu: 0.0.40
codegen_flags: <defaults>
</compile_context>

<pallas_src>
import numpy as np
import jax
import jax.numpy as jnp
from jax.experimental import pallas as pl
from jax.experimental.pallas import tpu as pltpu


# ------------------------------ shared math ----------------------------------
def _relu_bf16(x):
    """ReLU fused with the bf16 cast: the next layer's MXU A-operand is stored
    directly in bf16 (saves a separate full-pass VALU cast per layer)."""
    return jnp.maximum(x, 0.0).astype(jnp.bfloat16)


def _mm(a_bf16, w_bf16, b_f32):
    """bf16 MXU matmul with f32 accumulation, then f32 bias add."""
    return jnp.dot(a_bf16, w_bf16, preferred_element_type=jnp.float32) + b_f32


def _point_mlp(x_flat, bt, n, w1, b1, w2, b2, w3, b3):
    """conv1-3 (kernel-size-1 convs == per-point linears) + per-batch max pool.

    x_flat: (bt*n, C) f32.  w2/w3 are bf16, w1 and all biases f32.
    Returns pooled features g: (bt, 1024) f32.
    """
    c_in = x_flat.shape[-1]
    # conv1: K = C = 3 is a terrible MXU contraction -> three VPU broadcast FMAs.
    h = x_flat[:, 0:1] * w1[0:1, :]
    for c in range(1, c_in):
        h = h + x_flat[:, c:c + 1] * w1[c:c + 1, :]
    h = _relu_bf16(h + b1)              # (M, 128)  conv1 padded 64 -> 128 (lane-dense)
    h = _relu_bf16(_mm(h, w2, b2))      # (M, 128)
    h = _relu_bf16(_mm(h, w3, b3))      # (M, 1024) bf16
    # Global max over each batch element's points.  max commutes with the
    # monotone bf16 rounding, so pooling the bf16 activations equals pooling
    # in f32 and casting afterwards.
    g = jnp.max(h.reshape(bt, n, h.shape[-1]), axis=1)     # (bt, 1024) bf16
    return g.astype(jnp.float32)


def _fc_head(g, w4, b4, w5, b5, w6, b6):
    """fc1-fc3 head.  g: (bt, 1024) f32 -> (bt, 128) f32 (fc3 padded 9 -> 128).
    fc3 is kept in f32 (tiny matmul) so the 3x3 transform is not bf16-rounded."""
    f = _relu_bf16(_mm(g.astype(jnp.bfloat16), w4, b4))    # (bt, 512) bf16
    f = jnp.maximum(_mm(f, w5, b5), 0.0)                   # (bt, 256) f32
    return jnp.dot(f, w6, preferred_element_type=jnp.float32) + b6   # (bt, 128)


# ------------------------------ Pallas kernels --------------------------------
def _stn3d_fused_kernel(x_ref,                       # (bt, N, C)        f32
                        w1, b1, w2, b2, w3, b3,      # conv weights (see prep)
                        w4, b4, w5, b5, w6, b6,      # fc weights   (see prep)
                        out_ref):                    # (1, bt, 128)      f32
    bt, n, c = x_ref.shape
    g = _point_mlp(x_ref[...].reshape(bt * n, c), bt, n,
                   w1[...], b1[...], w2[...], b2[...], w3[...], b3[...])
    out = _fc_head(g, w4[...], b4[...], w5[...], b5[...], w6[...], b6[...])
    out_ref[...] = out[None]


def _stn3d_point_kernel(x_ref,                       # (bt, N, C)        f32
                        w1, b1, w2, b2, w3, b3,
                        g_ref):                      # (1, bt, 1024)     f32
    bt, n, c = x_ref.shape
    g = _point_mlp(x_ref[...].reshape(bt * n, c), bt, n,
                   w1[...], b1[...], w2[...], b2[...], w3[...], b3[...])
    g_ref[...] = g[None]


def _stn3d_head_kernel(g_ref,                        # (B, 1024)         f32
                       w4, b4, w5, b5, w6, b6,
                       out_ref):                     # (B, 128)          f32
    out_ref[...] = _fc_head(g_ref[...], w4[...], b4[...], w5[...], b5[...],
                            w6[...], b6[...])


# ------------------------------ wrapper ---------------------------------------
def _const_spec(a):
    """Whole-array block with a constant index map: the array is DMA'd into
    VMEM once and never re-streamed across the grid (block index never changes)."""
    nd = a.ndim
    return pl.BlockSpec(a.shape, lambda i, nd=nd: (0,) * nd)


def _choose_batch_tile(B, N, rows_target=1024, max_rows=1024):
    """How many batch elements each per-point grid step handles.

    * target ~1024 MXU rows per step (M = batch_tile*N)            [review #1]
    * max_rows bounds the (M,1024) f32+bf16 conv3 intermediate
      (~6 KiB/row) so a step fits v5e's 16 MiB scoped default and
      v7x's 64 MiB VMEM with headroom                               [review #3]
    * prefer an even number of 'parallel' steps (v7x has 2 TCs)
      when each step still keeps >= 512 rows; keep grid=(1,) for
      tiny problems like the B=2/N=128 demo                         [review #2]
    """
    # TODO(synk): if N alone exceeds max_rows the point axis would also need
    #             tiling (pool accumulation across point tiles); not needed here.
    bt = max(1, min(B, max(1, min(rows_target, max_rows) // N)))
    while B % bt:
        bt -= 1
    num_steps = B // bt
    if num_steps % 2 == 1 and bt % 2 == 0 and (bt // 2) * N >= 512:
        bt //= 2          # bt | B and bt even  =>  (bt // 2) | B
    return bt


def stn3d_forward(x_bnc, prep, *, split_head_min_steps=4):
    """x_bnc: (B, N, C) f32 points (channel-last).  prep: kernel-ready params.
    Returns the (B, 3, 3) spatial transform."""
    B, N, C = x_bnc.shape
    w1, b1, w2, b2, w3, b3, w4, b4, w5, b5, w6, b6 = prep
    point_w = (w1, b1, w2, b2, w3, b3)
    head_w = (w4, b4, w5, b5, w6, b6)
    d_pad = w6.shape[-1]                 # 128: lane-dense padded fc3 width
    d_mid = w3.shape[-1]                 # 1024

    bt = _choose_batch_tile(B, N)
    num_steps = B // bt
    x_spec = pl.BlockSpec((bt, N, C), lambda i: (i, 0, 0))
    parallel = pltpu.CompilerParams(dimension_semantics=("parallel",))

    if num_steps < split_head_min_steps:
        # Fused single-call path: with few grid steps, re-streaming the fc-head
        # weights is cheaper than paying a second kernel launch.
        out = pl.pallas_call(
            _stn3d_fused_kernel,
            out_shape=jax.ShapeDtypeStruct((num_steps, bt, d_pad), jnp.float32),
            grid_spec=pltpu.PrefetchScalarGridSpec(
                num_scalar_prefetch=0,
                grid=(num_steps,),
                in_specs=[x_spec] + [_const_spec(a) for a in point_w + head_w],
                out_specs=pl.BlockSpec((1, bt, d_pad), lambda i: (i, 0, 0)),
            ),
            compiler_params=parallel,
        )(x_bnc, *point_w, *head_w)
    else:
        # Split path for large B [review #7]: the per-point MLP + max-pool runs
        # across a 'parallel' batch-tile grid keeping only ~0.3 MiB of conv
        # weights resident; the fc head then runs ONCE at M = B instead of
        # re-pushing w4/w5/w6 into the MXU every step at M = batch_tile.
        g = pl.pallas_call(
            _stn3d_point_kernel,
            out_shape=jax.ShapeDtypeStruct((num_steps, bt, d_mid), jnp.float32),
            grid_spec=pltpu.PrefetchScalarGridSpec(
                num_scalar_prefetch=0,
                grid=(num_steps,),
                in_specs=[x_spec] + [_const_spec(a) for a in point_w],
                out_specs=pl.BlockSpec((1, bt, d_mid), lambda i: (i, 0, 0)),
            ),
            compiler_params=parallel,
        )(x_bnc, *point_w)
        g = g.reshape(B, d_mid)
        out = pl.pallas_call(
            _stn3d_head_kernel,
            out_shape=jax.ShapeDtypeStruct((B, d_pad), jnp.float32),
            grid_spec=pltpu.PrefetchScalarGridSpec(
                num_scalar_prefetch=0,
                grid=(1,),
                in_specs=[pl.BlockSpec((B, d_mid), lambda i: (0, 0))]
                         + [_const_spec(a) for a in head_w],
                out_specs=pl.BlockSpec((B, d_pad), lambda i: (0, 0)),
            ),
            compiler_params=pltpu.CompilerParams(
                dimension_semantics=("arbitrary",)),
        )(g, *head_w)

    return out.reshape(B, d_pad)[:, :9].reshape(B, 3, 3)


# ------------------------- parameter construction ----------------------------
def fold_bn(w, b, gamma, beta, mean, var, eps=1e-5):
    """Fold eval-mode BatchNorm into a preceding linear: BN(x@w + b) == x@w' + b'."""
    scale = gamma / jnp.sqrt(var + eps)
    return w * scale[None, :], b * scale + (beta - mean * scale)


def make_params(key, channel=3):
    """Random STN3d parameters (f32, unpadded), with BN and the 3x3 identity folded."""
    dims = [(channel, 64), (64, 128), (128, 1024), (1024, 512), (512, 256), (256, 9)]
    keys = jax.random.split(key, 4 * len(dims))
    params, ki = [], 0
    for li, (cin, cout) in enumerate(dims):
        w = jax.random.normal(keys[ki], (cin, cout), jnp.float32) * 0.05; ki += 1
        b = jax.random.normal(keys[ki], (cout,), jnp.float32) * 0.05;     ki += 1
        if li < 5:  # layers followed by BatchNorm1d (conv1-3, fc1-2)
            gamma = 1.0 + 0.1 * jax.random.normal(keys[ki], (cout,), jnp.float32); ki += 1
            beta = 0.1 * jax.random.normal(keys[ki], (cout,), jnp.float32);        ki += 1
            mean = jnp.zeros((cout,), jnp.float32)
            var = jnp.ones((cout,), jnp.float32)
            w, b = fold_bn(w, b, gamma, beta, mean, var)
        else:
            ki += 2
            # fc3: fold the flattened 3x3 identity into the bias (exact).
            b = b + jnp.array([1, 0, 0, 0, 1, 0, 0, 0, 1], jnp.float32)
        params += [w, b.reshape(1, cout)]
    return params


def prepare_kernel_params(params, conv1_pad=128, out_pad=128):
    """Kernel-ready params: pad conv1 to a lane-dense 128 width, pad fc3 to a
    lane-dense 128-wide output, cast the MXU-fed weights (w2..w5) to bf16."""
    w1, b1, w2, b2, w3, b3, w4, b4, w5, b5, w6, b6 = params
    c1 = w1.shape[1]
    # conv1/conv2 pad (64 -> 128): padded h1 columns are ReLU(0)=0 and the
    # padded w2 rows are 0, so the math is unchanged.                [review #5]
    w1p = jnp.zeros((w1.shape[0], conv1_pad), jnp.float32).at[:, :c1].set(w1)
    b1p = jnp.zeros((1, conv1_pad), jnp.float32).at[:, :c1].set(b1)
    w2p = jnp.zeros((conv1_pad, w2.shape[1]), jnp.float32).at[:c1, :].set(w2)
    # fc3 pad (9 -> 128) for lane-dense stores; wrapper slices [:, :9].
    co = w6.shape[1]
    w6p = jnp.zeros((w6.shape[0], out_pad), jnp.float32).at[:, :co].set(w6)
    b6p = jnp.zeros((1, out_pad), jnp.float32).at[:, :co].set(b6)
    bf16 = lambda w: w.astype(jnp.bfloat16)
    return (w1p, b1p,                      # conv1 runs on the VPU in f32
            bf16(w2p), b2, bf16(w3), b3,   # conv2/conv3: bf16 MXU operands
            bf16(w4), b4, bf16(w5), b5,    # fc1/fc2:     bf16 MXU operands
            w6p, b6p)                      # fc3 kept in f32 (tiny, exactness)


# ------------------------------- references ----------------------------------
def reference_forward_mixed(x_bnc, prep):
    """Plain-JAX replica of the kernel's exact mixed-precision numerics."""
    B, N, C = x_bnc.shape
    w1, b1, w2, b2, w3, b3, w4, b4, w5, b5, w6, b6 = prep
    g = _point_mlp(x_bnc.reshape(B * N, C), B, N, w1, b1, w2, b2, w3, b3)
    out = _fc_head(g, w4, b4, w5, b5, w6, b6)
    return out[:, :9].reshape(B, 3, 3)


def reference_forward_f32(x_bnc, params):
    """Full-f32 reference of the original module's math (semantic check)."""
    w1, b1, w2, b2, w3, b3, w4, b4, w5, b5, w6, b6 = params
    h = jnp.maximum(x_bnc @ w1 + b1, 0.0)
    h = jnp.maximum(h @ w2 + b2, 0.0)
    h = jnp.maximum(h @ w3 + b3, 0.0)
    g = jnp.max(h, axis=1)                       # (B, 1024)
    f = jnp.maximum(g @ w4 + b4, 0.0)
    f = jnp.maximum(f @ w5 + b5, 0.0)
    return (f @ w6 + b6).reshape(-1, 3, 3)


# ---------------------------------- main --------------------------------------
if __name__ == "__main__":
    key = jax.random.PRNGKey(0)
    kx, kp, kx2 = jax.random.split(key, 3)

    params = make_params(kp, channel=3)          # f32, BN + identity folded
    prep = prepare_kernel_params(params)         # padded + bf16 MXU weights

    # Demo shape matching the PyTorch module: x is (B, C, N) = (2, 3, 128).
    B, C, N = 2, 3, 128
    x_bcn = jax.random.normal(kx, (B, C, N), jnp.float32)     # PyTorch NCW input
    x_bnc = jnp.transpose(x_bcn, (0, 2, 1))                   # kernel layout (B, N, C)

    out = jax.block_until_ready(stn3d_forward(x_bnc, prep))   # fused, grid=(1,)
    assert out.shape == (B, 3, 3)
    np.testing.assert_allclose(np.asarray(out),
                               np.asarray(reference_forward_mixed(x_bnc, prep)),
                               rtol=2e-3, atol=2e-3)
    np.testing.assert_allclose(np.asarray(out),
                               np.asarray(reference_forward_f32(x_bnc, params)),
                               rtol=2e-2, atol=2e-2)

    # Larger batch: exercises the multi-step 'parallel' grid and the hoisted
    # fc-head path (two pallas_calls).
    B2, N2 = 16, 256
    x2 = jax.random.normal(kx2, (B2, N2, C), jnp.float32)
    out2 = jax.block_until_ready(stn3d_forward(x2, prep))
    assert out2.shape == (B2, 3, 3)
    np.testing.assert_allclose(np.asarray(out2),
                               np.asarray(reference_forward_mixed(x2, prep)),
                               rtol=2e-3, atol=2e-3)
    np.testing.assert_allclose(np.asarray(out2),
                               np.asarray(reference_forward_f32(x2, params)),
                               rtol=2e-2, atol=2e-2)

    print("KERNEL_OK")
</pallas_src>

<mosaic_0001>
module attributes {stable_mosaic.version = 11 : i64} {
  func.func @_stn3d_fused_kernel(%arg0: i32, %arg1: memref<2x128x3xf32, #tpu.memory_space<vmem>>, %arg2: memref<3x128xf32, #tpu.memory_space<vmem>>, %arg3: memref<1x128xf32, #tpu.memory_space<vmem>>, %arg4: memref<128x128xbf16, #tpu.memory_space<vmem>>, %arg5: memref<1x128xf32, #tpu.memory_space<vmem>>, %arg6: memref<128x1024xbf16, #tpu.memory_space<vmem>>, %arg7: memref<1x1024xf32, #tpu.memory_space<vmem>>, %arg8: memref<1024x512xbf16, #tpu.memory_space<vmem>>, %arg9: memref<1x512xf32, #tpu.memory_space<vmem>>, %arg10: memref<512x256xbf16, #tpu.memory_space<vmem>>, %arg11: memref<1x256xf32, #tpu.memory_space<vmem>>, %arg12: memref<256x128xf32, #tpu.memory_space<vmem>>, %arg13: memref<1x128xf32, #tpu.memory_space<vmem>>, %arg14: memref<1x2x128xf32, #tpu.memory_space<vmem>>) attributes {dimension_semantics = [#tpu.dimension_semantics<parallel>], iteration_bounds = array<i64: 1>, scalar_prefetch = 0 : i64, scratch_operands = 0 : i64, tpu.core_type = #tpu.core_type<tc>, window_params = [{transform_indices = @transform_0, window_bounds = array<i64: 2, 128, 3>}, {pipeline_mode = #tpu.pipeline_mode<synchronous>, transform_indices = @transform_1, window_bounds = array<i64: 3, 128>}, {pipeline_mode = #tpu.pipeline_mode<synchronous>, transform_indices = @transform_2, window_bounds = array<i64: 1, 128>}, {pipeline_mode = #tpu.pipeline_mode<synchronous>, transform_indices = @transform_3, window_bounds = array<i64: 128, 128>}, {pipeline_mode = #tpu.pipeline_mode<synchronous>, transform_indices = @transform_4, window_bounds = array<i64: 1, 128>}, {pipeline_mode = #tpu.pipeline_mode<synchronous>, transform_indices = @transform_5, window_bounds = array<i64: 128, 1024>}, {pipeline_mode = #tpu.pipeline_mode<synchronous>, transform_indices = @transform_6, window_bounds = array<i64: 1, 1024>}, {pipeline_mode = #tpu.pipeline_mode<synchronous>, transform_indices = @transform_7, window_bounds = array<i64: 1024, 512>}, {pipeline_mode = #tpu.pipeline_mode<synchronous>, transform_indices = @transform_8, window_bounds = array<i64: 1, 512>}, {pipeline_mode = #tpu.pipeline_mode<synchronous>, transform_indices = @transform_9, window_bounds = array<i64: 512, 256>}, {pipeline_mode = #tpu.pipeline_mode<synchronous>, transform_indices = @transform_10, window_bounds = array<i64: 1, 256>}, {pipeline_mode = #tpu.pipeline_mode<synchronous>, transform_indices = @transform_11, window_bounds = array<i64: 256, 128>}, {pipeline_mode = #tpu.pipeline_mode<synchronous>, transform_indices = @transform_12, window_bounds = array<i64: 1, 128>}, {transform_indices = @transform_13, window_bounds = array<i64: 1, 2, 128>}]} {
    %c0 = arith.constant 0 : index
    %c0_0 = arith.constant 0 : index
    %c0_1 = arith.constant 0 : index
    %0 = vector.load %arg1[%c0, %c0_0, %c0_1] : memref<2x128x3xf32, #tpu.memory_space<vmem>>, vector<2x128x3xf32>
    %1 = vector.shape_cast %0 : vector<2x128x3xf32> to vector<256x3xf32>
    %c0_2 = arith.constant 0 : index
    %c0_3 = arith.constant 0 : index
    %2 = vector.load %arg2[%c0_2, %c0_3] : memref<3x128xf32, #tpu.memory_space<vmem>>, vector<3x128xf32>
    %c0_4 = arith.constant 0 : index
    %c0_5 = arith.constant 0 : index
    %3 = vector.load %arg3[%c0_4, %c0_5] : memref<1x128xf32, #tpu.memory_space<vmem>>, vector<1x128xf32>
    %c0_6 = arith.constant 0 : index
    %c0_7 = arith.constant 0 : index
    %4 = vector.load %arg4[%c0_6, %c0_7] : memref<128x128xbf16, #tpu.memory_space<vmem>>, vector<128x128xbf16>
    %c0_8 = arith.constant 0 : index
    %c0_9 = arith.constant 0 : index
    %5 = vector.load %arg5[%c0_8, %c0_9] : memref<1x128xf32, #tpu.memory_space<vmem>>, vector<1x128xf32>
    %c0_10 = arith.constant 0 : index
    %c0_11 = arith.constant 0 : index
    %6 = vector.load %arg6[%c0_10, %c0_11] : memref<128x1024xbf16, #tpu.memory_space<vmem>>, vector<128x1024xbf16>
    %c0_12 = arith.constant 0 : index
    %c0_13 = arith.constant 0 : index
    %7 = vector.load %arg7[%c0_12, %c0_13] : memref<1x1024xf32, #tpu.memory_space<vmem>>, vector<1x1024xf32>
    %8 = vector.extract_strided_slice %1 {offsets = [0, 0], sizes = [256, 1], strides = [1, 1]} : vector<256x3xf32> to vector<256x1xf32>
    %9 = vector.extract_strided_slice %2 {offsets = [0, 0], sizes = [1, 128], strides = [1, 1]} : vector<3x128xf32> to vector<1x128xf32>
    %10 = vector.broadcast %8 : vector<256x1xf32> to vector<256x128xf32>
    %11 = vector.broadcast %9 : vector<1x128xf32> to vector<256x128xf32>
    %12 = arith.mulf %10, %11 : vector<256x128xf32>
    %13 = vector.extract_strided_slice %1 {offsets = [0, 1], sizes = [256, 1], strides = [1, 1]} : vector<256x3xf32> to vector<256x1xf32>
    %14 = vector.extract_strided_slice %2 {offsets = [1, 0], sizes = [1, 128], strides = [1, 1]} : vector<3x128xf32> to vector<1x128xf32>
    %15 = vector.broadcast %13 : vector<256x1xf32> to vector<256x128xf32>
    %16 = vector.broadcast %14 : vector<1x128xf32> to vector<256x128xf32>
    %17 = arith.mulf %15, %16 : vector<256x128xf32>
    %18 = arith.addf %12, %17 : vector<256x128xf32>
    %19 = vector.extract_strided_slice %1 {offsets = [0, 2], sizes = [256, 1], strides = [1, 1]} : vector<256x3xf32> to vector<256x1xf32>
    %20 = vector.extract_strided_slice %2 {offsets = [2, 0], sizes = [1, 128], strides = [1, 1]} : vector<3x128xf32> to vector<1x128xf32>
    %21 = vector.broadcast %19 : vector<256x1xf32> to vector<256x128xf32>
    %22 = vector.broadcast %20 : vector<1x128xf32> to vector<256x128xf32>
    %23 = arith.mulf %21, %22 : vector<256x128xf32>
    %24 = arith.addf %18, %23 : vector<256x128xf32>
    %25 = vector.broadcast %3 : vector<1x128xf32> to vector<256x128xf32>
    %26 = arith.addf %24, %25 : vector<256x128xf32>
    %cst = arith.constant 0.000000e+00 : f32
    %27 = vector.broadcast %cst : f32 to vector<256x128xf32>
    %28 = arith.maximumf %26, %27 : vector<256x128xf32>
    %29 = arith.truncf %28 : vector<256x128xf32> to vector<256x128xbf16>
    %cst_14 = arith.constant dense<0.000000e+00> : vector<256x128xf32>
    %30 = tpu.matmul %29, %4, %cst_14 {dimension_numbers = #tpu.dot_dimension_numbers<[1], [0], [0], [1], [0, 0, 1, 1], [], []>} : vector<256x128xbf16>, vector<128x128xbf16>, vector<256x128xf32> -> vector<256x128xf32>
    %31 = vector.broadcast %5 : vector<1x128xf32> to vector<256x128xf32>
    %32 = arith.addf %30, %31 : vector<256x128xf32>
    %cst_15 = arith.constant 0.000000e+00 : f32
    %33 = vector.broadcast %cst_15 : f32 to vector<256x128xf32>
    %34 = arith.maximumf %32, %33 : vector<256x128xf32>
    %35 = arith.truncf %34 : vector<256x128xf32> to vector<256x128xbf16>
    %cst_16 = arith.constant dense<0.000000e+00> : vector<256x1024xf32>
    %36 = tpu.matmul %35, %6, %cst_16 {dimension_numbers = #tpu.dot_dimension_numbers<[1], [0], [0], [1], [0, 0, 1, 1], [], []>} : vector<256x128xbf16>, vector<128x1024xbf16>, vector<256x1024xf32> -> vector<256x1024xf32>
    %37 = vector.broadcast %7 : vector<1x1024xf32> to vector<256x1024xf32>
    %38 = arith.addf %36, %37 : vector<256x1024xf32>
    %cst_17 = arith.constant 0.000000e+00 : f32
    %39 = vector.broadcast %cst_17 : f32 to vector<256x1024xf32>
    %40 = arith.maximumf %38, %39 : vector<256x1024xf32>
    %41 = arith.truncf %40 : vector<256x1024xf32> to vector<256x1024xbf16>
    %42 = vector.shape_cast %41 : vector<256x1024xbf16> to vector<2x128x1024xbf16>
    %cst_18 = arith.constant dense<0xFF80> : vector<2x1024xbf16>
    %43 = vector.multi_reduction <maximumf>, %42, %cst_18 [1] : vector<2x128x1024xbf16> to vector<2x1024xbf16>
    %44 = arith.extf %43 : vector<2x1024xbf16> to vector<2x1024xf32>
    %c0_19 = arith.constant 0 : index
    %c0_20 = arith.constant 0 : index
    %45 = vector.load %arg8[%c0_19, %c0_20] : memref<1024x512xbf16, #tpu.memory_space<vmem>>, vector<1024x512xbf16>
    %c0_21 = arith.constant 0 : index
    %c0_22 = arith.constant 0 : index
    %46 = vector.load %arg9[%c0_21, %c0_22] : memref<1x512xf32, #tpu.memory_space<vmem>>, vector<1x512xf32>
    %c0_23 = arith.constant 0 : index
    %c0_24 = arith.constant 0 : index
    %47 = vector.load %arg10[%c0_23, %c0_24] : memref<512x256xbf16, #tpu.memory_space<vmem>>, vector<512x256xbf16>
    %c0_25 = arith.constant 0 : index
    %c0_26 = arith.constant 0 : index
    %48 = vector.load %arg11[%c0_25, %c0_26] : memref<1x256xf32, #tpu.memory_space<vmem>>, vector<1x256xf32>
    %c0_27 = arith.constant 0 : index
    %c0_28 = arith.constant 0 : index
    %49 = vector.load %arg12[%c0_27, %c0_28] : memref<256x128xf32, #tpu.memory_space<vmem>>, vector<256x128xf32>
    %c0_29 = arith.constant 0 : index
    %c0_30 = arith.constant 0 : index
    %50 = vector.load %arg13[%c0_29, %c0_30] : memref<1x128xf32, #tpu.memory_space<vmem>>, vector<1x128xf32>
    %51 = arith.truncf %44 : vector<2x1024xf32> to vector<2x1024xbf16>
    %cst_31 = arith.constant dense<0.000000e+00> : vector<2x512xf32>
    %52 = tpu.matmul %51, %45, %cst_31 {dimension_numbers = #tpu.dot_dimension_numbers<[1], [0], [0], [1], [0, 0, 1, 1], [], []>} : vector<2x1024xbf16>, vector<1024x512xbf16>, vector<2x512xf32> -> vector<2x512xf32>
    %53 = vector.broadcast %46 : vector<1x512xf32> to vector<2x512xf32>
    %54 = arith.addf %52, %53 : vector<2x512xf32>
    %cst_32 = arith.constant 0.000000e+00 : f32
    %55 = vector.broadcast %cst_32 : f32 to vector<2x512xf32>
    %56 = arith.maximumf %54, %55 : vector<2x512xf32>
    %57 = arith.truncf %56 : vector<2x512xf32> to vector<2x512xbf16>
    %cst_33 = arith.constant dense<0.000000e+00> : vector<2x256xf32>
    %58 = tpu.matmul %57, %47, %cst_33 {dimension_numbers = #tpu.dot_dimension_numbers<[1], [0], [0], [1], [0, 0, 1, 1], [], []>} : vector<2x512xbf16>, vector<512x256xbf16>, vector<2x256xf32> -> vector<2x256xf32>
    %59 = vector.broadcast %48 : vector<1x256xf32> to vector<2x256xf32>
    %60 = arith.addf %58, %59 : vector<2x256xf32>
    %cst_34 = arith.constant 0.000000e+00 : f32
    %61 = vector.broadcast %cst_34 : f32 to vector<2x256xf32>
    %62 = arith.maximumf %60, %61 : vector<2x256xf32>
    %cst_35 = arith.constant dense<0.000000e+00> : vector<2x128xf32>
    %63 = tpu.matmul %62, %49, %cst_35 {dimension_numbers = #tpu.dot_dimension_numbers<[1], [0], [0], [1], [0, 0, 1, 1], [], []>} : vector<2x256xf32>, vector<256x128xf32>, vector<2x128xf32> -> vector<2x128xf32>
    %64 = vector.broadcast %50 : vector<1x128xf32> to vector<2x128xf32>
    %65 = arith.addf %63, %64 : vector<2x128xf32>
    %66 = vector.shape_cast %65 : vector<2x128xf32> to vector<1x2x128xf32>
    %c0_36 = arith.constant 0 : index
    %c0_37 = arith.constant 0 : index
    %c0_38 = arith.constant 0 : index
    %67 = vector.load %arg14[%c0_36, %c0_37, %c0_38] : memref<1x2x128xf32, #tpu.memory_space<vmem>>, vector<1x2x128xf32>
    tpu.vector_store %arg14[%c0_36, %c0_37, %c0_38], %66 {strides = array<i32>} : memref<1x2x128xf32, #tpu.memory_space<vmem>>, vector<1x2x128xf32>,
    return
  }
  func.func @transform_0(%arg0: i32) -> (i32, i32, i32) {
    %c0_i32 = arith.constant 0 : i32
    %c0_i32_0 = arith.constant 0 : i32
    %c0_i32_1 = arith.constant 0 : i32
    return %arg0, %c0_i32, %c0_i32_0 : i32, i32, i32
  }
  func.func @transform_1(%arg0: i32) -> (i32, i32) {
    %c0_i32 = arith.constant 0 : i32
    %c0_i32_0 = arith.constant 0 : i32
    %c0_i32_1 = arith.constant 0 : i32
    return %c0_i32, %c0_i32_0 : i32, i32
  }
  func.func @transform_2(%arg0: i32) -> (i32, i32) {
    %c0_i32 = arith.constant 0 : i32
    %c0_i32_0 = arith.constant 0 : i32
    %c0_i32_1 = arith.constant 0 : i32
    return %c0_i32, %c0_i32_0 : i32, i32
  }
  func.func @transform_3(%arg0: i32) -> (i32, i32) {
    %c0_i32 = arith.constant 0 : i32
    %c0_i32_0 = arith.constant 0 : i32
    %c0_i32_1 = arith.constant 0 : i32
    return %c0_i32, %c0_i32_0 : i32, i32
  }
  func.func @transform_4(%arg0: i32) -> (i32, i32) {
    %c0_i32 = arith.constant 0 : i32
    %c0_i32_0 = arith.constant 0 : i32
    %c0_i32_1 = arith.constant 0 : i32
    return %c0_i32, %c0_i32_0 : i32, i32
  }
  func.func @transform_5(%arg0: i32) -> (i32, i32) {
    %c0_i32 = arith.constant 0 : i32
    %c0_i32_0 = arith.constant 0 : i32
    %c0_i32_1 = arith.constant 0 : i32
    return %c0_i32, %c0_i32_0 : i32, i32
  }
  func.func @transform_6(%arg0: i32) -> (i32, i32) {
    %c0_i32 = arith.constant 0 : i32
    %c0_i32_0 = arith.constant 0 : i32
    %c0_i32_1 = arith.constant 0 : i32
    return %c0_i32, %c0_i32_0 : i32, i32
  }
  func.func @transform_7(%arg0: i32) -> (i32, i32) {
    %c0_i32 = arith.constant 0 : i32
    %c0_i32_0 = arith.constant 0 : i32
    %c0_i32_1 = arith.constant 0 : i32
    return %c0_i32, %c0_i32_0 : i32, i32
  }
  func.func @transform_8(%arg0: i32) -> (i32, i32) {
    %c0_i32 = arith.constant 0 : i32
    %c0_i32_0 = arith.constant 0 : i32
    %c0_i32_1 = arith.constant 0 : i32
    return %c0_i32, %c0_i32_0 : i32, i32
  }
  func.func @transform_9(%arg0: i32) -> (i32, i32) {
    %c0_i32 = arith.constant 0 : i32
    %c0_i32_0 = arith.constant 0 : i32
    %c0_i32_1 = arith.constant 0 : i32
    return %c0_i32, %c0_i32_0 : i32, i32
  }
  func.func @transform_10(%arg0: i32) -> (i32, i32) {
    %c0_i32 = arith.constant 0 : i32
    %c0_i32_0 = arith.constant 0 : i32
    %c0_i32_1 = arith.constant 0 : i32
    return %c0_i32, %c0_i32_0 : i32, i32
  }
  func.func @transform_11(%arg0: i32) -> (i32, i32) {
    %c0_i32 = arith.constant 0 : i32
    %c0_i32_0 = arith.constant 0 : i32
    %c0_i32_1 = arith.constant 0 : i32
    return %c0_i32, %c0_i32_0 : i32, i32
  }
  func.func @transform_12(%arg0: i32) -> (i32, i32) {
    %c0_i32 = arith.constant 0 : i32
    %c0_i32_0 = arith.constant 0 : i32
    %c0_i32_1 = arith.constant 0 : i32
    return %c0_i32, %c0_i32_0 : i32, i32
  }
  func.func @transform_13(%arg0: i32) -> (i32, i32, i32) {
    %c0_i32 = arith.constant 0 : i32
    %c0_i32_0 = arith.constant 0 : i32
    %c0_i32_1 = arith.constant 0 : i32
    return %arg0, %c0_i32, %c0_i32_0 : i32, i32, i32
  }
}

</mosaic_0001>

<bundles_post_ra>
// kernel: tpu_custom_call.1
= control target key start
LH: loop header
LB: loop body
LE: loop exit
PB: predicated region body
PF: predicated region fallthrough
CT: control target
= control target key end

     0   :  { %18 = vsyncpa [#allocation3], 0  ;;  %s8316_s0 = inlined_call_operand.vmem [shape: f32[2,128,3], index: 0, kind: input, shape index: {}]   ;;  %s8317_s1 = inlined_call_operand.vmem [shape: f32[3,128], index: 1, kind: input, shape index: {}]   ;;  %s8318_s2 = inlined_call_operand.vmem [shape: f32[1,128], index: 2, kind: input, shape index: {}]   ;;  %s8319_s3 = inlined_call_operand.hbm [shape: bf16[128,128], index: 3, kind: input, shape index: {}]   ;;  %s8320_s4 = inlined_call_operand.vmem [shape: f32[1,128], index: 4, kind: input, shape index: {}]   ;;  %s8321_s5 = inlined_call_operand.hbm [shape: bf16[128,1024], index: 5, kind: input, shape index: {}]   ;;  %s8322_s6 = inlined_call_operand.vmem [shape: f32[1,1024], index: 6, kind: input, shape index: {}]   ;;  %s8323_s7 = inlined_call_operand.hbm [shape: bf16[1024,512], index: 7, kind: input, shape index: {}]   ;;  %s8324_s8 = inlined_call_operand.vmem [shape: f32[1,512], index: 8, kind: input, shape index: {}]   ;;  %s8325_s9 = inlined_call_operand.hbm [shape: bf16[512,256], index: 9, kind: input, shape index: {}]   ;;  %s8326_s10 = inlined_call_operand.vmem [shape: f32[1,256], index: 10, kind: input, shape index: {}]   ;;  %s8327_s11 = inlined_call_operand.vmem [shape: f32[256,128], index: 11, kind: input, shape index: {}]   ;;  %s8328_s12 = inlined_call_operand.vmem [shape: f32[1,128], index: 12, kind: input, shape index: {}]   ;;  %s8329_s13 = inlined_call_operand.hbm [shape: f32[1,2,128], index: 13, kind: output, shape index: {}]  }
   0x1   :  { %19 = vsyncpa [#allocation6], 0 }
   0x2   :  { %20 = vsyncpa [#allocation9], 0 }
   0x3   :  { %21 = vsyncpa [#allocation4], 0  ;;  %s6679_s25 = smov [#allocation5]  }
   0x4   :  { %s47_s26 = sshll.u32 %s6679_s25, 4  ;;  %s48_s26 = int_to_ptr.vmem [resolvable:$true] %s47_s26 }
   0x5   :  { %s6579_s27 = scalar_lea.vmem %s48_s26, 8192  ;;  %p6584_p1 = scmp.lt.s32.totalorder %s48_s26, %s48_s26 }
   0x6   :  { %p6580_p0 = scmp.ne.s32.totalorder %s48_s26, %s6579_s27  ;;  %p6585_p2 = scmp.lt.s32.totalorder %s6579_s27, %s6579_s27 }
   0x8   :  { %p6586_p3 = por %p6585_p2, %p6584_p1 }
   0xa   :  { %p6587_p4 = pnand %p6586_p3, %p6580_p0 }
   0xc   :  { %6590 = shalt.err (!%p6587_p4)
}
   0xd   :  { %s6680_s28 = smov 512   ;;  %s6681_s29 = smov 32  }
   0xe   :  { %53 = dma.hbm_to_vmem [thread:$0]  %s8321_s5, 8192, %s48_s26, [#allocation6], %s6680_s28, %s6680_s28, %s6681_s29  }
   0xf   :  { %s6682_s15 = smov [#allocation2]  }
  0x10   :  { %s33_s16 = sshll.u32 %s6682_s15, 4  ;;  %s34_s16 = int_to_ptr.vmem [resolvable:$true] %s33_s16 }
  0x11   :  { %s6599_s17 = scalar_lea.vmem %s34_s16, 1024  ;;  %p6604_p6 = scmp.lt.s32.totalorder %s34_s16, %s34_s16 }
  0x12   :  { %p6600_p5 = scmp.ne.s32.totalorder %s34_s16, %s6599_s17  ;;  %p6605_p7 = scmp.lt.s32.totalorder %s6599_s17, %s6599_s17 }
  0x14   :  { %p6606_p8 = por %p6605_p7, %p6604_p6 }
  0x16   :  { %p6607_p9 = pnand %p6606_p8, %p6600_p5 }
  0x18   :  { %6610 = shalt.err (!%p6607_p9)
}
  0x19   :  { %s6683_s18 = smov 64   ;;  %s6684_s19 = smov 4  }
  0x1a   :  { %39 = dma.hbm_to_vmem [thread:$0]  %s8319_s3, 1024, %s34_s16, [#allocation3], %s6683_s18, %s6683_s18, %s6684_s19  }
  0x1b   :  { %s6685_s22 = smov [#allocation7]  }
  0x1c   :  { %s61_s23 = sshll.u32 %s6685_s22, 4  ;;  %s62_s23 = int_to_ptr.vmem [resolvable:$true] %s61_s23 }
  0x1d   :  { %s6619_s5 = scalar_lea.vmem %s62_s23, 32768  ;;  %p6624_p11 = scmp.lt.s32.totalorder %s62_s23, %s62_s23 }
  0x1e   :  { %p6620_p10 = scmp.ne.s32.totalorder %s62_s23, %s6619_s5  ;;  %p6625_p12 = scmp.lt.s32.totalorder %s6619_s5, %s6619_s5 }
  0x20   :  { %p6626_p13 = por %p6625_p12, %p6624_p11 }
  0x22   :  { %p6627_p0 = pnand %p6626_p13, %p6620_p10 }
  0x24   :  { %6630 = shalt.err (!%p6627_p0)
}
  0x25   :  { %s6686_s24 = smov 256   ;;  %s6687_s25 = smov 16  }
  0x26   :  { %67 = dma.hbm_to_vmem [thread:$0]  %s8323_s7, 32768, %s62_s23, [#allocation6], %s6686_s24, %s6686_s24, %s6687_s25  }
  0x27   :  { %s6688_s28 = smov [#allocation8]  }
  0x28   :  { %s75_s29 = sshll.u32 %s6688_s28, 4  ;;  %s76_s29 = int_to_ptr.vmem [resolvable:$true] %s75_s29 }
  0x29   :  { %s6639_s3 = scalar_lea.vmem %s76_s29, 8192  ;;  %p6644_p2 = scmp.lt.s32.totalorder %s76_s29, %s76_s29 }
  0x2a   :  { %p6640_p1 = scmp.ne.s32.totalorder %s76_s29, %s6639_s3  ;;  %p6645_p3 = scmp.lt.s32.totalorder %s6639_s3, %s6639_s3 }
  0x2c   :  { %p6646_p4 = por %p6645_p3, %p6644_p2 }
  0x2e   :  { %p6647_p5 = pnand %p6646_p4, %p6640_p1 }
  0x30   :  { %6650 = shalt.err (!%p6647_p5)
}
  0x31   :  { %s6689_s30 = smov 128   ;;  %s6690_s14 = smov 8  }
  0x32   :  { %81 = dma.hbm_to_vmem [thread:$0]  %s8325_s9, 8192, %s76_s29, [#allocation9], %s6689_s30, %s6689_s30, %s6690_s14  }
  0x33   :  { %6671 = dma.done.wait [#allocation3], 1024  }
  0x34   :  { %6672 = vsyncadd [#allocation3], 4294966272 }
  0x35   :  { %6673 = dma.done.wait [#allocation6], 40960  }
  0x36   :  { %6674 = vsyncadd [#allocation6], 4294926336 }
  0x37   :  { %6675 = dma.done.wait [#allocation9], 8192  }
  0x38   :  { %6676 = vsyncadd [#allocation9], 4294959104  ;;  %v6691_v0 = vmov 1   ;;  %v103_v1 = vld [vmem:[%s8316_s0 + $0x10] sm:$0xff]  ;;  %v101_v2 = vld [vmem:[%s8316_s0] sm:$0xff]  ;;  %v6692_v4 = vmov 2   ;;  %v377_v40 = vlaneseq }
  0x39   :  { %6037 = vset.pattern.permute.xlu0 %v6691_v0  ;;  %6035 = vset.pattern.permute.xlu1 %v6691_v0  ;;  %v102_v3 = vld [vmem:[%s8316_s0 + $0x8] sm:$0xff]  ;;  %v105_v5 = vld [vmem:[%s8316_s0 + $0x20] sm:$0xff]  ;;  %v104_v6 = vld [vmem:[%s8316_s0 + $0x18] sm:$0xff]  ;;  %v6693_v8 = vmov 0   ;;  %vm3351_vm0 = vcmask 1041409  }
  0x3a   :  { %422 = vperm.xlu0 %6037, %v103_v1   ;;  %414 = vperm.xlu1 %6035, %v101_v2   ;;  %v6082_v7 = vld [vmem:[#allocation2 + $0x38] sm:$0xff]   ;;  %v6083_v10 = vld [vmem:[#allocation2 + $0x30] sm:$0xff]   ;;  %v6804_v11 = vld [vmem:[%s8316_s0 + $0x48] sm:$0xff]  ;;  %v6926_v44 = vshrl.u32 %v377_v40, 7 }
  0x3b   :  { %v6799_v9 = vld [vmem:[%s8316_s0 + $0x38] sm:$0xff]  ;;  %5955 = vmatprep.subr.bf16.mxu0 %v6082_v7  ;;  %6003 = vmatprep.subr.bf16.mxu1 %v6082_v7  ;;  %v6084_v12 = vld [vmem:[#allocation2 + $0x28] sm:$0xff]   ;;  %v6085_v13 = vld [vmem:[#allocation2 + $0x20] sm:$0xff]  }
  0x3c   :  { %5956 = vmatpush3.bf16.msra.mxu0 %v6082_v7  ;;  %6011 = vmatpush3.bf16.msra.mxu1 %v6082_v7  ;;  %v6086_v14 = vld [vmem:[#allocation2 + $0x18] sm:$0xff]   ;;  %v6087_v15 = vld [vmem:[#allocation2 + $0x10] sm:$0xff]   ;;  %v106_v16 = vld [vmem:[%s8316_s0 + $0x28] sm:$0xff]  ;;  %8337 = vst [vmem:[#allocation15_spill] sm:$0xff] %v6926_v44  ;;  %v6939_v48 = vsub.s32 1, %v6926_v44  ;;  %v6952_v51 = vsub.s32 2, %v6926_v44 }
  0x3d   :  { %5957 = vmatprep.subr.bf16.mxu0 %v6083_v10  ;;  %6004 = vmatprep.subr.bf16.mxu1 %v6083_v10  ;;  %v6088_v17 = vld [vmem:[#allocation2 + $0x8] sm:$0xff]   ;;  %v6089_v18 = vld [vmem:[#allocation2] sm:$0xff]   ;;  %v111_v19 = vld [vmem:[%s8316_s0 + $0x50] sm:$0xff]  ;;  %v6955_v52 = vsub.s32 0, %v6926_v44 }
  0x3e   :  { %6040 = vset.pattern.permute.xlu0 %v6692_v4  ;;  %418 = vperm.xlu1 %6035, %v102_v3   ;;  %v107_v20 = vld [vmem:[%s8316_s0 + $0x30] sm:$0xff]  ;;  %v113_v21 = vld [vmem:[%s8316_s0 + $0x60] sm:$0xff]  ;;  %v6830_v22 = vld [vmem:[%s8316_s0 + $0x88] sm:$0xff]  ;;  %8338 = vst [vmem:[#allocation16_spill] sm:$0xff] %v6939_v48 }
  0x3f   :  { %614 = vperm.xlu0 %6040, %v102_v3   ;;  %v6836_v23 = vld [vmem:[%s8316_s0 + $0x90] sm:$0xff]  ;;  %v109_v24 = vld [vmem:[%s8316_s0 + $0x40] sm:$0xff]  ;;  %v114_v25 = vld [vmem:[%s8316_s0 + $0x68] sm:$0xff]  ;;  %8339 = vst [vmem:[#allocation17_spill] sm:$0xff] %v6952_v51 }
  0x40   :  { %5958 = vmatpush3.bf16.msra.mxu0 %v6083_v10  ;;  %6012 = vmatpush3.bf16.msra.mxu1 %v6083_v10  ;;  %v115_v26 = vld [vmem:[%s8316_s0 + $0x70] sm:$0xff]  ;;  %v112_v27 = vld [vmem:[%s8316_s0 + $0x58] sm:$0xff]  ;;  %v6863_v28 = vld [vmem:[%s8316_s0 + $0xa8] sm:$0xff]  ;;  %8340 = vst [vmem:[#allocation18_spill] sm:$0xff] %v6955_v52 }
  0x41   :  { %5959 = vmatprep.subr.bf16.mxu0 %v6084_v12  ;;  %6005 = vmatprep.subr.bf16.mxu1 %v6084_v12  ;;  %v6869_v29 = vld [vmem:[%s8316_s0 + $0xb0] sm:$0xff]  ;;  %v116_v30 = vld [vmem:[%s8316_s0 + $0x78] sm:$0xff]  ;;  %v6882_v31 = vld [vmem:[%s8316_s0 + $0xa0] sm:$0xff] }
  0x42   :  { %6036 = vset.pattern.permute.xlu1 %v6693_v8  ;;  %v6889_v32 = vld [vmem:[%s8316_s0 + $0xb8] sm:$0xff]  ;;  %v6896_v33 = vld [vmem:[%s8316_s0 + $0xc8] sm:$0xff]  ;;  %v6907_v34 = vld [vmem:[%s8316_s0 + $0xd0] sm:$0xff] }
  0x43   :  { %626 = vperm.xlu0 %6040, %v105_v5   ;;  %234 = vperm.xlu1 %6036, %v104_v6   ;;  %v6915_v37 = vld [vmem:[%s8316_s0 + $0xe0] sm:$0xff]  ;;  %v6934_v45 = vld [vmem:[%s8316_s0 + $0xe8] sm:$0xff]  ;;  %v6949_v50 = vld [vmem:[%s8316_s0 + $0xf0] sm:$0xff] }
  0x44   :  { %5960 = vmatpush3.bf16.msra.mxu0 %v6084_v12  ;;  %6013 = vmatpush3.bf16.msra.mxu1 %v6084_v12  ;;  %v6923_v43 = vld [vmem:[%s8316_s0 + $0x80] sm:$0xff]  ;;  %v120_v62 = vld [vmem:[%s8316_s0 + $0x98] sm:$0xff] }
  0x45   :  { %5961 = vmatprep.subr.bf16.mxu0 %v6085_v13  ;;  %6006 = vmatprep.subr.bf16.mxu1 %v6085_v13  ;;  %v133_v49 = vld [vmem:[%s8317_s1] sm:$0x7]  ;;  %v6988_v12 = vld [vmem:[%s8316_s0 + $0xf8] sm:$0xff] }
  0x46   :  { %v6961_v54 = vrot.slane %v133_v49, %v6939_v48  ;;  %v6965_v56 = vrot.slane %v133_v49, %v6952_v51  ;;  %v6968_v57 = vrot.slane %v133_v49, %v6955_v52 }
  0x47   :  { %638 = vperm.xlu0 %6040, %v6799_v9   ;;  %6038 = vset.pattern.permute.xlu1 %v6691_v0 }
  0x48   :  { %426 = vperm.xlu1 %6038, %v104_v6   ;;  %5962 = vmatpush3.bf16.msra.mxu0 %v6085_v13 }
  0x49   :  { %5963 = vmatprep.subr.bf16.mxu0 %v6086_v14  ;;  %6014 = vmatpush3.bf16.msra.mxu1 %v6085_v13  ;;  %v6993_v13 = vld [vmem:[%s8318_s2] ss:$0 sm:$0xff] }
  0x4a   :  { %6007 = vmatprep.subr.bf16.mxu1 %v6086_v14 }
  0x4b   :  { %646 = vperm.xlu0 %6040, %v6804_v11  }
  0x4c   :  { %6039 = vset.pattern.permute.xlu1 %v6692_v4  ;;  %5964 = vmatpush3.bf16.msra.mxu0 %v6086_v14 }
  0x4d   :  { %610 = vperm.xlu1 %6039, %v101_v2   ;;  %5965 = vmatprep.subr.bf16.mxu0 %v6087_v15 }
  0x4e   :  { %6015 = vmatpush3.bf16.msra.mxu1 %v6086_v14 }
  0x4f   :  { %6051 = vset.pattern.permute.xlu0 %v6693_v8  ;;  %6008 = vmatprep.subr.bf16.mxu1 %v6087_v15 }
  0x50   :  { %219 = vperm.xlu0 %6051, %v101_v2   ;;  %5966 = vmatpush3.bf16.msra.mxu0 %v6087_v15 }
  0x51   :  { %618 = vperm.xlu1 %6039, %v103_v1   ;;  %5967 = vmatprep.subr.bf16.mxu0 %v6088_v17 }
  0x52   :  { %6016 = vmatpush3.bf16.msra.mxu1 %v6087_v15 }
  0x53   :  { %6009 = vmatprep.subr.bf16.mxu1 %v6088_v17 }
  0x54   :  { %224 = vperm.xlu0 %6051, %v102_v3   ;;  %5968 = vmatpush3.bf16.msra.mxu0 %v6088_v17 }
  0x55   :  { %622 = vperm.xlu1 %6039, %v104_v6   ;;  %5969 = vmatprep.subr.bf16.mxu0 %v6089_v18 }
  0x56   :  { %6017 = vmatpush3.bf16.msra.mxu1 %v6088_v17 }
  0x57   :  { %6010 = vmatprep.subr.bf16.mxu1 %v6089_v18 }
  0x58   :  { %229 = vperm.xlu0 %6051, %v103_v1   ;;  %5970 = vmatpush3.bf16.msra.mxu0 %v6089_v18 }
  0x59   :  { %6041 = vset.pattern.permute.xlu1 %v6693_v8 }
  0x5a   :  { %244 = vperm.xlu1 %6041, %v106_v16   ;;  %6018 = vmatpush3.bf16.msra.mxu1 %v6089_v18 }
  0x5c   :  { %239 = vperm.xlu0 %6051, %v105_v5  }
  0x5e   :  { %6042 = vset.pattern.permute.xlu1 %v6691_v0 }
  0x5f   :  { %430 = vperm.xlu1 %6042, %v105_v5  }
  0x60   :  { %264 = vperm.xlu0 %6051, %v6804_v11  }
  0x63   :  { %6043 = vset.pattern.permute.xlu1 %v6693_v8 }
  0x64   :  { %269 = vperm.xlu0 %6051, %v111_v19   ;;  %249 = vperm.xlu1 %6043, %v107_v20  }
  0x68   :  { %279 = vperm.xlu0 %6051, %v113_v21   ;;  %254 = vperm.xlu1 %6043, %v6799_v9  }
  0x6c   :  { %304 = vperm.xlu0 %6051, %v6830_v22   ;;  %6044 = vset.pattern.permute.xlu1 %v6691_v0 }
  0x6d   :  { %442 = vperm.xlu1 %6044, %v6799_v9  }
  0x70   :  { %309 = vperm.xlu0 %6051, %v6836_v23  }
  0x71   :  { %6045 = vset.pattern.permute.xlu1 %v6692_v4 }
  0x72   :  { %630 = vperm.xlu1 %6045, %v106_v16  }
  0x74   :  { %6059 = vset.pattern.permute.xlu0 %v6691_v0 }
  0x75   :  { %434 = vperm.xlu0 %6059, %v106_v16  }
  0x76   :  { %634 = vperm.xlu1 %6045, %v107_v20  }
  0x79   :  { %438 = vperm.xlu0 %6059, %v107_v20  }
  0x7a   :  { %6046 = vset.pattern.permute.xlu1 %v6693_v8 }
  0x7b   :  { %259 = vperm.xlu1 %6046, %v109_v24  }
  0x7d   :  { %454 = vperm.xlu0 %6059, %v111_v19  }
  0x7f   :  { %6047 = vset.pattern.permute.xlu1 %v6691_v0 }
  0x80   :  { %446 = vperm.xlu1 %6047, %v109_v24  }
  0x81   :  { %466 = vperm.xlu0 %6059, %v114_v25  }
  0x84   :  { %450 = vperm.xlu1 %6047, %v6804_v11  }
  0x85   :  { %470 = vperm.xlu0 %6059, %v115_v26  }
  0x88   :  { %6048 = vset.pattern.permute.xlu1 %v6693_v8 }
  0x89   :  { %274 = vperm.xlu1 %6048, %v112_v27   ;;  %486 = vperm.xlu0 %6059, %v6836_v23  }
  0x8d   :  { %6049 = vset.pattern.permute.xlu1 %v6691_v0  ;;  %498 = vperm.xlu0 %6059, %v6863_v28  }
  0x8e   :  { %458 = vperm.xlu1 %6049, %v112_v27  }
  0x91   :  { %502 = vperm.xlu0 %6059, %v6869_v29  }
  0x92   :  { %6050 = vset.pattern.permute.xlu1 %v6692_v4 }
  0x93   :  { %642 = vperm.xlu1 %6050, %v109_v24  }
  0x95   :  { %6066 = vset.pattern.permute.xlu0 %v6692_v4 }
  0x96   :  { %658 = vperm.xlu0 %6066, %v113_v21  }
  0x97   :  { %650 = vperm.xlu1 %6050, %v111_v19  }
  0x9a   :  { %670 = vperm.xlu0 %6066, %v116_v30  }
  0x9b   :  { %654 = vperm.xlu1 %6050, %v112_v27  }
  0x9e   :  { %678 = vperm.xlu0 %6066, %v6830_v22  }
  0x9f   :  { %6052 = vset.pattern.permute.xlu1 %v6693_v8 }
  0xa0   :  { %284 = vperm.xlu1 %6052, %v114_v25  }
  0xa2   :  { %690 = vperm.xlu0 %6066, %v6882_v31  }
  0xa4   :  { %6053 = vset.pattern.permute.xlu1 %v6691_v0 }
  0xa5   :  { %462 = vperm.xlu1 %6053, %v113_v21  }
  0xa6   :  { %702 = vperm.xlu0 %6066, %v6889_v32  }
  0xa9   :  { %6054 = vset.pattern.permute.xlu1 %v6693_v8 }
  0xaa   :  { %289 = vperm.xlu1 %6054, %v115_v26   ;;  %710 = vperm.xlu0 %6066, %v6896_v33  }
  0xae   :  { %294 = vperm.xlu1 %6054, %v116_v30   ;;  %6074 = vset.pattern.permute.xlu0 %v6693_v8 }
  0xaf   :  { %319 = vperm.xlu0 %6074, %v6882_v31  }
  0xb2   :  { %6055 = vset.pattern.permute.xlu1 %v6691_v0 }
  0xb3   :  { %474 = vperm.xlu1 %6055, %v116_v30   ;;  %344 = vperm.xlu0 %6074, %v6896_v33  }
  0xb5   :  { %v415_v35 = vpop.permute.xlu1 %414  ;;  %v423_v36 = vpop.permute.xlu0 %422 }
  0xb6   :  { %v545_v59 = vmul.f32 %v6961_v54, %v415_v35  ;;  %v547_v15 = vmul.f32 %v6961_v54, %v423_v36 }
  0xb7   :  { %6056 = vset.pattern.permute.xlu1 %v6692_v4  ;;  %349 = vperm.xlu0 %6074, %v6907_v34  }
  0xb8   :  { %662 = vperm.xlu1 %6056, %v114_v25  }
  0xb9   :  { %v419_v38 = vpop.permute.xlu1 %418 }
  0xba   :  { %v615_v39 = vpop.permute.xlu0 %614  ;;  %v546_v3 = vmul.f32 %v6961_v54, %v419_v38 }
  0xbb   :  { %359 = vperm.xlu0 %6074, %v6915_v37   ;;  %v742_v6 = vmul.f32 %v6965_v56, %v615_v39 }
  0xbc   :  { %666 = vperm.xlu1 %6056, %v115_v26  }
  0xbe   :  { %v235_v41 = vpop.permute.xlu1 %234  ;;  %v6918_v42 = vpop.permute.xlu0 %626 }
  0xbf   :  { %6075 = vset.pattern.permute.xlu0 %v6691_v0  ;;  %v384_v7 = vmul.f32 %v6968_v57, %v235_v41 }
  0xc0   :  { %6057 = vset.pattern.permute.xlu1 %v6693_v8  ;;  %518 = vperm.xlu0 %6075, %v6907_v34  }
  0xc1   :  { %299 = vperm.xlu1 %6057, %v6923_v43  }
  0xc2   :  { %v6936_v46 = vpop.permute.xlu0 %638 }
  0xc3   :  { %v427_v47 = vpop.permute.xlu1 %426 }
  0xc4   :  { %530 = vperm.xlu0 %6075, %v6934_v45   ;;  %v548_v63 = vmul.f32 %v6961_v54, %v427_v47 }
  0xc5   :  { %6058 = vset.pattern.permute.xlu1 %v6691_v0 }
  0xc6   :  { %478 = vperm.xlu1 %6058, %v6923_v43   ;;  %v6958_v53 = vpop.permute.xlu0 %646  ;;  %v580_v16 = vadd.f32 %v548_v63, %v384_v7 }
  0xc8   :  { %v611_v55 = vpop.permute.xlu1 %610  ;;  %534 = vperm.xlu0 %6075, %v6949_v50  }
  0xc9   :  { %v741_v1 = vmul.f32 %v6965_v56, %v611_v55 }
  0xca   :  { %482 = vperm.xlu1 %6058, %v6830_v22  }
  0xcb   :  { %v220_v58 = vpop.permute.xlu0 %219 }
  0xcc   :  { %v381_v60 = vmul.f32 %v6968_v57, %v220_v58  ;;  %v619_v61 = vpop.permute.xlu1 %618  ;;  %6080 = vset.pattern.permute.xlu0 %v6692_v4 }
  0xcd   :  { %722 = vperm.xlu0 %6080, %v6915_v37   ;;  %v743_v25 = vmul.f32 %v6965_v56, %v619_v61 }
  0xce   :  { %v577_v2 = vadd.f32 %v545_v59, %v381_v60  ;;  %6060 = vset.pattern.permute.xlu1 %v6693_v8 }
  0xcf   :  { %v225_v5 = vpop.permute.xlu0 %224  ;;  %314 = vperm.xlu1 %6060, %v120_v62  }
  0xd0   :  { %v382_v9 = vmul.f32 %v6968_v57, %v225_v5  ;;  %v623_v10 = vpop.permute.xlu1 %622  ;;  %v773_v11 = vadd.f32 %v741_v1, %v577_v2 }
  0xd1   :  { %v744_v14 = vmul.f32 %v6965_v56, %v623_v10  ;;  %734 = vperm.xlu0 %6080, %v6988_v12  }
  0xd2   :  { %v578_v17 = vadd.f32 %v546_v3, %v382_v9  ;;  %v811_v22 = vadd.f32 %v6993_v13, %v773_v11  ;;  %v748_v11 = vmul.f32 %v6965_v56, %v6936_v46 }
  0xd3   :  { %v230_v18 = vpop.permute.xlu0 %229  ;;  %6061 = vset.pattern.permute.xlu1 %v6691_v0  ;;  %v776_v19 = vadd.f32 %v744_v14, %v580_v16 }
  0xd4   :  { %v383_v20 = vmul.f32 %v6968_v57, %v230_v18  ;;  %490 = vperm.xlu1 %6061, %v120_v62   ;;  %v774_v21 = vadd.f32 %v742_v6, %v578_v17  ;;  %v843_v38 = vmax.f32 %v811_v22, 0.0 }
  0xd5   :  { %v245_v24 = vpop.permute.xlu1 %244  ;;  %v814_v35 = vadd.f32 %v6993_v13, %v776_v19 }
  0xd6   :  { %v579_v26 = vadd.f32 %v547_v15, %v383_v20  ;;  %v812_v27 = vadd.f32 %v6993_v13, %v774_v21 }
  0xd7   :  { %v240_v30 = vpop.permute.xlu0 %239  ;;  %v846_v58 = vmax.f32 %v814_v35, 0.0 }
  0xd8   :  { %v775_v36 = vadd.f32 %v743_v25, %v579_v26  ;;  %6062 = vset.pattern.permute.xlu1 %v6692_v4  ;;  %v844_v39 = vmax.f32 %v812_v27, 0.0  ;;  %v385_v3 = vmul.f32 %v6968_v57, %v240_v30 }
  0xd9   :  { %674 = vperm.xlu1 %6062, %v6923_v43  }
  0xda   :  { %v431_v40 = vpop.permute.xlu1 %430  ;;  %v875_v41 = vpack.c.bf16 %v844_v39, %v843_v38  ;;  %v813_v47 = vadd.f32 %v6993_v13, %v775_v36 }
  0xdb   :  { %v7007_v49 = vpop.permute.xlu0 %264 }
  0xdc   :  { %5971 = vmatprep.mubr.bf16.mxu0 %v875_v41  ;;  %v845_v55 = vmax.f32 %v813_v47, 0.0 }
  0xdd   :  { %682 = vperm.xlu1 %6062, %v6836_v23   ;;  %v549_v23 = vmul.f32 %v6961_v54, %v431_v40 }
  0xde   :  { %v876_v59 = vpack.c.bf16 %v846_v58, %v845_v55 }
  0xdf   :  { %v250_v60 = vpop.permute.xlu1 %249  ;;  %v7010_v61 = vpop.permute.xlu0 %269  ;;  %v581_v6 = vadd.f32 %v549_v23, %v385_v3  ;;  %v390_v3 = vmul.f32 %v6968_v57, %v7007_v49 }
  0xe0   :  { %5972 = vmatmul.mubr.bf16.vlgmr.msra.gmra.mxu0 %v876_v59  ;;  %v387_v20 = vmul.f32 %v6968_v57, %v250_v60 }
  0xe1   :  { %686 = vperm.xlu1 %6062, %v120_v62   ;;  %v745_v62 = vmul.f32 %v6965_v56, %v6918_v42 }
  0xe3   :  { %v255_v63 = vpop.permute.xlu1 %254  ;;  %v7012_v1 = vpop.permute.xlu0 %279  ;;  %v777_v15 = vadd.f32 %v745_v62, %v581_v6  ;;  %v750_v62 = vmul.f32 %v6965_v56, %v6958_v53 }
  0xe4   :  { %v388_v10 = vmul.f32 %v6968_v57, %v255_v63 }
  0xe5   :  { %6063 = vset.pattern.permute.xlu1 %v6693_v8  ;;  %v815_v26 = vadd.f32 %v6993_v13, %v777_v15 }
  0xe6   :  { %324 = vperm.xlu1 %6063, %v6863_v28  }
  0xe7   :  { %v7016_v43 = vpop.permute.xlu0 %304  ;;  %v847_v38 = vmax.f32 %v815_v26, 0.0  ;;  %v193_v26 = vld [vmem:[#allocation5 + $0x148] sm:$0xff] }
  0xe8   :  { %v443_v2 = vpop.permute.xlu1 %442 }
  0xe9   :  { %v552_v7 = vmul.f32 %v6961_v54, %v443_v2  ;;  %v7051_v2 = vld [vmem:[%s8316_s0 + $0xc0] sm:$0xff] }
  0xea   :  { %6064 = vset.pattern.permute.xlu1 %v6691_v0 }
  0xeb   :  { %494 = vperm.xlu1 %6064, %v6882_v31   ;;  %v7022_v5 = vpop.permute.xlu0 %309  ;;  %v386_v31 = vmul.f32 %v6968_v57, %v245_v24  ;;  %v584_v16 = vadd.f32 %v552_v7, %v388_v10  ;;  %v209_v7 = vld [vmem:[#allocation5 + $0x1c8] sm:$0xff] }
  0xed   :  { %v631_v9 = vpop.permute.xlu1 %630  ;;  %v780_v22 = vadd.f32 %v748_v11, %v584_v16 }
  0xee   :  { %v746_v18 = vmul.f32 %v6965_v56, %v631_v9  ;;  %v213_v9 = vld [vmem:[#allocation5 + $0x1e8] sm:$0xff] }
  0xef   :  { %6065 = vset.pattern.permute.xlu1 %v6693_v8  ;;  %v818_v40 = vadd.f32 %v6993_v13, %v780_v22  ;;  %v5570_v11 = vcombine.high %v209_v7, %v213_v9  ;;  %v5569_v49 = vcombine.low %v209_v7, %v213_v9 }
  0xf0   :  { %v435_v14 = vpop.permute.xlu0 %434  ;;  %329 = vperm.xlu1 %6065, %v6869_v29  }
  0xf1   :  { %v550_v42 = vmul.f32 %v6961_v54, %v435_v14  ;;  %v635_v17 = vpop.permute.xlu1 %634  ;;  %v850_v59 = vmax.f32 %v818_v40, 0.0  ;;  %v391_v14 = vmul.f32 %v6968_v57, %v7010_v61  ;;  %1708 = vmatprep.subr.bf16.mxu0 %v5570_v11 }
  0xf2   :  { %v747_v27 = vmul.f32 %v6965_v56, %v635_v17  ;;  %1709 = vmatpush1.bf16.msra.mxu0 %v5569_v49  ;;  %v201_v17 = vld [vmem:[#allocation5 + $0x188] sm:$0xff] }
  0xf3   :  { %v582_v19 = vadd.f32 %v550_v42, %v386_v31 }
  0xf4   :  { %v439_v21 = vpop.permute.xlu0 %438  ;;  %334 = vperm.xlu1 %6065, %v6889_v32  }
  0xf5   :  { %v778_v46 = vadd.f32 %v746_v18, %v582_v19  ;;  %v551_v25 = vmul.f32 %v6961_v54, %v439_v21  ;;  %v205_v18 = vld [vmem:[#allocation5 + $0x1a8] sm:$0xff] }
  0xf6   :  { %v260_v24 = vpop.permute.xlu1 %259  ;;  %v5562_v21 = vcombine.high %v201_v17, %v205_v18  ;;  %v5561_v22 = vcombine.low %v201_v17, %v205_v18  ;;  %v173_v17 = vld [vmem:[#allocation5 + $0xa8] sm:$0xff] }
  0xf7   :  { %v583_v30 = vadd.f32 %v551_v25, %v387_v20  ;;  %v816_v35 = vadd.f32 %v6993_v13, %v778_v46  ;;  %v389_v31 = vmul.f32 %v6968_v57, %v260_v24  ;;  %v197_v24 = vld [vmem:[#allocation5 + $0x168] sm:$0xff] }
  0xf8   :  { %6067 = vset.pattern.permute.xlu1 %v6691_v0  ;;  %1710 = vmatprep.subr.bf16.mxu0 %v5562_v21 }
  0xf9   :  { %v779_v36 = vadd.f32 %v747_v27, %v583_v30  ;;  %506 = vperm.xlu1 %6067, %v6889_v32   ;;  %v848_v39 = vmax.f32 %v816_v35, 0.0  ;;  %v128_v30 = vld [vmem:[%s8316_s0 + $0xd8] sm:$0xff]  ;;  %1711 = vmatpush1.bf16.msra.mxu0 %v5561_v22  ;;  %v5553_v35 = vcombine.low %v193_v26, %v197_v24 }
  0xfb   :  { %v447_v41 = vpop.permute.xlu1 %446  ;;  %v877_v47 = vpack.c.bf16 %v848_v39, %v847_v38  ;;  %v817_v55 = vadd.f32 %v6993_v13, %v779_v36  ;;  %v5554_v36 = vcombine.high %v193_v26, %v197_v24 }
  0xfc   :  { %v553_v10 = vmul.f32 %v6961_v54, %v447_v41 }
  0xfd   :  { %6068 = vset.pattern.permute.xlu1 %v6692_v4  ;;  %5975 = vmatprep.mubr.bf16.mxu0 %v877_v47  ;;  %v849_v58 = vmax.f32 %v817_v55, 0.0 }
  0xfe   :  { %694 = vperm.xlu1 %6068, %v6863_v28   ;;  %v455_v28 = vpop.permute.xlu0 %454  ;;  %v585_v19 = vadd.f32 %v553_v10, %v389_v31  ;;  %1712 = vmatprep.subr.bf16.mxu0 %v5554_v36  ;;  %v181_v10 = vld [vmem:[#allocation5 + $0xe8] sm:$0xff] }
  0xff   :  { %v451_v60 = vpop.permute.xlu1 %450  ;;  %v878_v63 = vpack.c.bf16 %v850_v59, %v849_v58  ;;  %v555_v53 = vmul.f32 %v6961_v54, %v455_v28  ;;  %1713 = vmatpush1.bf16.msra.mxu0 %v5553_v35  ;;  %v157_v35 = vld [vmem:[#allocation5 + $0x28] sm:$0xff] }
 0x100   :  { %v554_v23 = vmul.f32 %v6961_v54, %v451_v60  ;;  %v185_v60 = vld [vmem:[#allocation5 + $0x108] sm:$0xff] }
 0x101   :  { %5976 = vmatmul.mubr.bf16.gmra.mxu0 %v878_v63  ;;  %v587_v61 = vadd.f32 %v555_v53, %v391_v14  ;;  %v189_v63 = vld [vmem:[#allocation5 + $0x128] sm:$0xff] }
 0x102   :  { %698 = vperm.xlu1 %6068, %v6869_v29   ;;  %v586_v29 = vadd.f32 %v554_v23, %v390_v3  ;;  %v7067_v16 = vpop.permute.xlu0 %466 }
 0x104   :  { %v275_v32 = vpop.permute.xlu1 %274  ;;  %v782_v15 = vadd.f32 %v750_v62, %v586_v29  ;;  %v5546_v62 = vcombine.high %v185_v60, %v189_v63  ;;  %v5545_v29 = vcombine.low %v185_v60, %v189_v63  ;;  %v558_v60 = vmul.f32 %v6961_v54, %v7067_v16 }
 0x105   :  { %v392_v41 = vmul.f32 %v6968_v57, %v275_v32  ;;  %v177_v32 = vld [vmem:[#allocation5 + $0xc8] sm:$0xff] }
 0x106   :  { %6069 = vset.pattern.permute.xlu1 %v6693_v8  ;;  %v820_v25 = vadd.f32 %v6993_v13, %v782_v15  ;;  %v7077_v39 = vpop.permute.xlu0 %470  ;;  %1714 = vmatprep.subr.bf16.mxu0 %v5546_v62  ;;  %v5538_v14 = vcombine.high %v177_v32, %v181_v10  ;;  %v5537_v31 = vcombine.low %v177_v32, %v181_v10  ;;  %v7113_v32 = vld [vmem:[#allocation5 + $0x1c0] sm:$0xff] }
 0x107   :  { %339 = vperm.xlu1 %6069, %v7051_v2   ;;  %1715 = vmatpush1.bf16.msra.mxu0 %v5545_v29  ;;  %v559_v29 = vmul.f32 %v6961_v54, %v7077_v39  ;;  %v7115_v10 = vld [vmem:[#allocation5 + $0x1e0] sm:$0xff] }
 0x108   :  { %v852_v58 = vmax.f32 %v820_v25, 0.0  ;;  %1716 = vmatprep.subr.bf16.mxu0 %v5538_v14 }
 0x109   :  { %v459_v6 = vpop.permute.xlu1 %458 }
 0x10a   :  { %v556_v38 = vmul.f32 %v6961_v54, %v459_v6  ;;  %v7084_v7 = vpop.permute.xlu0 %486 }
 0x10b   :  { %6070 = vset.pattern.permute.xlu1 %v6691_v0  ;;  %1717 = vmatpush1.bf16.msra.mxu0 %v5537_v31 }
 0x10c   :  { %510 = vperm.xlu1 %6070, %v7051_v2   ;;  %v588_v3 = vadd.f32 %v556_v38, %v392_v41 }
 0x10e   :  { %v643_v42 = vpop.permute.xlu1 %642  ;;  %v7089_v18 = vpop.permute.xlu0 %498 }
 0x10f   :  { %v749_v20 = vmul.f32 %v6965_v56, %v643_v42  ;;  %v169_v42 = vld [vmem:[#allocation5 + $0x88] sm:$0xff] }
 0x110   :  { %514 = vperm.xlu1 %6070, %v6896_v33   ;;  %v5529_v22 = vcombine.low %v169_v42, %v173_v17 }
 0x111   :  { %v781_v46 = vadd.f32 %v749_v20, %v585_v19  ;;  %v5530_v20 = vcombine.high %v169_v42, %v173_v17 }
 0x112   :  { %v651_v27 = vpop.permute.xlu1 %650  ;;  %v7093_v26 = vpop.permute.xlu0 %502 }
 0x113   :  { %v819_v33 = vadd.f32 %v6993_v13, %v781_v46  ;;  %v751_v40 = vmul.f32 %v6965_v56, %v651_v27  ;;  %1718 = vmatprep.subr.bf16.mxu0 %v5530_v20  ;;  %v165_v46 = vld [vmem:[#allocation5 + $0x68] sm:$0xff] }
 0x114   :  { %6071 = vset.pattern.permute.xlu1 %v6693_v8  ;;  %1719 = vmatpush1.bf16.msra.mxu0 %v5529_v22 }
 0x115   :  { %v851_v47 = vmax.f32 %v819_v33, 0.0  ;;  %v783_v55 = vadd.f32 %v751_v40, %v587_v61  ;;  %354 = vperm.xlu1 %6071, %v128_v30   ;;  %v161_v61 = vld [vmem:[#allocation5 + $0x48] sm:$0xff]  ;;  %v393_v40 = vmul.f32 %v6968_v57, %v7012_v1 }
 0x116   :  { %v655_v59 = vpop.permute.xlu1 %654  ;;  %v5522_v25 = vcombine.high %v161_v61, %v165_v46  ;;  %v5521_v27 = vcombine.low %v161_v61, %v165_v46  ;;  %v659_v41 = vpop.permute.xlu0 %658 }
 0x117   :  { %v752_v23 = vmul.f32 %v6965_v56, %v655_v59  ;;  %v879_v28 = vpack.c.bf16 %v852_v58, %v851_v47  ;;  %v821_v6 = vadd.f32 %v6993_v13, %v783_v55 }
 0x118   :  { %1720 = vmatprep.subr.bf16.mxu0 %v5522_v25 }
 0x119   :  { %v784_v9 = vadd.f32 %v752_v23, %v588_v3  ;;  %6072 = vset.pattern.permute.xlu1 %v6691_v0  ;;  %5979 = vmatprep.mubr.bf16.mxu0 %v879_v28  ;;  %v853_v15 = vmax.f32 %v821_v6, 0.0 }
 0x11a   :  { %522 = vperm.xlu1 %6072, %v128_v30   ;;  %1721 = vmatpush1.bf16.msra.mxu0 %v5521_v27  ;;  %v671_v59 = vpop.permute.xlu0 %670 }
 0x11b   :  { %v822_v11 = vadd.f32 %v6993_v13, %v784_v9  ;;  %v285_v49 = vpop.permute.xlu1 %284  ;;  %v756_v28 = vmul.f32 %v6965_v56, %v671_v59 }
 0x11c   :  { %v394_v1 = vmul.f32 %v6968_v57, %v285_v49 }
 0x11d   :  { %v854_v53 = vmax.f32 %v822_v11, 0.0 }
 0x11e   :  { %6073 = vset.pattern.permute.xlu1 %v6692_v4  ;;  %v590_v6 = vadd.f32 %v558_v60, %v394_v1 }
 0x11f   :  { %706 = vperm.xlu1 %6073, %v7051_v2   ;;  %v880_v19 = vpack.c.bf16 %v854_v53, %v853_v15  ;;  %v153_v2 = vld [vmem:[#allocation5 + $0x8] sm:$0xff] }
 0x120   :  { %v463_v21 = vpop.permute.xlu1 %462  ;;  %v5514_v36 = vcombine.high %v153_v2, %v157_v35  ;;  %v5513_v33 = vcombine.low %v153_v2, %v157_v35 }
 0x121   :  { %5980 = vmatmul.mubr.bf16.gmra.mxu0 %v880_v19 }
 0x122   :  { %1722 = vmatprep.subr.bf16.mxu0 %v5514_v36 }
 0x123   :  { %714 = vperm.xlu1 %6073, %v6907_v34   ;;  %v557_v34 = vmul.f32 %v6961_v54, %v463_v21  ;;  %1723 = vmatpush1.bf16.msra.mxu0 %v5513_v33 }
 0x125   :  { %v290_v24 = vpop.permute.xlu1 %289  ;;  %v589_v47 = vadd.f32 %v557_v34, %v393_v40 }
 0x126   :  { %v395_v9 = vmul.f32 %v6968_v57, %v290_v24 }
 0x127   :  { %718 = vperm.xlu1 %6073, %v128_v30   ;;  %v753_v30 = vmul.f32 %v6965_v56, %v659_v41 }
 0x128   :  { %v591_v31 = vadd.f32 %v559_v29, %v395_v9 }
 0x129   :  { %v295_v38 = vpop.permute.xlu1 %294  ;;  %v785_v3 = vadd.f32 %v753_v30, %v589_v47  ;;  %v563_v47 = vmul.f32 %v6961_v54, %v7084_v7 }
 0x12a   :  { %v396_v63 = vmul.f32 %v6968_v57, %v295_v38  ;;  %v679_v38 = vpop.permute.xlu0 %678 }
 0x12b   :  { %6076 = vset.pattern.permute.xlu1 %v6693_v8  ;;  %v823_v11 = vadd.f32 %v6993_v13, %v785_v3  ;;  %v758_v33 = vmul.f32 %v6965_v56, %v679_v38 }
 0x12c   :  { %364 = vperm.xlu1 %6076, %v6934_v45  }
 0x12d   :  { %v855_v42 = vmax.f32 %v823_v11, 0.0 }
 0x12e   :  { %v475_v55 = vpop.permute.xlu1 %474 }
 0x12f   :  { %v560_v58 = vmul.f32 %v6961_v54, %v475_v55 }
 0x130   :  { %6077 = vset.pattern.permute.xlu1 %v6691_v0 }
 0x131   :  { %526 = vperm.xlu1 %6077, %v6915_v37   ;;  %v592_v23 = vadd.f32 %v560_v58, %v396_v63  ;;  %v5568_v37 = vcombine.high %v7113_v32, %v7115_v10 }
 0x133   :  { %v663_v62 = vpop.permute.xlu1 %662  ;;  %v788_v49 = vadd.f32 %v756_v28, %v592_v23  ;;  %1515 = vmatprep.subr.bf16.mxu1 %v5568_v37  ;;  %v691_v28 = vpop.permute.xlu0 %690 }
 0x134   :  { %v754_v16 = vmul.f32 %v6965_v56, %v663_v62 }
 0x135   :  { %6078 = vset.pattern.permute.xlu1 %v6693_v8  ;;  %v826_v17 = vadd.f32 %v6993_v13, %v788_v49 }
 0x136   :  { %v786_v14 = vadd.f32 %v754_v16, %v590_v6  ;;  %369 = vperm.xlu1 %6078, %v6949_v50  }
 0x137   :  { %v667_v39 = vpop.permute.xlu1 %666  ;;  %v858_v46 = vmax.f32 %v826_v17, 0.0  ;;  %v5567_v17 = vcombine.low %v7113_v32, %v7115_v10  ;;  %v176_v10 = vld [vmem:[#allocation5 + $0xc0] sm:$0xff] }
 0x138   :  { %v824_v15 = vadd.f32 %v6993_v13, %v786_v14  ;;  %v755_v53 = vmul.f32 %v6965_v56, %v667_v39  ;;  %v703_v14 = vpop.permute.xlu0 %702 }
 0x13a   :  { %v856_v19 = vmax.f32 %v824_v15, 0.0  ;;  %v787_v20 = vadd.f32 %v755_v53, %v591_v31  ;;  %374 = vperm.xlu1 %6078, %v6988_v12   ;;  %v200_v31 = vld [vmem:[#allocation5 + $0x180] sm:$0xff] }
 0x13b   :  { %v204_v15 = vld [vmem:[#allocation5 + $0x1a0] sm:$0xff] }
 0x13c   :  { %v825_v21 = vadd.f32 %v6993_v13, %v787_v20  ;;  %v300_v22 = vpop.permute.xlu1 %299  ;;  %v881_v61 = vpack.c.bf16 %v856_v19, %v855_v42  ;;  %v5560_v20 = vcombine.high %v200_v31, %v204_v15 }
 0x13d   :  { %v397_v34 = vmul.f32 %v6968_v57, %v300_v22  ;;  %v192_v22 = vld [vmem:[#allocation5 + $0x140] sm:$0xff] }
 0x13e   :  { %v857_v25 = vmax.f32 %v825_v21, 0.0  ;;  %6079 = vset.pattern.permute.xlu1 %v6691_v0  ;;  %5983 = vmatprep.mubr.bf16.mxu0 %v881_v61  ;;  %v398_v0 = vmul.f32 %v6968_v57, %v7016_v43  ;;  %v196_v61 = vld [vmem:[#allocation5 + $0x160] sm:$0xff] }
 0x13f   :  { %538 = vperm.xlu1 %6079, %v6988_v12  }
 0x140   :  { %v882_v24 = vpack.c.bf16 %v858_v46, %v857_v25  ;;  %v7154_v46 = vpop.permute.xlu0 %710  ;;  %v5559_v25 = vcombine.low %v200_v31, %v204_v15 }
 0x141   :  { %v479_v27 = vpop.permute.xlu1 %478 }
 0x142   :  { %5984 = vmatmul.mubr.bf16.gmra.mxu0 %v882_v24  ;;  %v5552_v24 = vcombine.high %v192_v22, %v196_v61 }
 0x143   :  { %6081 = vset.pattern.permute.xlu1 %v6692_v4  ;;  %1740 = vmatprep.mubr.bf16.mxu0 %v6693_v8  ;;  %v561_v4 = vmul.f32 %v6961_v54, %v479_v27  ;;  %v184_v27 = vld [vmem:[#allocation5 + $0x100] sm:$0xff] }
 0x144   :  { %726 = vperm.xlu1 %6081, %v6934_v45   ;;  %v320_v38 = vpop.permute.xlu0 %319 }
 0x145   :  { %v483_v2 = vpop.permute.xlu1 %482  ;;  %v593_v30 = vadd.f32 %v561_v4, %v397_v34 }
 0x146   :  { %v562_v36 = vmul.f32 %v6961_v54, %v483_v2  ;;  %v188_v2 = vld [vmem:[#allocation5 + $0x120] sm:$0xff] }
 0x147   :  { %v5544_v32 = vcombine.high %v184_v27, %v188_v2  ;;  %v5543_v4 = vcombine.low %v184_v27, %v188_v2 }
 0x148   :  { %730 = vperm.xlu1 %6081, %v6949_v50   ;;  %v594_v12 = vadd.f32 %v562_v36, %v398_v0  ;;  %v399_v50 = vmul.f32 %v6968_v57, %v7022_v5  ;;  %v5551_v36 = vcombine.low %v192_v22, %v196_v61  ;;  %v180_v0 = vld [vmem:[#allocation5 + $0xe0] sm:$0xff] }
 0x149   :  { %v5536_v34 = vcombine.high %v176_v10, %v180_v0 }
 0x14a   :  { %v315_v35 = vpop.permute.xlu1 %314  ;;  %v790_v41 = vadd.f32 %v758_v33, %v594_v12  ;;  %v595_v60 = vadd.f32 %v563_v47, %v399_v50  ;;  %v401_v33 = vmul.f32 %v6968_v57, %v320_v38  ;;  %v761_v50 = vmul.f32 %v6965_v56, %v691_v28  ;;  %v345_v38 = vpop.permute.xlu0 %344 }
 0x14b   :  { %v400_v23 = vmul.f32 %v6968_v57, %v315_v35 }
 0x14c   :  { %v828_v58 = vadd.f32 %v6993_v13, %v790_v41  ;;  %v168_v41 = vld [vmem:[#allocation5 + $0x80] sm:$0xff] }
 0x14e   :  { %v860_v7 = vmax.f32 %v828_v58, 0.0 }
 0x14f   :  { %v491_v40 = vpop.permute.xlu1 %490 }
 0x150   :  { %v564_v1 = vmul.f32 %v6961_v54, %v491_v40 }
 0x152   :  { %v596_v6 = vadd.f32 %v564_v1, %v400_v23  ;;  %v160_v1 = vld [vmem:[#allocation5 + $0x40] sm:$0xff]  ;;  %v764_v23 = vmul.f32 %v6965_v56, %v703_v14 }
 0x154   :  { %v675_v45 = vpop.permute.xlu1 %674 }
 0x155   :  { %v757_v55 = vmul.f32 %v6965_v56, %v675_v45  ;;  %v172_v45 = vld [vmem:[#allocation5 + $0xa0] sm:$0xff] }
 0x156   :  { %v5528_v58 = vcombine.high %v168_v41, %v172_v45 }
 0x157   :  { %v789_v43 = vadd.f32 %v757_v55, %v593_v30  ;;  %v5535_v55 = vcombine.low %v176_v10, %v180_v0  ;;  %v350_v10 = vpop.permute.xlu0 %349 }
 0x158   :  { %v683_v59 = vpop.permute.xlu1 %682 }
 0x159   :  { %v759_v63 = vmul.f32 %v6965_v56, %v683_v59  ;;  %v827_v3 = vadd.f32 %v6993_v13, %v789_v43 }
 0x15b   :  { %v791_v5 = vadd.f32 %v759_v63, %v595_v60  ;;  %v859_v62 = vmax.f32 %v827_v3, 0.0  ;;  %v164_v63 = vld [vmem:[#allocation5 + $0x60] sm:$0xff]  ;;  %v566_v3 = vmul.f32 %v6961_v54, %v7089_v18 }
 0x15c   :  { %v687_v29 = vpop.permute.xlu1 %686  ;;  %v5519_v31 = vcombine.low %v160_v1, %v164_v63 }
 0x15d   :  { %v760_v9 = vmul.f32 %v6965_v56, %v687_v29  ;;  %v883_v16 = vpack.c.bf16 %v860_v7, %v859_v62  ;;  %v829_v37 = vadd.f32 %v6993_v13, %v791_v5  ;;  %v5527_v62 = vcombine.low %v168_v41, %v172_v45 }
 0x15e   :  { %v5520_v29 = vcombine.high %v160_v1, %v164_v63 }
 0x15f   :  { %v792_v11 = vadd.f32 %v760_v9, %v596_v6  ;;  %5987 = vmatprep.mubr.bf16.mxu1 %v883_v16  ;;  %v861_v53 = vmax.f32 %v829_v37, 0.0  ;;  %v152_v37 = vld [vmem:[#allocation5] sm:$0xff] }
 0x161   :  { %v830_v49 = vadd.f32 %v6993_v13, %v792_v11  ;;  %v325_v39 = vpop.permute.xlu1 %324  ;;  %v156_v11 = vld [vmem:[#allocation5 + $0x20] sm:$0xff] }
 0x162   :  { %v402_v59 = vmul.f32 %v6968_v57, %v325_v39 }
 0x163   :  { %v862_v42 = vmax.f32 %v830_v49, 0.0  ;;  %v567_v49 = vmul.f32 %v6961_v54, %v7093_v26 }
 0x164   :  { %v598_v6 = vadd.f32 %v566_v3, %v402_v59 }
 0x165   :  { %v884_v19 = vpack.c.bf16 %v862_v42, %v861_v53  ;;  %v5512_v53 = vcombine.high %v152_v37, %v156_v11 }
 0x166   :  { %v495_v21 = vpop.permute.xlu1 %494 }
 0x167   :  { %5988 = vmatmul.mubr.bf16.vlgmr.msra.gmra.mxu1 %v884_v19  ;;  %v565_v40 = vmul.f32 %v6961_v54, %v495_v21 }
 0x168   :  { %1516 = vmatpush1.bf16.msra.mxu1 %v5567_v17 }
 0x169   :  { %1517 = vmatprep.subr.bf16.mxu1 %v5560_v20  ;;  %v597_v47 = vadd.f32 %v565_v40, %v401_v33  ;;  %v5511_v20 = vcombine.low %v152_v37, %v156_v11  ;;  %v7174_v33 = vpop.permute.xlu0 %359  ;;  %v406_v40 = vmul.f32 %v6968_v57, %v345_v38  ;;  %v7203_v38 = vld [vmem:[#allocation5 + $0x1d0] sm:$0xff] }
 0x16b   :  { %v330_v35 = vpop.permute.xlu1 %329  ;;  %v793_v5 = vadd.f32 %v761_v50, %v597_v47  ;;  %v766_v47 = vmul.f32 %v6965_v56, %v7154_v46 }
 0x16c   :  { %1518 = vmatpush1.bf16.msra.mxu1 %v5559_v25  ;;  %v403_v9 = vmul.f32 %v6968_v57, %v330_v35 }
 0x16d   :  { %1519 = vmatprep.subr.bf16.mxu1 %v5552_v24  ;;  %v831_v14 = vadd.f32 %v6993_v13, %v793_v5  ;;  %v519_v45 = vpop.permute.xlu0 %518 }
 0x16e   :  { %v599_v42 = vadd.f32 %v567_v49, %v403_v9 }
 0x16f   :  { %v335_v12 = vpop.permute.xlu1 %334  ;;  %v863_v61 = vmax.f32 %v831_v14, 0.0 }
 0x170   :  { %1520 = vmatpush1.bf16.msra.mxu1 %v5551_v36  ;;  %v404_v60 = vmul.f32 %v6968_v57, %v335_v12 }
 0x171   :  { %1521 = vmatprep.subr.bf16.mxu1 %v5544_v32 }
 0x174   :  { %v507_v30 = vpop.permute.xlu1 %506  ;;  %1522 = vmatpush1.bf16.msra.mxu1 %v5543_v4 }
 0x175   :  { %v568_v43 = vmul.f32 %v6961_v54, %v507_v30  ;;  %1523 = vmatprep.subr.bf16.mxu1 %v5536_v34 }
 0x177   :  { %v600_v28 = vadd.f32 %v568_v43, %v404_v60  ;;  %v571_v43 = vmul.f32 %v6961_v54, %v519_v45 }
 0x178   :  { %1524 = vmatpush1.bf16.msra.mxu1 %v5535_v55  ;;  %v407_v55 = vmul.f32 %v6968_v57, %v350_v10 }
 0x179   :  { %v695_v7 = vpop.permute.xlu1 %694  ;;  %1525 = vmatprep.subr.bf16.mxu1 %v5528_v58  ;;  %v796_v18 = vadd.f32 %v764_v23, %v600_v28 }
 0x17a   :  { %v762_v16 = vmul.f32 %v6965_v56, %v695_v7  ;;  %v603_v3 = vadd.f32 %v571_v43, %v407_v55 }
 0x17b   :  { %v834_v26 = vadd.f32 %v6993_v13, %v796_v18 }
 0x17c   :  { %v794_v39 = vadd.f32 %v762_v16, %v598_v6  ;;  %1526 = vmatpush1.bf16.msra.mxu1 %v5527_v62 }
 0x17d   :  { %v699_v15 = vpop.permute.xlu1 %698  ;;  %1527 = vmatprep.subr.bf16.mxu1 %v5520_v29  ;;  %v866_v35 = vmax.f32 %v834_v26, 0.0 }
 0x17e   :  { %v832_v17 = vadd.f32 %v6993_v13, %v794_v39  ;;  %v763_v19 = vmul.f32 %v6965_v56, %v699_v15  ;;  %v7194_v39 = vld [vmem:[%s8320_s4] ss:$0 sm:$0xff] }
 0x180   :  { %v864_v21 = vmax.f32 %v832_v17, 0.0  ;;  %v795_v22 = vadd.f32 %v763_v19, %v599_v42  ;;  %1528 = vmatpush1.bf16.msra.mxu1 %v5519_v31 }
 0x181   :  { %1529 = vmatprep.subr.bf16.mxu1 %v5512_v53 }
 0x182   :  { %v833_v25 = vadd.f32 %v6993_v13, %v795_v22  ;;  %v340_v24 = vpop.permute.xlu1 %339  ;;  %v885_v27 = vpack.c.bf16 %v864_v21, %v863_v61 }
 0x183   :  { %v405_v30 = vmul.f32 %v6968_v57, %v340_v24  ;;  %v531_v24 = vpop.permute.xlu0 %530 }
 0x184   :  { %v865_v2 = vmax.f32 %v833_v25, 0.0  ;;  %5991 = vmatprep.mubr.bf16.mxu1 %v885_v27  ;;  %1530 = vmatpush1.bf16.msra.mxu1 %v5511_v20 }
 0x186   :  { %v886_v36 = vpack.c.bf16 %v866_v35, %v865_v2 }
 0x187   :  { %v511_v32 = vpop.permute.xlu1 %510 }
 0x188   :  { %5992 = vmatmul.mubr.bf16.gmra.mxu1 %v886_v36  ;;  %v569_v50 = vmul.f32 %v6961_v54, %v511_v32  ;;  %v7205_v32 = vld [vmem:[#allocation5 + $0x1f0] sm:$0xff] }
 0x18a   :  { %v601_v60 = vadd.f32 %v569_v50, %v405_v30 }
 0x18b   :  { %v515_v0 = vpop.permute.xlu1 %514 }
 0x18c   :  { %v570_v4 = vmul.f32 %v6961_v54, %v515_v0  ;;  %v5572_v0 = vcombine.high %v7203_v38, %v7205_v32 }
 0x18e   :  { %v602_v41 = vadd.f32 %v570_v4, %v406_v40  ;;  %1901 = vmatprep.subr.bf16.mxu1 %v5572_v0  ;;  %v535_v40 = vpop.permute.xlu0 %534  ;;  %v211_v4 = vld [vmem:[#allocation5 + $0x1d8] sm:$0xff] }
 0x190   :  { %v355_v12 = vpop.permute.xlu1 %354  ;;  %v798_v58 = vadd.f32 %v766_v47, %v602_v41 }
 0x191   :  { %v408_v29 = vmul.f32 %v6968_v57, %v355_v12 }
 0x192   :  { %v836_v5 = vadd.f32 %v6993_v13, %v798_v58  ;;  %v723_v58 = vpop.permute.xlu0 %722 }
 0x194   :  { %v868_v11 = vmax.f32 %v836_v5, 0.0  ;;  %v574_v5 = vmul.f32 %v6961_v54, %v531_v24 }
 0x195   :  { %v523_v34 = vpop.permute.xlu1 %522 }
 0x196   :  { %v572_v28 = vmul.f32 %v6961_v54, %v523_v34  ;;  %v215_v34 = vld [vmem:[#allocation5 + $0x1f8] sm:$0xff] }
 0x197   :  { %v5573_v50 = vcombine.low %v211_v4, %v215_v34  ;;  %v5574_v47 = vcombine.high %v211_v4, %v215_v34 }
 0x198   :  { %v604_v49 = vadd.f32 %v572_v28, %v408_v29 }
 0x199   :  { %2094 = vmatprep.subr.bf16.mxu0 %v5574_v47  ;;  %v199_v47 = vld [vmem:[#allocation5 + $0x178] sm:$0xff] }
 0x19a   :  { %v707_v59 = vpop.permute.xlu1 %706 }
 0x19b   :  { %v765_v1 = vmul.f32 %v6965_v56, %v707_v59  ;;  %v409_v59 = vmul.f32 %v6968_v57, %v7174_v33 }
 0x19d   :  { %v797_v63 = vadd.f32 %v765_v1, %v601_v60  ;;  %v769_v1 = vmul.f32 %v6965_v56, %v723_v58  ;;  %v206_v58 = vld [vmem:[#allocation5 + $0x1b0] sm:$0xff] }
 0x19e   :  { %v715_v23 = vpop.permute.xlu1 %714 }
 0x19f   :  { %v835_v46 = vadd.f32 %v6993_v13, %v797_v63  ;;  %v767_v62 = vmul.f32 %v6965_v56, %v715_v23  ;;  %v735_v23 = vpop.permute.xlu0 %734 }
 0x1a0   :  { %v5973_v7 = vpop.f32.mrf.mxu0  ;;  %v772_v33 = vmul.f32 %v6965_v56, %v735_v23  ;;  %v194_v23 = vld [vmem:[#allocation5 + $0x150] sm:$0xff] }
 0x1a1   :  { %v867_v6 = vmax.f32 %v835_v46, 0.0  ;;  %v799_v9 = vadd.f32 %v767_v62, %v603_v3  ;;  %v988_v10 = vadd.f32 %v5973_v7, %v7194_v39  ;;  %v203_v62 = vld [vmem:[#allocation5 + $0x198] sm:$0xff] }
 0x1a2   :  { %v979_v16 = vpop.f32.mrf.mxu0  ;;  %v719_v37 = vpop.permute.xlu1 %718  ;;  %v207_v7 = vld [vmem:[#allocation5 + $0x1b8] sm:$0xff] }
 0x1a3   :  { %v768_v18 = vmul.f32 %v6965_v56, %v719_v37  ;;  %v887_v31 = vpack.c.bf16 %v868_v11, %v867_v6  ;;  %v837_v15 = vadd.f32 %v6993_v13, %v799_v9  ;;  %v980_v53 = vadd.f32 %v7194_v39, %v979_v16 }
 0x1a4   :  { %v5974_v14 = vpop.f32.mrf.mxu0  ;;  %v1108_v41 = vmax.f32 %v988_v10, 0.0  ;;  %v5565_v6 = vcombine.low %v203_v62, %v207_v7  ;;  %v5566_v9 = vcombine.high %v203_v62, %v207_v7 }
 0x1a5   :  { %v800_v42 = vadd.f32 %v768_v18, %v604_v49  ;;  %5995 = vmatprep.mubr.bf16.mxu1 %v887_v31  ;;  %v869_v22 = vmax.f32 %v837_v15, 0.0  ;;  %v1106_v61 = vmax.f32 %v980_v53, 0.0  ;;  %v991_v27 = vadd.f32 %v5974_v14, %v7194_v39 }
 0x1a6   :  { %v982_v17 = vpop.f32.mrf.mxu0  ;;  %v575_v49 = vmul.f32 %v6961_v54, %v535_v40 }
 0x1a7   :  { %v838_v19 = vadd.f32 %v6993_v13, %v800_v42  ;;  %v983_v20 = vadd.f32 %v7194_v39, %v982_v17  ;;  %v365_v21 = vpop.permute.xlu1 %364  ;;  %v1109_v12 = vmax.f32 %v991_v27, 0.0 }
 0x1a8   :  { %v410_v28 = vmul.f32 %v6968_v57, %v365_v21 }
 0x1a9   :  { %v870_v26 = vmax.f32 %v838_v19, 0.0  ;;  %v1107_v25 = vmax.f32 %v983_v20, 0.0  ;;  %v7212_v30 = vpack.c.bf16 %v1109_v12, %v1108_v41 }
 0x1aa   :  { %v606_v11 = vadd.f32 %v574_v5, %v410_v28  ;;  %v198_v5 = vld [vmem:[#allocation5 + $0x170] sm:$0xff]  ;;  %v187_v28 = vld [vmem:[#allocation5 + $0x118] sm:$0xff] }
 0x1ab   :  { %v7201_v2 = vpack.c.bf16 %v1107_v25, %v1106_v61  ;;  %v888_v35 = vpack.c.bf16 %v870_v26, %v869_v22 }
 0x1ac   :  { %v527_v36 = vpop.permute.xlu1 %526 }
 0x1ad   :  { %5996 = vmatmul.mubr.bf16.gmra.mxu1 %v888_v35  ;;  %1741 = vmatmul.mubr.bf16.vlgmr.msra.gmra.mxu0 %v7201_v2  ;;  %v573_v55 = vmul.f32 %v6961_v54, %v527_v36 }
 0x1ae   :  { %1750 = vmatprep.mubr.bf16.mxu0 %v6693_v8  ;;  %2095 = vmatpush1.bf16.msra.mxu0 %v5573_v50  ;;  %v195_v50 = vld [vmem:[#allocation5 + $0x158] sm:$0xff] }
 0x1af   :  { %v605_v60 = vadd.f32 %v573_v55, %v409_v59  ;;  %2096 = vmatprep.subr.bf16.mxu0 %v5566_v9  ;;  %v5557_v59 = vcombine.low %v195_v50, %v199_v47  ;;  %v5555_v9 = vcombine.low %v194_v23, %v198_v5 }
 0x1b1   :  { %v370_v45 = vpop.permute.xlu1 %369  ;;  %v801_v29 = vadd.f32 %v769_v1, %v605_v60  ;;  %v5558_v60 = vcombine.high %v195_v50, %v199_v47  ;;  %v166_v50 = vld [vmem:[#allocation5 + $0x70] sm:$0xff]  ;;  %v163_v47 = vld [vmem:[#allocation5 + $0x58] sm:$0xff] }
 0x1b2   :  { %v411_v18 = vmul.f32 %v6968_v57, %v370_v45  ;;  %2097 = vmatpush1.bf16.msra.mxu0 %v5565_v6  ;;  %v190_v6 = vld [vmem:[#allocation5 + $0x130] sm:$0xff] }
 0x1b3   :  { %v839_v31 = vadd.f32 %v6993_v13, %v801_v29  ;;  %2098 = vmatprep.subr.bf16.mxu0 %v5558_v60 }
 0x1b4   :  { %v607_v20 = vadd.f32 %v575_v49, %v411_v18  ;;  %v183_v49 = vld [vmem:[#allocation5 + $0xf8] sm:$0xff] }
 0x1b5   :  { %1751 = vmatmul.mubr.bf16.gmra.mxu0 %v7212_v30  ;;  %v375_v43 = vpop.permute.xlu1 %374  ;;  %v871_v61 = vmax.f32 %v839_v31, 0.0 }
 0x1b6   :  { %1760 = vmatprep.mubr.bf16.mxu0 %v6693_v8  ;;  %v412_v46 = vmul.f32 %v6968_v57, %v375_v43  ;;  %v202_v43 = vld [vmem:[#allocation5 + $0x190] sm:$0xff]  ;;  %2099 = vmatpush1.bf16.msra.mxu0 %v5557_v59 }
 0x1b7   :  { %v5563_v29 = vcombine.low %v202_v43, %v206_v58 }
 0x1ba   :  { %v539_v63 = vpop.permute.xlu1 %538 }
 0x1bb   :  { %v576_v3 = vmul.f32 %v6961_v54, %v539_v63  ;;  %v5571_v63 = vcombine.low %v7203_v38, %v7205_v32  ;;  %v5556_v38 = vcombine.high %v194_v23, %v198_v5  ;;  %v186_v32 = vld [vmem:[#allocation5 + $0x110] sm:$0xff] }
 0x1bc   :  { %v5547_v31 = vcombine.low %v186_v32, %v190_v6 }
 0x1bd   :  { %v608_v16 = vadd.f32 %v576_v3, %v412_v46  ;;  %v5564_v3 = vcombine.high %v202_v43, %v206_v58  ;;  %v191_v46 = vld [vmem:[#allocation5 + $0x138] sm:$0xff] }
 0x1be   :  { %v5549_v62 = vcombine.low %v187_v28, %v191_v46  ;;  %v5550_v7 = vcombine.high %v187_v28, %v191_v46 }
 0x1bf   :  { %v727_v37 = vpop.permute.xlu1 %726  ;;  %v804_v53 = vadd.f32 %v772_v33, %v608_v16  ;;  %v5548_v16 = vcombine.high %v186_v32, %v190_v6  ;;  %v179_v33 = vld [vmem:[#allocation5 + $0xd8] sm:$0xff] }
 0x1c0   :  { %v770_v14 = vmul.f32 %v6965_v56, %v727_v37  ;;  %2100 = vmatprep.subr.bf16.mxu0 %v5550_v7  ;;  %v178_v37 = vld [vmem:[#allocation5 + $0xd0] sm:$0xff]  ;;  %v5541_v18 = vcombine.low %v179_v33, %v183_v49 }
 0x1c1   :  { %v5977_v15 = vpop.f32.mrf.mxu0  ;;  %v842_v54 = vadd.f32 %v6993_v13, %v804_v53  ;;  %2101 = vmatpush1.bf16.msra.mxu0 %v5549_v62 }
 0x1c2   :  { %v802_v42 = vadd.f32 %v770_v14, %v606_v11  ;;  %v1004_v45 = vadd.f32 %v5977_v15, %v7194_v39  ;;  %v182_v11 = vld [vmem:[#allocation5 + $0xf0] sm:$0xff]  ;;  %v5542_v14 = vcombine.high %v179_v33, %v183_v49  ;;  %v155_v49 = vld [vmem:[#allocation5 + $0x18] sm:$0xff] }
 0x1c3   :  { %v995_v17 = vpop.f32.mrf.mxu0  ;;  %v731_v19 = vpop.permute.xlu1 %730  ;;  %v874_v0 = vmax.f32 %v842_v54, 0.0  ;;  %v5540_v53 = vcombine.high %v178_v37, %v182_v11  ;;  %v158_v33 = vld [vmem:[#allocation5 + $0x30] sm:$0xff] }
 0x1c4   :  { %v840_v21 = vadd.f32 %v6993_v13, %v802_v42  ;;  %v771_v22 = vmul.f32 %v6965_v56, %v731_v19  ;;  %v996_v25 = vadd.f32 %v7194_v39, %v995_v17  ;;  %v1112_v55 = vmax.f32 %v1004_v45, 0.0  ;;  %2102 = vmatprep.subr.bf16.mxu0 %v5542_v14 }
 0x1c5   :  { %v5978_v26 = vpop.f32.mrf.mxu0  ;;  %2103 = vmatpush1.bf16.msra.mxu0 %v5541_v18  ;;  %v5539_v17 = vcombine.low %v178_v37, %v182_v11  ;;  %v159_v18 = vld [vmem:[#allocation5 + $0x38] sm:$0xff] }
 0x1c6   :  { %v872_v57 = vmax.f32 %v840_v21, 0.0  ;;  %v803_v24 = vadd.f32 %v771_v22, %v607_v20  ;;  %v1110_v12 = vmax.f32 %v996_v25, 0.0  ;;  %v1007_v56 = vadd.f32 %v5978_v26, %v7194_v39 }
 0x1c7   :  { %v998_v27 = vpop.f32.mrf.mxu0  ;;  %v5517_v14 = vcombine.low %v155_v49, %v159_v18 }
 0x1c8   :  { %v841_v35 = vadd.f32 %v6993_v13, %v803_v24  ;;  %v999_v36 = vadd.f32 %v7194_v39, %v998_v27  ;;  %v889_v10 = vpack.c.bf16 %v872_v57, %v871_v61  ;;  %v1113_v13 = vmax.f32 %v1007_v56, 0.0  ;;  %v175_v56 = vld [vmem:[#allocation5 + $0xb8] sm:$0xff] }
 0x1ca   :  { %v873_v40 = vmax.f32 %v841_v35, 0.0  ;;  %v1111_v4 = vmax.f32 %v999_v36, 0.0  ;;  %5999 = vmatprep.mubr.bf16.mxu1 %v889_v10  ;;  %v7242_v1 = vpack.c.bf16 %v1113_v13, %v1112_v55  ;;  %v170_v36 = vld [vmem:[#allocation5 + $0x90] sm:$0xff]  ;;  %v167_v55 = vld [vmem:[#allocation5 + $0x78] sm:$0xff] }
 0x1cb   :  { %v174_v10 = vld [vmem:[#allocation5 + $0xb0] sm:$0xff]  ;;  %v5526_v60 = vcombine.high %v163_v47, %v167_v55 }
 0x1cc   :  { %v7236_v34 = vpack.c.bf16 %v1111_v4, %v1110_v12  ;;  %v890_v41 = vpack.c.bf16 %v874_v0, %v873_v40  ;;  %v5531_v0 = vcombine.low %v170_v36, %v174_v10  ;;  %v5532_v12 = vcombine.high %v170_v36, %v174_v10  ;;  %v171_v4 = vld [vmem:[#allocation5 + $0x98] sm:$0xff] }
 0x1cd   :  { %v5533_v45 = vcombine.low %v171_v4, %v175_v56  ;;  %v5534_v13 = vcombine.high %v171_v4, %v175_v56 }
 0x1ce   :  { %6000 = vmatmul.mubr.bf16.gmra.mxu1 %v890_v41  ;;  %1761 = vmatmul.mubr.bf16.gmra.mxu0 %v7236_v34  ;;  %v162_v41 = vld [vmem:[#allocation5 + $0x50] sm:$0xff] }
 0x1cf   :  { %1547 = vmatprep.mubr.bf16.mxu1 %v6693_v8  ;;  %1770 = vmatprep.mubr.bf16.mxu0 %v6693_v8  ;;  %v5523_v58 = vcombine.low %v162_v41, %v166_v50  ;;  %v5524_v59 = vcombine.high %v162_v41, %v166_v50 }
 0x1d0   :  { %2104 = vmatprep.subr.bf16.mxu0 %v5534_v13 }
 0x1d1   :  { %2105 = vmatpush1.bf16.msra.mxu0 %v5533_v45 }
 0x1d2   :  { %2106 = vmatprep.subr.bf16.mxu0 %v5526_v60 }
 0x1d6   :  { %1548 = vmatmul.mubr.bf16.vlgmr.msra.gmra.mxu1 %v7201_v2  ;;  %1771 = vmatmul.mubr.bf16.gmra.mxu0 %v7242_v1 }
 0x1d7   :  { %1557 = vmatprep.mubr.bf16.mxu1 %v6693_v8  ;;  %1780 = vmatprep.mubr.bf16.mxu0 %v6693_v8 }
 0x1d8   :  { %1902 = vmatpush1.bf16.msra.mxu1 %v5571_v63 }
 0x1d9   :  { %1903 = vmatprep.subr.bf16.mxu1 %v5564_v3  ;;  %v5525_v3 = vcombine.low %v163_v47, %v167_v55 }
 0x1db   :  { %2107 = vmatpush1.bf16.msra.mxu0 %v5525_v3 }
 0x1dc   :  { %1904 = vmatpush1.bf16.msra.mxu1 %v5563_v29 }
 0x1dd   :  { %1905 = vmatprep.subr.bf16.mxu1 %v5556_v38 }
 0x1de   :  { %1558 = vmatmul.mubr.bf16.gmra.mxu1 %v7212_v30 }
 0x1df   :  { %1567 = vmatprep.mubr.bf16.mxu1 %v6693_v8 }
 0x1e0   :  { %1906 = vmatpush1.bf16.msra.mxu1 %v5555_v9 }
 0x1e1   :  { %v5981_v15 = vpop.f32.mrf.mxu0  ;;  %1907 = vmatprep.subr.bf16.mxu1 %v5548_v16  ;;  %v154_v16 = vld [vmem:[#allocation5 + $0x10] sm:$0xff] }
 0x1e2   :  { %v1020_v25 = vadd.f32 %v5981_v15, %v7194_v39  ;;  %v5515_v37 = vcombine.low %v154_v16, %v158_v33  ;;  %v5516_v11 = vcombine.high %v154_v16, %v158_v33 }
 0x1e3   :  { %v1011_v42 = vpop.f32.mrf.mxu0 }
 0x1e4   :  { %1908 = vmatpush1.bf16.msra.mxu1 %v5547_v31  ;;  %v1012_v20 = vadd.f32 %v7194_v39, %v1011_v42  ;;  %v1116_v27 = vmax.f32 %v1020_v25, 0.0  ;;  %v5518_v31 = vcombine.high %v155_v49, %v159_v18 }
 0x1e5   :  { %v5982_v19 = vpop.f32.mrf.mxu0  ;;  %1909 = vmatprep.subr.bf16.mxu1 %v5540_v53 }
 0x1e6   :  { %1568 = vmatmul.mubr.bf16.gmra.mxu1 %v7236_v34  ;;  %v1114_v61 = vmax.f32 %v1012_v20, 0.0  ;;  %v1023_v54 = vadd.f32 %v5982_v19, %v7194_v39  ;;  %2108 = vmatprep.subr.bf16.mxu0 %v5518_v31 }
 0x1e7   :  { %v1014_v21 = vpop.f32.mrf.mxu0  ;;  %1577 = vmatprep.mubr.bf16.mxu1 %v6693_v8  ;;  %2109 = vmatpush1.bf16.msra.mxu0 %v5517_v14 }
 0x1e8   :  { %v1015_v22 = vadd.f32 %v7194_v39, %v1014_v21  ;;  %1910 = vmatpush1.bf16.msra.mxu1 %v5539_v17  ;;  %v1117_v24 = vmax.f32 %v1023_v54, 0.0 }
 0x1e9   :  { %1911 = vmatprep.subr.bf16.mxu1 %v5532_v12 }
 0x1ea   :  { %v1115_v26 = vmax.f32 %v1015_v22, 0.0  ;;  %v7264_v35 = vpack.c.bf16 %v1117_v24, %v1116_v27 }
 0x1ec   :  { %v7257_v57 = vpack.c.bf16 %v1115_v26, %v1114_v61  ;;  %1912 = vmatpush1.bf16.msra.mxu1 %v5531_v0 }
 0x1ed   :  { %1913 = vmatprep.subr.bf16.mxu1 %v5524_v59 }
 0x1ee   :  { %1578 = vmatmul.mubr.bf16.gmra.mxu1 %v7242_v1  ;;  %1781 = vmatmul.mubr.bf16.gmra.mxu0 %v7257_v57 }
 0x1ef   :  { %1587 = vmatprep.mubr.bf16.mxu1 %v6693_v8  ;;  %1790 = vmatprep.mubr.bf16.mxu0 %v6693_v8 }
 0x1f0   :  { %1914 = vmatpush1.bf16.msra.mxu1 %v5523_v58  ;;  %v7323_v58 = vld [vmem:[%s8322_s6] sm:$0xff] }
 0x1f1   :  { %1915 = vmatprep.subr.bf16.mxu1 %v5516_v11  ;;  %v7327_v59 = vrot.slane %v7323_v58, %v6952_v51 }
 0x1f4   :  { %1916 = vmatpush1.bf16.msra.mxu1 %v5515_v37 }
 0x1f6   :  { %1588 = vmatmul.mubr.bf16.gmra.mxu1 %v7257_v57  ;;  %1791 = vmatmul.mubr.bf16.gmra.mxu0 %v7264_v35 }
 0x1f7   :  { %1597 = vmatprep.mubr.bf16.mxu1 %v6693_v8  ;;  %1800 = vmatprep.mubr.bf16.mxu0 %v6693_v8 }
 0x1fe   :  { %1598 = vmatmul.mubr.bf16.gmra.mxu1 %v7264_v35 }
 0x1ff   :  { %1607 = vmatprep.mubr.bf16.mxu1 %v6693_v8 }
 0x202   :  { %v5985_v40 = vpop.f32.mrf.mxu0 }
 0x203   :  { %v1036_v38 = vadd.f32 %v5985_v40, %v7194_v39 }
 0x204   :  { %v1027_v43 = vpop.f32.mrf.mxu0 }
 0x205   :  { %v1028_v23 = vadd.f32 %v7194_v39, %v1027_v43  ;;  %v1120_v6 = vmax.f32 %v1036_v38, 0.0 }
 0x206   :  { %v5986_v63 = vpop.f32.mrf.mxu0 }
 0x207   :  { %v1118_v46 = vmax.f32 %v1028_v23, 0.0  ;;  %v1039_v7 = vadd.f32 %v5986_v63, %v7194_v39 }
 0x208   :  { %v1030_v5 = vpop.f32.mrf.mxu0 }
 0x209   :  { %v1031_v28 = vadd.f32 %v7194_v39, %v1030_v5  ;;  %v1121_v32 = vmax.f32 %v1039_v7, 0.0  ;;  %v8330_v7 = vsub.s32 3, %v6926_v44 }
 0x20b   :  { %v1119_v62 = vmax.f32 %v1031_v28, 0.0  ;;  %v7282_v9 = vpack.c.bf16 %v1121_v32, %v1120_v6  ;;  %v7337_v18 = vrot.slane %v7323_v58, %v8330_v7 }
 0x20d   :  { %v7275_v29 = vpack.c.bf16 %v1119_v62, %v1118_v46 }
 0x20f   :  { %1608 = vmatmul.mubr.bf16.gmra.mxu1 %v7275_v29  ;;  %1801 = vmatmul.mubr.bf16.gmra.mxu0 %v7275_v29 }
 0x210   :  { %1617 = vmatprep.mubr.bf16.mxu1 %v6693_v8  ;;  %1810 = vmatprep.mubr.bf16.mxu0 %v6693_v8 }
 0x217   :  { %1618 = vmatmul.mubr.bf16.gmra.mxu1 %v7282_v9  ;;  %1811 = vmatmul.mubr.bf16.gmra.mxu0 %v7282_v9 }
 0x218   :  { %1627 = vmatprep.mubr.bf16.mxu1 %v6693_v8  ;;  %1820 = vmatprep.mubr.bf16.mxu0 %v6693_v8 }
 0x227   :  { %v5989_v15 = vpop.f32.mrf.mxu1 }
 0x228   :  { %v1052_v54 = vadd.f32 %v5989_v15, %v7194_v39 }
 0x229   :  { %v1043_v53 = vpop.f32.mrf.mxu1 }
 0x22a   :  { %v1044_v17 = vadd.f32 %v7194_v39, %v1043_v53  ;;  %v1124_v24 = vmax.f32 %v1052_v54, 0.0 }
 0x22b   :  { %v5990_v42 = vpop.f32.mrf.mxu1 }
 0x22c   :  { %v1122_v21 = vmax.f32 %v1044_v17, 0.0  ;;  %v1055_v61 = vadd.f32 %v5990_v42, %v7194_v39 }
 0x22d   :  { %v1046_v19 = vpop.f32.mrf.mxu1 }
 0x22e   :  { %v1047_v20 = vadd.f32 %v7194_v39, %v1046_v19  ;;  %v1125_v25 = vmax.f32 %v1055_v61, 0.0 }
 0x230   :  { %v1123_v22 = vmax.f32 %v1047_v20, 0.0  ;;  %v7298_v27 = vpack.c.bf16 %v1125_v25, %v1124_v24 }
 0x232   :  { %v7291_v26 = vpack.c.bf16 %v1123_v22, %v1122_v21 }
 0x234   :  { %1628 = vmatmul.mubr.bf16.gmra.mxu1 %v7291_v26  ;;  %1821 = vmatmul.mubr.bf16.gmra.mxu0 %v7291_v26 }
 0x235   :  { %1637 = vmatprep.mubr.bf16.mxu1 %v6693_v8  ;;  %1830 = vmatprep.mubr.bf16.mxu0 %v6693_v8 }
 0x23c   :  { %1638 = vmatmul.mubr.bf16.gmra.mxu1 %v7298_v27  ;;  %1831 = vmatmul.mubr.bf16.gmra.mxu0 %v7298_v27 }
 0x23d   :  { %1647 = vmatprep.mubr.bf16.mxu1 %v6693_v8  ;;  %1840 = vmatprep.mubr.bf16.mxu0 %v6693_v8 }
 0x248   :  { %v5993_v36 = vpop.f32.mrf.mxu1 }
 0x249   :  { %v1068_v50 = vadd.f32 %v5993_v36, %v7194_v39 }
 0x24a   :  { %v1059_v10 = vpop.f32.mrf.mxu1 }
 0x24b   :  { %v1060_v12 = vadd.f32 %v7194_v39, %v1059_v10  ;;  %v1128_v55 = vmax.f32 %v1068_v50, 0.0 }
 0x24c   :  { %v5994_v0 = vpop.f32.mrf.mxu1 }
 0x24d   :  { %v1126_v56 = vmax.f32 %v1060_v12, 0.0  ;;  %v1071_v45 = vadd.f32 %v5994_v0, %v7194_v39 }
 0x24e   :  { %v1062_v40 = vpop.f32.mrf.mxu1 }
 0x24f   :  { %v1063_v4 = vadd.f32 %v7194_v39, %v1062_v40  ;;  %v1129_v47 = vmax.f32 %v1071_v45, 0.0 }
 0x251   :  { %v1127_v41 = vmax.f32 %v1063_v4, 0.0  ;;  %v7314_v43 = vpack.c.bf16 %v1129_v47, %v1128_v55 }
 0x253   :  { %v7307_v13 = vpack.c.bf16 %v1127_v41, %v1126_v56 }
 0x255   :  { %1648 = vmatmul.mubr.bf16.gmra.mxu1 %v7307_v13  ;;  %1841 = vmatmul.mubr.bf16.gmra.mxu0 %v7307_v13 }
 0x256   :  { %1657 = vmatprep.mubr.bf16.mxu1 %v6693_v8  ;;  %1850 = vmatprep.mubr.bf16.mxu0 %v6693_v8 }
 0x25d   :  { %1658 = vmatmul.mubr.bf16.gmra.mxu1 %v7314_v43  ;;  %1851 = vmatmul.mubr.bf16.gmra.mxu0 %v7314_v43 }
 0x25e   :  { %1667 = vmatprep.mubr.bf16.mxu1 %v6693_v8  ;;  %1860 = vmatprep.mubr.bf16.mxu0 %v6693_v8 }
 0x26d   :  { %v5997_v60 = vpop.f32.mrf.mxu1  ;;  %v1742_v63 = vpop.f32.mrf.mxu0 }
 0x26e   :  { %v1743_v5 = vadd.f32 %v1742_v63, %v7327_v59  ;;  %v1084_v20 = vadd.f32 %v5997_v60, %v7194_v39 }
 0x26f   :  { %v1075_v3 = vpop.f32.mrf.mxu1  ;;  %v1744_v23 = vpop.f32.mrf.mxu0 }
 0x270   :  { %v1076_v62 = vadd.f32 %v7194_v39, %v1075_v3  ;;  %v2289_v16 = vmax.f32 %v1743_v5, 0.0  ;;  %v1745_v22 = vadd.f32 %v1744_v23, %v7337_v18  ;;  %v1132_v40 = vmax.f32 %v1084_v20, 0.0 }
 0x271   :  { %v5998_v28 = vpop.f32.mrf.mxu1  ;;  %v1746_v46 = vpop.f32.mrf.mxu0 }
 0x272   :  { %v1747_v38 = vadd.f32 %v1746_v46, %v7327_v59  ;;  %v1130_v49 = vmax.f32 %v1076_v62, 0.0  ;;  %v1087_v15 = vadd.f32 %v5998_v28, %v7194_v39  ;;  %v2290_v4 = vmax.f32 %v1745_v22, 0.0 }
 0x273   :  { %v1078_v32 = vpop.f32.mrf.mxu1  ;;  %v1748_v6 = vpop.f32.mrf.mxu0 }
 0x274   :  { %v2297_v33 = vmax.f32 %v1747_v38, 0.0  ;;  %v1079_v37 = vadd.f32 %v7194_v39, %v1078_v32  ;;  %v1749_v17 = vadd.f32 %v1748_v6, %v7337_v18  ;;  %v1133_v25 = vmax.f32 %v1087_v15, 0.0 }
 0x275   :  { %v1752_v11 = vpop.f32.mrf.mxu0 }
 0x276   :  { %v7339_v14 = vpack.c.bf16 %v2297_v33, %v2289_v16  ;;  %v1131_v31 = vmax.f32 %v1079_v37, 0.0  ;;  %v1753_v19 = vadd.f32 %v1752_v11, %v7327_v59  ;;  %v2298_v36 = vmax.f32 %v1749_v17, 0.0 }
 0x277   :  { %v1754_v53 = vpop.f32.mrf.mxu0  ;;  %v7355_v50 = vpack.c.bf16 %v1133_v25, %v1132_v40  ;;  %v7368_v11 = vrot.slane %v7323_v58, %v6955_v52 }
 0x278   :  { %v7342_v42 = vpack.c.bf16 %v1131_v31, %v1130_v49  ;;  %v1755_v61 = vadd.f32 %v1754_v53, %v7337_v18  ;;  %v2305_v10 = vmax.f32 %v1753_v19, 0.0  ;;  %v2546_v47 = vpack.c.bf16 %v2298_v36, %v2290_v4 }
 0x279   :  { %v1756_v21 = vpop.f32.mrf.mxu0 }
 0x27a   :  { %v1757_v54 = vadd.f32 %v1756_v21, %v7327_v59  ;;  %1668 = vmatmul.mubr.bf16.gmra.mxu1 %v7342_v42  ;;  %1861 = vmatmul.mubr.bf16.gmra.mxu0 %v7342_v42  ;;  %v2306_v56 = vmax.f32 %v1755_v61, 0.0 }
 0x27b   :  { %v1758_v24 = vpop.f32.mrf.mxu0  ;;  %1677 = vmatprep.mubr.bf16.mxu1 %v6693_v8  ;;  %1870 = vmatprep.mubr.bf16.mxu0 %v6693_v8 }
 0x27c   :  { %v2313_v0 = vmax.f32 %v1757_v54, 0.0  ;;  %v1759_v12 = vadd.f32 %v1758_v24, %v7337_v18 }
 0x27e   :  { %v2553_v41 = vpack.c.bf16 %v2313_v0, %v2305_v10  ;;  %v2314_v45 = vmax.f32 %v1759_v12, 0.0 }
 0x280   :  { %v2705_v55 = vmax.bf16 %v2553_v41, %v7339_v14  ;;  %v2554_v60 = vpack.c.bf16 %v2314_v45, %v2306_v56 }
 0x282   :  { %v2722_v63 = vmax.bf16 %v2554_v60, %v2546_v47  ;;  %1678 = vmatmul.mubr.bf16.gmra.mxu1 %v7355_v50  ;;  %1871 = vmatmul.mubr.bf16.gmra.mxu0 %v7355_v50 }
 0x283   :  { %1687 = vmatprep.mubr.bf16.mxu1 %v6693_v8  ;;  %1880 = vmatprep.mubr.bf16.mxu0 %v6693_v8 }
 0x28e   :  { %v6001_v3 = vpop.f32.mrf.mxu1  ;;  %v1762_v23 = vpop.f32.mrf.mxu0 }
 0x28f   :  { %v1763_v46 = vadd.f32 %v1762_v23, %v7327_v59  ;;  %v1100_v4 = vadd.f32 %v6001_v3, %v7194_v39 }
 0x290   :  { %v1091_v5 = vpop.f32.mrf.mxu1  ;;  %v1764_v28 = vpop.f32.mrf.mxu0 }
 0x291   :  { %v1092_v62 = vadd.f32 %v7194_v39, %v1091_v5  ;;  %v1765_v6 = vadd.f32 %v1764_v28, %v7337_v18  ;;  %v2321_v49 = vmax.f32 %v1763_v46, 0.0 }
 0x292   :  { %v6002_v38 = vpop.f32.mrf.mxu1  ;;  %v1766_v32 = vpop.f32.mrf.mxu0 }
 0x293   :  { %v1767_v16 = vadd.f32 %v1766_v32, %v7327_v59  ;;  %v1134_v53 = vmax.f32 %v1092_v62, 0.0  ;;  %v2322_v20 = vmax.f32 %v1765_v6, 0.0  ;;  %v1103_v54 = vadd.f32 %v6002_v38, %v7194_v39 }
 0x294   :  { %v1094_v33 = vpop.f32.mrf.mxu1  ;;  %v1768_v37 = vpop.f32.mrf.mxu0  ;;  %v1136_v38 = vmax.f32 %v1100_v4, 0.0  ;;  %v7392_v32 = vrot.slane %v7323_v58, %v6939_v48 }
 0x295   :  { %v2329_v14 = vmax.f32 %v1767_v16, 0.0  ;;  %v1095_v31 = vadd.f32 %v7194_v39, %v1094_v33  ;;  %v1769_v15 = vadd.f32 %v1768_v37, %v7337_v18 }
 0x296   :  { %v1549_v17 = vpop.f32.mrf.mxu1  ;;  %v1772_v19 = vpop.f32.mrf.mxu0 }
 0x297   :  { %v2561_v21 = vpack.c.bf16 %v2329_v14, %v2321_v49  ;;  %v1135_v22 = vmax.f32 %v1095_v31, 0.0  ;;  %v2330_v61 = vmax.f32 %v1769_v15, 0.0  ;;  %v1550_v25 = vadd.f32 %v1549_v17, %v7368_v11 }
 0x298   :  { %v1551_v24 = vpop.f32.mrf.mxu1  ;;  %v1774_v36 = vpop.f32.mrf.mxu0  ;;  %v1773_v40 = vadd.f32 %v1772_v19, %v7327_v59 }
 0x299   :  { %v7374_v10 = vmax.bf16 %v2705_v55, %v2561_v21  ;;  %v7376_v0 = vpack.c.bf16 %v1135_v22, %v1134_v53  ;;  %v2562_v12 = vpack.c.bf16 %v2330_v61, %v2322_v20  ;;  %v1775_v56 = vadd.f32 %v1774_v36, %v7337_v18 }
 0x29a   :  { %v1553_v41 = vpop.f32.mrf.mxu1  ;;  %v1776_v45 = vpop.f32.mrf.mxu0  ;;  %v1137_v55 = vmax.f32 %v1103_v54, 0.0  ;;  %v2287_v5 = vmax.f32 %v1550_v25, 0.0  ;;  %v2337_v39 = vmax.f32 %v1773_v40, 0.0  ;;  %v1552_v58 = vadd.f32 %v1551_v24, %v7392_v32 }
 0x29b   :  { %v7381_v47 = vmax.bf16 %v2722_v63, %v2562_v12  ;;  %v1554_v60 = vadd.f32 %v1553_v41, %v7368_v11  ;;  %v1777_v23 = vadd.f32 %v1776_v45, %v7327_v59  ;;  %1688 = vmatmul.mubr.bf16.gmra.mxu1 %v7376_v0  ;;  %1881 = vmatmul.mubr.bf16.gmra.mxu0 %v7376_v0  ;;  %v2338_v16 = vmax.f32 %v1775_v56, 0.0 }
 0x29c   :  { %v1555_v28 = vpop.f32.mrf.mxu1  ;;  %v1778_v46 = vpop.f32.mrf.mxu0  ;;  %1697 = vmatprep.mubr.bf16.mxu1 %v6693_v8  ;;  %1890 = vmatprep.mubr.bf16.mxu0 %v6693_v8  ;;  %v7396_v14 = vpack.c.bf16 %v1137_v55, %v1136_v38  ;;  %v2288_v4 = vmax.f32 %v1552_v58, 0.0 }
 0x29d   :  { %v2295_v3 = vmax.f32 %v1554_v60, 0.0  ;;  %v2345_v63 = vmax.f32 %v1777_v23, 0.0  ;;  %v1779_v62 = vadd.f32 %v1778_v46, %v7337_v18  ;;  %v1556_v53 = vadd.f32 %v1555_v28, %v7392_v32 }
 0x29e   :  { %v1559_v6 = vpop.f32.mrf.mxu1 }
 0x29f   :  { %v2543_v33 = vpack.c.bf16 %v2295_v3, %v2287_v5  ;;  %v7394_v37 = vpack.c.bf16 %v2345_v63, %v2337_v39  ;;  %v2346_v49 = vmax.f32 %v1779_v62, 0.0  ;;  %v1560_v19 = vadd.f32 %v1559_v6, %v7368_v11 }
 0x2a0   :  { %v1561_v31 = vpop.f32.mrf.mxu1  ;;  %v2296_v25 = vmax.f32 %v1556_v53, 0.0 }
 0x2a1   :  { %v2707_v15 = vmax.bf16 %v7374_v10, %v7394_v37  ;;  %v7401_v17 = vpack.c.bf16 %v2346_v49, %v2338_v16  ;;  %v1562_v22 = vadd.f32 %v1561_v31, %v7392_v32  ;;  %v2303_v36 = vmax.f32 %v1560_v19, 0.0 }
 0x2a2   :  { %v1563_v20 = vpop.f32.mrf.mxu1  ;;  %v2544_v23 = vpack.c.bf16 %v2296_v25, %v2288_v4 }
 0x2a3   :  { %v2724_v21 = vmax.bf16 %v7381_v47, %v7401_v17  ;;  %v1564_v61 = vadd.f32 %v1563_v20, %v7368_v11  ;;  %1698 = vmatmul.mubr.bf16.gmra.mxu1 %v7396_v14  ;;  %1891 = vmatmul.mubr.bf16.gmra.mxu0 %v7396_v14  ;;  %v2304_v56 = vmax.f32 %v1562_v22, 0.0 }
 0x2a4   :  { %v1565_v54 = vpop.f32.mrf.mxu1  ;;  %1933 = vmatprep.mubr.bf16.mxu1 %v6693_v8  ;;  %2126 = vmatprep.mubr.bf16.mxu0 %v6693_v8 }
 0x2a5   :  { %v2311_v24 = vmax.f32 %v1564_v61, 0.0  ;;  %v1566_v12 = vadd.f32 %v1565_v54, %v7392_v32 }
 0x2a6   :  { %v1569_v40 = vpop.f32.mrf.mxu1 }
 0x2a7   :  { %v2551_v41 = vpack.c.bf16 %v2311_v24, %v2303_v36  ;;  %v2312_v45 = vmax.f32 %v1566_v12, 0.0  ;;  %v1570_v28 = vadd.f32 %v1569_v40, %v7368_v11 }
 0x2a8   :  { %v1571_v60 = vpop.f32.mrf.mxu1 }
 0x2a9   :  { %v2671_v55 = vmax.bf16 %v2551_v41, %v2543_v33  ;;  %v2552_v5 = vpack.c.bf16 %v2312_v45, %v2304_v56  ;;  %v1572_v3 = vadd.f32 %v1571_v60, %v7392_v32  ;;  %v2319_v38 = vmax.f32 %v1570_v28, 0.0 }
 0x2aa   :  { %v1573_v46 = vpop.f32.mrf.mxu1 }
 0x2ab   :  { %v2688_v39 = vmax.bf16 %v2552_v5, %v2544_v23  ;;  %v1574_v63 = vadd.f32 %v1573_v46, %v7368_v11  ;;  %1934 = vmatmul.mubr.bf16.vlgmr.msra.gmra.mxu1 %v7201_v2  ;;  %2127 = vmatmul.mubr.bf16.vlgmr.msra.gmra.mxu0 %v7201_v2  ;;  %v2320_v31 = vmax.f32 %v1572_v3, 0.0 }
 0x2ac   :  { %v1575_v62 = vpop.f32.mrf.mxu1  ;;  %1943 = vmatprep.mubr.bf16.mxu1 %v6693_v8  ;;  %2136 = vmatprep.mubr.bf16.mxu0 %v6693_v8 }
 0x2ad   :  { %v2327_v6 = vmax.f32 %v1574_v63, 0.0  ;;  %v1576_v16 = vadd.f32 %v1575_v62, %v7392_v32 }
 0x2ae   :  { %v1579_v33 = vpop.f32.mrf.mxu1  ;;  %v1782_v49 = vpop.f32.mrf.mxu0 }
 0x2af   :  { %v2559_v53 = vpack.c.bf16 %v2327_v6, %v2319_v38  ;;  %v2328_v19 = vmax.f32 %v1576_v16, 0.0  ;;  %v1580_v58 = vadd.f32 %v1579_v33, %v7368_v11  ;;  %v1783_v20 = vadd.f32 %v1782_v49, %v7327_v59 }
 0x2b0   :  { %v1581_v22 = vpop.f32.mrf.mxu1  ;;  %v1784_v2 = vpop.f32.mrf.mxu0 }
 0x2b1   :  { %v7424_v61 = vmax.bf16 %v2671_v55, %v2559_v53  ;;  %v2560_v54 = vpack.c.bf16 %v2328_v19, %v2320_v31  ;;  %v1582_v25 = vadd.f32 %v1581_v22, %v7392_v32  ;;  %v1785_v36 = vadd.f32 %v1784_v2, %v7337_v18 }
 0x2b2   :  { %v1583_v24 = vpop.f32.mrf.mxu1  ;;  %v1786_v12 = vpop.f32.mrf.mxu0  ;;  %v2335_v41 = vmax.f32 %v1580_v58, 0.0  ;;  %v2353_v45 = vmax.f32 %v1783_v20, 0.0 }
 0x2b3   :  { %v7428_v40 = vmax.bf16 %v2688_v39, %v2560_v54  ;;  %v1584_v4 = vadd.f32 %v1583_v24, %v7368_v11  ;;  %v1787_v56 = vadd.f32 %v1786_v12, %v7327_v59  ;;  %1944 = vmatmul.mubr.bf16.gmra.mxu1 %v7212_v30  ;;  %2137 = vmatmul.mubr.bf16.gmra.mxu0 %v7212_v30  ;;  %v2336_v39 = vmax.f32 %v1582_v25, 0.0 }
 0x2b4   :  { %v1585_v60 = vpop.f32.mrf.mxu1  ;;  %v1788_v23 = vpop.f32.mrf.mxu0  ;;  %1953 = vmatprep.mubr.bf16.mxu1 %v6693_v8  ;;  %2146 = vmatprep.mubr.bf16.mxu0 %v6693_v8  ;;  %v2354_v3 = vmax.f32 %v1785_v36, 0.0 }
 0x2b5   :  { %v2343_v55 = vmax.f32 %v1584_v4, 0.0  ;;  %v2361_v5 = vmax.f32 %v1787_v56, 0.0  ;;  %v1586_v28 = vadd.f32 %v1585_v60, %v7392_v32  ;;  %v1789_v46 = vadd.f32 %v1788_v23, %v7337_v18 }
 0x2b6   :  { %v1589_v63 = vpop.f32.mrf.mxu1  ;;  %v1792_v62 = vpop.f32.mrf.mxu0 }
 0x2b7   :  { %v2567_v38 = vpack.c.bf16 %v2343_v55, %v2335_v41  ;;  %v2577_v30 = vpack.c.bf16 %v2361_v5, %v2353_v45  ;;  %v2344_v6 = vmax.f32 %v1586_v28, 0.0  ;;  %v2362_v16 = vmax.f32 %v1789_v46, 0.0 }
 0x2b8   :  { %v1590_v33 = vadd.f32 %v1589_v63, %v7368_v11  ;;  %v1793_v49 = vadd.f32 %v1792_v62, %v7327_v59  ;;  %v1591_v31 = vpop.f32.mrf.mxu1  ;;  %v1794_v53 = vpop.f32.mrf.mxu0 }
 0x2b9   :  { %v2673_v19 = vmax.bf16 %v7424_v61, %v2567_v38  ;;  %v7444_v58 = vmax.bf16 %v2707_v15, %v2577_v30  ;;  %v2568_v20 = vpack.c.bf16 %v2344_v6, %v2336_v39  ;;  %v2578_v22 = vpack.c.bf16 %v2362_v16, %v2354_v3 }
 0x2ba   :  { %v1592_v2 = vadd.f32 %v1591_v31, %v7392_v32  ;;  %v1795_v54 = vadd.f32 %v1794_v53, %v7337_v18  ;;  %v1593_v25 = vpop.f32.mrf.mxu1  ;;  %v1796_v36 = vpop.f32.mrf.mxu0  ;;  %v2351_v37 = vmax.f32 %v1590_v33, 0.0  ;;  %v2369_v15 = vmax.f32 %v1793_v49, 0.0 }
 0x2bb   :  { %v2690_v24 = vmax.bf16 %v7428_v40, %v2568_v20  ;;  %v7452_v12 = vmax.bf16 %v2724_v21, %v2578_v22  ;;  %v1594_v61 = vadd.f32 %v1593_v25, %v7368_v11  ;;  %v1797_v10 = vadd.f32 %v1796_v36, %v7327_v59  ;;  %1954 = vmatmul.mubr.bf16.gmra.mxu1 %v7236_v34  ;;  %v6092_v36 = vld [vmem:[#allocation7 + $0xe4] ss:$16 sps:$4 sm:$0xff]  }
 0x2bc   :  { %2147 = vmatmul.mubr.bf16.gmra.mxu0 %v7236_v34  ;;  %v1595_v4 = vpop.f32.mrf.mxu1  ;;  %v1798_v56 = vpop.f32.mrf.mxu0  ;;  %1963 = vmatprep.mubr.bf16.mxu1 %v6693_v8  ;;  %v2352_v21 = vmax.f32 %v1592_v2, 0.0  ;;  %v2370_v45 = vmax.f32 %v1795_v54, 0.0 }
 0x2bd   :  { %v2359_v40 = vmax.f32 %v1594_v61, 0.0  ;;  %v2377_v41 = vmax.f32 %v1797_v10, 0.0  ;;  %v1596_v47 = vadd.f32 %v1595_v4, %v7392_v32  ;;  %v1799_v17 = vadd.f32 %v1798_v56, %v7337_v18  ;;  %2156 = vmatprep.mubr.bf16.mxu0 %v6693_v8  ;;  %4656 = vmatprep.subr.bf16.mxu1 %v6092_v36  ;;  %v6093_v10 = vld [vmem:[#allocation7 + $0x2e0] ss:$16 sps:$4 sm:$0xff]  }
 0x2be   :  { %v1599_v60 = vpop.f32.mrf.mxu1  ;;  %v6096_v4 = vld [vmem:[#allocation7 + $0xc0] ss:$16 sps:$4 sm:$0xff]  }
 0x2bf   :  { %v2575_v23 = vpack.c.bf16 %v2359_v40, %v2351_v37  ;;  %v7462_v55 = vpack.c.bf16 %v2377_v41, %v2369_v15  ;;  %v2360_v5 = vmax.f32 %v1596_v47, 0.0  ;;  %v2378_v34 = vmax.f32 %v1799_v17, 0.0  ;;  %v6098_v37 = vld [vmem:[#allocation7 + $0xc4] ss:$16 sps:$4 sm:$0xff]   ;;  %v6099_v41 = vld [vmem:[#allocation7 + $0x2c0] ss:$16 sps:$4 sm:$0xff]  }
 0x2c0   :  { %v1600_v28 = vadd.f32 %v1599_v60, %v7368_v11  ;;  %v1601_v46 = vpop.f32.mrf.mxu1  ;;  %v6101_v15 = vld [vmem:[#allocation7 + $0x2c4] ss:$16 sps:$4 sm:$0xff]  }
 0x2c1   :  { %v7465_v39 = vmax.bf16 %v2673_v19, %v2575_v23  ;;  %v2709_v3 = vmax.bf16 %v7444_v58, %v7462_v55  ;;  %v2576_v63 = vpack.c.bf16 %v2360_v5, %v2352_v21  ;;  %v7469_v62 = vpack.c.bf16 %v2378_v34, %v2370_v45  ;;  %v6104_v47 = vld [vmem:[#allocation7 + $0xa4] ss:$16 sps:$4 sm:$0xff]   ;;  %v6102_v23 = vld [vmem:[#allocation7 + $0xa0] ss:$16 sps:$4 sm:$0xff]  }
 0x2c2   :  { %v1603_v38 = vpop.f32.mrf.mxu1  ;;  %v1602_v16 = vadd.f32 %v1601_v46, %v7392_v32  ;;  %v2367_v31 = vmax.f32 %v1600_v28, 0.0  ;;  %v6107_v60 = vld [vmem:[#allocation7 + $0x2a4] ss:$16 sps:$4 sm:$0xff]  }
 0x2c3   :  { %v7471_v30 = vmax.bf16 %v2690_v24, %v2576_v63  ;;  %v2726_v6 = vmax.bf16 %v7452_v12, %v7469_v62  ;;  %v1604_v33 = vadd.f32 %v1603_v38, %v7368_v11  ;;  %1964 = vmatmul.mubr.bf16.gmra.mxu1 %v7242_v1  ;;  %v6095_v24 = vld [vmem:[#allocation7 + $0x2e4] ss:$16 sps:$4 sm:$0xff]   ;;  %v6105_v63 = vld [vmem:[#allocation7 + $0x2a0] ss:$16 sps:$4 sm:$0xff]  }
 0x2c4   :  { %2157 = vmatmul.mubr.bf16.gmra.mxu0 %v7242_v1  ;;  %v1605_v49 = vpop.f32.mrf.mxu1  ;;  %1973 = vmatprep.mubr.bf16.mxu1 %v6693_v8  ;;  %v2368_v20 = vmax.f32 %v1602_v16, 0.0  ;;  %v6090_v1 = vld [vmem:[#allocation7 + $0xe0] ss:$16 sps:$4 sm:$0xff]   ;;  %v6110_v38 = vld [vmem:[#allocation7 + $0x84] ss:$16 sps:$4 sm:$0xff]  }
 0x2c5   :  { %v2375_v53 = vmax.f32 %v1604_v33, 0.0  ;;  %v1606_v19 = vadd.f32 %v1605_v49, %v7392_v32  ;;  %2166 = vmatprep.mubr.bf16.mxu0 %v6693_v8  ;;  %4657 = vmatpush1.bf16.msra.mxu1 %v6090_v1  ;;  %v6113_v49 = vld [vmem:[#allocation7 + $0x284] ss:$16 sps:$4 sm:$0xff]  }
 0x2c6   :  { %4697 = vmatprep.subr.bf16.mxu0 %v6095_v24  ;;  %4658 = vmatprep.subr.bf16.mxu1 %v6098_v37 }
 0x2c7   :  { %v7482_v22 = vpack.c.bf16 %v2375_v53, %v2367_v31  ;;  %v2376_v2 = vmax.f32 %v1606_v19, 0.0  ;;  %4698 = vmatpush1.bf16.msra.mxu0 %v6093_v10  ;;  %v6108_v10 = vld [vmem:[#allocation7 + $0x80] ss:$16 sps:$4 sm:$0xff]  }
 0x2c8   :  { %4699 = vmatprep.subr.bf16.mxu0 %v6101_v15 }
 0x2c9   :  { %v2675_v54 = vmax.bf16 %v7465_v39, %v7482_v22  ;;  %v7486_v25 = vpack.c.bf16 %v2376_v2, %v2368_v20  ;;  %4659 = vmatpush1.bf16.msra.mxu1 %v6096_v4  ;;  %v6114_v39 = vld [vmem:[#allocation7 + $0x60] ss:$16 sps:$4 sm:$0xff]  }
 0x2ca   :  { %4660 = vmatprep.subr.bf16.mxu1 %v6104_v47  ;;  %v6117_v22 = vld [vmem:[#allocation7 + $0x260] ss:$16 sps:$4 sm:$0xff]  }
 0x2cb   :  { %v2692_v61 = vmax.bf16 %v7471_v30, %v7486_v25  ;;  %1974 = vmatmul.mubr.bf16.gmra.mxu1 %v7257_v57  ;;  %4700 = vmatpush1.bf16.msra.mxu0 %v6099_v41  ;;  %v6122_v30 = vld [vmem:[#allocation7 + $0x44] ss:$16 sps:$4 sm:$0xff]  }
 0x2cc   :  { %2167 = vmatmul.mubr.bf16.gmra.mxu0 %v7257_v57  ;;  %1983 = vmatprep.mubr.bf16.mxu1 %v6693_v8  ;;  %v6125_v25 = vld [vmem:[#allocation7 + $0x244] ss:$16 sps:$4 sm:$0xff]  }
 0x2cd   :  { %2176 = vmatprep.mubr.bf16.mxu0 %v6693_v8  ;;  %4701 = vmatprep.subr.bf16.mxu0 %v6107_v60 }
 0x2ce   :  { %4661 = vmatpush1.bf16.msra.mxu1 %v6102_v23 }
 0x2cf   :  { %v1609_v56 = vpop.f32.mrf.mxu1  ;;  %v1802_v40 = vpop.f32.mrf.mxu0  ;;  %4702 = vmatpush1.bf16.msra.mxu0 %v6105_v63  ;;  %4662 = vmatprep.subr.bf16.mxu1 %v6110_v38  ;;  %v6119_v63 = vld [vmem:[#allocation7 + $0x264] ss:$16 sps:$4 sm:$0xff]  }
 0x2d0   :  { %v1610_v17 = vadd.f32 %v1609_v56, %v7368_v11  ;;  %v1803_v57 = vadd.f32 %v1802_v40, %v7327_v59  ;;  %v6111_v56 = vld [vmem:[#allocation7 + $0x280] ss:$16 sps:$4 sm:$0xff]   ;;  %4703 = vmatprep.subr.bf16.mxu0 %v6113_v49 }
 0x2d1   :  { %v1611_v21 = vpop.f32.mrf.mxu1  ;;  %v1804_v45 = vpop.f32.mrf.mxu0 }
 0x2d2   :  { %v1612_v5 = vadd.f32 %v1611_v21, %v7392_v32  ;;  %v1805_v34 = vadd.f32 %v1804_v45, %v7337_v18  ;;  %v2383_v31 = vmax.f32 %v1610_v17, 0.0  ;;  %v2385_v53 = vmax.f32 %v1803_v57, 0.0  ;;  %4663 = vmatpush1.bf16.msra.mxu1 %v6108_v10 }
 0x2d3   :  { %v1613_v28 = vpop.f32.mrf.mxu1  ;;  %v1806_v46 = vpop.f32.mrf.mxu0  ;;  %1984 = vmatmul.mubr.bf16.gmra.mxu1 %v7264_v35  ;;  %4704 = vmatpush1.bf16.msra.mxu0 %v6111_v56 }
 0x2d4   :  { %v1614_v16 = vadd.f32 %v1613_v28, %v7368_v11  ;;  %v1807_v33 = vadd.f32 %v1806_v46, %v7327_v59  ;;  %2177 = vmatmul.mubr.bf16.gmra.mxu0 %v7264_v35  ;;  %1993 = vmatprep.mubr.bf16.mxu1 %v6693_v8  ;;  %v2384_v37 = vmax.f32 %v1612_v5, 0.0  ;;  %v2386_v35 = vmax.f32 %v1805_v34, 0.0  ;;  %v6116_v46 = vld [vmem:[#allocation7 + $0x64] ss:$16 sps:$4 sm:$0xff]  }
 0x2d5   :  { %v1615_v19 = vpop.f32.mrf.mxu1  ;;  %v1808_v20 = vpop.f32.mrf.mxu0  ;;  %2186 = vmatprep.mubr.bf16.mxu0 %v6693_v8  ;;  %4664 = vmatprep.subr.bf16.mxu1 %v6116_v46  ;;  %v6141_v46 = vld [vmem:[#allocation7 + $0x3e0] ss:$16 sps:$4 sm:$0xff]  }
 0x2d6   :  { %v2391_v2 = vmax.f32 %v1614_v16, 0.0  ;;  %v2393_v36 = vmax.f32 %v1807_v33, 0.0  ;;  %v1616_v1 = vadd.f32 %v1615_v19, %v7392_v32  ;;  %v1809_v24 = vadd.f32 %v1808_v20, %v7337_v18  ;;  %4705 = vmatprep.subr.bf16.mxu0 %v6119_v63  ;;  %4665 = vmatpush1.bf16.msra.mxu1 %v6114_v39  ;;  %v6138_v63 = vld [vmem:[#allocation7 + $0x1e0] ss:$16 sps:$4 sm:$0xff]   ;;  %v6155_v39 = vld [vmem:[#allocation7 + $0x3a4] ss:$16 sps:$4 sm:$0xff]  }
 0x2d7   :  { %v1619_v15 = vpop.f32.mrf.mxu1  ;;  %v1812_v4 = vpop.f32.mrf.mxu0  ;;  %4706 = vmatpush1.bf16.msra.mxu0 %v6117_v22  ;;  %4666 = vmatprep.subr.bf16.mxu1 %v6122_v30  ;;  %v6153_v22 = vld [vmem:[#allocation7 + $0x3a0] ss:$16 sps:$4 sm:$0xff]  }
 0x2d8   :  { %v2591_v40 = vpack.c.bf16 %v2391_v2, %v2383_v31  ;;  %v2593_v41 = vpack.c.bf16 %v2393_v36, %v2385_v53  ;;  %v2392_v47 = vmax.f32 %v1616_v1, 0.0  ;;  %v2394_v17 = vmax.f32 %v1809_v24, 0.0  ;;  %v6123_v36 = vld [vmem:[#allocation7 + $0x240] ss:$16 sps:$4 sm:$0xff]   ;;  %4707 = vmatprep.subr.bf16.mxu0 %v6125_v25 }
 0x2d9   :  { %v1620_v57 = vadd.f32 %v1619_v15, %v7368_v11  ;;  %v1813_v21 = vadd.f32 %v1812_v4, %v7327_v59  ;;  %v1621_v45 = vpop.f32.mrf.mxu1  ;;  %v1814_v60 = vpop.f32.mrf.mxu0 }
 0x2da   :  { %v2676_v23 = vmax.bf16 %v2675_v54, %v2591_v40  ;;  %v2710_v5 = vmax.bf16 %v2709_v3, %v2593_v41  ;;  %v2592_v34 = vpack.c.bf16 %v2392_v47, %v2384_v37  ;;  %v2594_v28 = vpack.c.bf16 %v2394_v17, %v2386_v35  ;;  %v6120_v35 = vld [vmem:[#allocation7 + $0x40] ss:$16 sps:$4 sm:$0xff]   ;;  %v6128_v41 = vld [vmem:[#allocation7 + $0x24] ss:$16 sps:$4 sm:$0xff]  }
 0x2db   :  { %v1622_v38 = vadd.f32 %v1621_v45, %v7392_v32  ;;  %v1815_v16 = vadd.f32 %v1814_v60, %v7337_v18  ;;  %v1623_v33 = vpop.f32.mrf.mxu1  ;;  %v1816_v49 = vpop.f32.mrf.mxu0  ;;  %1994 = vmatmul.mubr.bf16.gmra.mxu1 %v7275_v29  ;;  %v2399_v31 = vmax.f32 %v1620_v57, 0.0  ;;  %v2401_v53 = vmax.f32 %v1813_v21, 0.0  ;;  %v6131_v47 = vld [vmem:[#allocation7 + $0x224] ss:$16 sps:$4 sm:$0xff]   ;;  %4708 = vmatpush1.bf16.msra.mxu0 %v6123_v36  ;;  %v6129_v17 = vld [vmem:[#allocation7 + $0x220] ss:$16 sps:$4 sm:$0xff]  }
 0x2dc   :  { %v2693_v58 = vmax.bf16 %v2692_v61, %v2592_v34  ;;  %v2727_v55 = vmax.bf16 %v2726_v6, %v2594_v28  ;;  %v1624_v3 = vadd.f32 %v1623_v33, %v7368_v11  ;;  %v1817_v54 = vadd.f32 %v1816_v49, %v7327_v59  ;;  %2187 = vmatmul.mubr.bf16.gmra.mxu0 %v7275_v29  ;;  %v6126_v45 = vld [vmem:[#allocation7 + $0x20] ss:$16 sps:$4 sm:$0xff]   ;;  %v6137_v60 = vld [vmem:[#allocation7 + $0x204] ss:$16 sps:$4 sm:$0xff]  }
 0x2dd   :  { %v1625_v19 = vpop.f32.mrf.mxu1  ;;  %v1818_v20 = vpop.f32.mrf.mxu0  ;;  %2003 = vmatprep.mubr.bf16.mxu1 %v6693_v8  ;;  %2196 = vmatprep.mubr.bf16.mxu0 %v6693_v8  ;;  %v2400_v6 = vmax.f32 %v1622_v38, 0.0  ;;  %v2402_v29 = vmax.f32 %v1815_v16, 0.0  ;;  %v6132_v34 = vld [vmem:[#allocation7] ss:$16 sps:$4 sm:$0xff]   ;;  %v6143_v28 = vld [vmem:[#allocation7 + $0x3e4] ss:$16 sps:$4 sm:$0xff]  }
 0x2de   :  { %v2407_v61 = vmax.f32 %v1624_v3, 0.0  ;;  %v2409_v2 = vmax.f32 %v1817_v54, 0.0  ;;  %v1626_v12 = vadd.f32 %v1625_v19, %v7392_v32  ;;  %v1819_v62 = vadd.f32 %v1818_v20, %v7337_v18  ;;  %4667 = vmatpush1.bf16.msra.mxu1 %v6120_v35  ;;  %4709 = vmatprep.subr.bf16.mxu0 %v6131_v47  ;;  %v6149_v38 = vld [vmem:[#allocation7 + $0x3c4] ss:$16 sps:$4 sm:$0xff]   ;;  %v6147_v33 = vld [vmem:[#allocation7 + $0x3c0] ss:$16 sps:$4 sm:$0xff]  }
 0x2df   :  { %4668 = vmatprep.subr.bf16.mxu1 %v6128_v41  ;;  %4710 = vmatpush1.bf16.msra.mxu0 %v6129_v17  ;;  %v6146_v16 = vld [vmem:[#allocation7 + $0x1c4] ss:$16 sps:$4 sm:$0xff]   ;;  %v6144_v49 = vld [vmem:[#allocation7 + $0x1c0] ss:$16 sps:$4 sm:$0xff]  }
 0x2e0   :  { %v2599_v1 = vpack.c.bf16 %v2407_v61, %v2399_v31  ;;  %v2601_v24 = vpack.c.bf16 %v2409_v2, %v2401_v53  ;;  %v2408_v10 = vmax.f32 %v1626_v12, 0.0  ;;  %v2410_v37 = vmax.f32 %v1819_v62, 0.0  ;;  %4711 = vmatprep.subr.bf16.mxu0 %v6137_v60  ;;  %v6161_v3 = vld [vmem:[#allocation7 + $0x384] ss:$16 sps:$4 sm:$0xff]   ;;  %v6156_v54 = vld [vmem:[#allocation7 + $0x180] ss:$16 sps:$4 sm:$0xff]  }
 0x2e1   :  { %v6159_v31 = vld [vmem:[#allocation7 + $0x380] ss:$16 sps:$4 sm:$0xff]   ;;  %v6167_v53 = vld [vmem:[#allocation7 + $0x364] ss:$16 sps:$4 sm:$0xff]  }
 0x2e2   :  { %v7530_v15 = vmax.bf16 %v2676_v23, %v2599_v1  ;;  %v7532_v4 = vmax.bf16 %v2710_v5, %v2601_v24  ;;  %v2600_v56 = vpack.c.bf16 %v2408_v10, %v2400_v6  ;;  %v2602_v40 = vpack.c.bf16 %v2410_v37, %v2402_v29  ;;  %v6134_v23 = vld [vmem:[#allocation7 + $0x4] ss:$16 sps:$4 sm:$0xff]   ;;  %v6135_v5 = vld [vmem:[#allocation7 + $0x200] ss:$16 sps:$4 sm:$0xff]   ;;  %4669 = vmatpush1.bf16.msra.mxu1 %v6126_v45 }
 0x2e3   :  { %2004 = vmatmul.mubr.bf16.gmra.mxu1 %v7282_v9  ;;  %4670 = vmatprep.subr.bf16.mxu1 %v6134_v23  ;;  %v6162_v19 = vld [vmem:[#allocation7 + $0x160] ss:$16 sps:$4 sm:$0xff]   ;;  %v6170_v61 = vld [vmem:[#allocation7 + $0x144] ss:$16 sps:$4 sm:$0xff]  }
 0x2e4   :  { %2197 = vmatmul.mubr.bf16.gmra.mxu0 %v7282_v9  ;;  %2013 = vmatprep.mubr.bf16.mxu1 %v6693_v8  ;;  %v7537_v57 = vmax.bf16 %v2693_v58, %v2600_v56  ;;  %v7539_v21 = vmax.bf16 %v2727_v55, %v2602_v40  ;;  %v6140_v9 = vld [vmem:[#allocation7 + $0x1e4] ss:$16 sps:$4 sm:$0xff]   ;;  %v6150_v58 = vld [vmem:[#allocation7 + $0x1a0] ss:$16 sps:$4 sm:$0xff]  }
 0x2e5   :  { %2206 = vmatprep.mubr.bf16.mxu0 %v6693_v8  ;;  %4712 = vmatpush1.bf16.msra.mxu0 %v6135_v5  ;;  %v6158_v55 = vld [vmem:[#allocation7 + $0x184] ss:$16 sps:$4 sm:$0xff]   ;;  %v6165_v20 = vld [vmem:[#allocation7 + $0x360] ss:$16 sps:$4 sm:$0xff]  }
 0x2e6   :  { %4671 = vmatpush1.bf16.msra.mxu1 %v6132_v34  ;;  %4713 = vmatprep.subr.bf16.mxu0 %v6143_v28  ;;  %v6173_v2 = vld [vmem:[#allocation7 + $0x344] ss:$16 sps:$4 sm:$0xff]   ;;  %v6171_v12 = vld [vmem:[#allocation7 + $0x340] ss:$16 sps:$4 sm:$0xff]   ;;  %v2678_v34 = vunpack.i.l.bf16 %v7530_v15  ;;  %v2712_v28 = vunpack.i.l.bf16 %v7532_v4 }
 0x2e7   :  { %4672 = vmatprep.subr.bf16.mxu1 %v6140_v9  ;;  %v6176_v29 = vld [vmem:[#allocation7 + $0x124] ss:$16 sps:$4 sm:$0xff]   ;;  %v6174_v1 = vld [vmem:[#allocation7 + $0x120] ss:$16 sps:$4 sm:$0xff]   ;;  %v2679_v9 = vunpack.i.h.bf16 %v7530_v15 }
 0x2e8   :  { %v6179_v36 = vld [vmem:[#allocation7 + $0x324] ss:$16 sps:$4 sm:$0xff]   ;;  %v6177_v24 = vld [vmem:[#allocation7 + $0x320] ss:$16 sps:$4 sm:$0xff]  }
 0x2e9   :  { %4714 = vmatpush2.bf16.msra.mxu0 %v6141_v46  ;;  %v6182_v35 = vld [vmem:[#allocation7 + $0x104] ss:$16 sps:$4 sm:$0xff]   ;;  %v6183_v40 = vld [vmem:[#allocation7 + $0x300] ss:$16 sps:$4 sm:$0xff]   ;;  %v2713_v46 = vunpack.i.h.bf16 %v7532_v4  ;;  %v2680_v15 = vmax.f32 %v2678_v34, %v2679_v9 }
 0x2ea   :  { %4715 = vmatprep.subr.bf16.mxu0 %v6149_v38  ;;  %4673 = vmatpush2.bf16.msra.mxu1 %v6138_v63  ;;  %v6185_v56 = vld [vmem:[#allocation7 + $0x304] ss:$16 sps:$4 sm:$0xff]  }
 0x2eb   :  { %2014 = vmatmul.mubr.bf16.gmra.mxu1 %v7291_v26  ;;  %4674 = vmatprep.subr.bf16.mxu1 %v6146_v16  ;;  %v2681_v4 = vrot.slane %v2680_v15, 4 }
 0x2ec   :  { %2207 = vmatmul.mubr.bf16.gmra.mxu0 %v7291_v26  ;;  %2023 = vmatprep.mubr.bf16.mxu1 %v6693_v8  ;;  %v6152_v26 = vld [vmem:[#allocation7 + $0x1a4] ss:$16 sps:$4 sm:$0xff]  }
 0x2ed   :  { %2216 = vmatprep.mubr.bf16.mxu0 %v6693_v8  ;;  %4716 = vmatpush2.bf16.msra.mxu0 %v6147_v33  ;;  %v2714_v33 = vmax.f32 %v2712_v28, %v2713_v46 }
 0x2ee   :  { %4675 = vmatpush2.bf16.msra.mxu1 %v6144_v49  ;;  %4717 = vmatprep.subr.bf16.mxu0 %v6155_v39  ;;  %v2695_v39 = vunpack.i.l.bf16 %v7537_v57 }
 0x2ef   :  { %4676 = vmatprep.subr.bf16.mxu1 %v6152_v26 }
 0x2f1   :  { %4718 = vmatpush2.bf16.msra.mxu0 %v6153_v22  ;;  %v2696_v22 = vunpack.i.h.bf16 %v7537_v57 }
 0x2f2   :  { %4677 = vmatpush2.bf16.msra.mxu1 %v6150_v58  ;;  %4719 = vmatprep.subr.bf16.mxu0 %v6161_v3  ;;  %v2730_v58 = vunpack.i.h.bf16 %v7539_v21 }
 0x2f3   :  { %2024 = vmatmul.mubr.bf16.gmra.mxu1 %v7298_v27  ;;  %4678 = vmatprep.subr.bf16.mxu1 %v6158_v55 }
 0x2f4   :  { %2217 = vmatmul.mubr.bf16.gmra.mxu0 %v7298_v27  ;;  %2033 = vmatprep.mubr.bf16.mxu1 %v6693_v8  ;;  %v6164_v27 = vld [vmem:[#allocation7 + $0x164] ss:$16 sps:$4 sm:$0xff]   ;;  %v7554_v30 = vpop.f32.mrf.mxu1  ;;  %v7556_v25 = vpop.f32.mrf.mxu0 }
 0x2f5   :  { %2226 = vmatprep.mubr.bf16.mxu0 %v6693_v8  ;;  %4720 = vmatpush2.bf16.msra.mxu0 %v6159_v31  ;;  %v2697_v31 = vmax.f32 %v2695_v39, %v2696_v22  ;;  %v1173_v39 = vsub.s32 4, %v6926_v44  ;;  %v1181_v22 = vsub.s32 6, %v6926_v44 }
 0x2f6   :  { %4679 = vmatpush2.bf16.msra.mxu1 %v6156_v54  ;;  %4721 = vmatprep.subr.bf16.mxu0 %v6167_v53  ;;  %v7559_v62 = vpop.f32.mrf.mxu1  ;;  %v7561_v6 = vpop.f32.mrf.mxu0  ;;  %v2682_v54 = vmax.f32 %v2680_v15, %v2681_v4 }
 0x2f7   :  { %4680 = vmatprep.subr.bf16.mxu1 %v6164_v27 }
 0x2f8   :  { %v7566_v10 = vpop.f32.mrf.mxu1  ;;  %v7568_v37 = vpop.f32.mrf.mxu0 }
 0x2f9   :  { %4722 = vmatpush2.bf16.msra.mxu0 %v6165_v20  ;;  %v2683_v20 = vrot.slane %v2682_v54, 2 }
 0x2fa   :  { %4681 = vmatpush2.bf16.msra.mxu1 %v6162_v19  ;;  %4723 = vmatprep.subr.bf16.mxu0 %v6173_v2  ;;  %v7571_v41 = vpop.f32.mrf.mxu1  ;;  %v7573_v47 = vpop.f32.mrf.mxu0 }
 0x2fb   :  { %2034 = vmatmul.mubr.bf16.gmra.mxu1 %v7307_v13  ;;  %4682 = vmatprep.subr.bf16.mxu1 %v6170_v61  ;;  %v2698_v61 = vrot.slane %v2697_v31, 4 }
 0x2fc   :  { %2227 = vmatmul.mubr.bf16.gmra.mxu0 %v7307_v13  ;;  %2043 = vmatprep.mubr.bf16.mxu1 %v6693_v8  ;;  %v6168_v13 = vld [vmem:[#allocation7 + $0x140] ss:$16 sps:$4 sm:$0xff]   ;;  %v7578_v17 = vpop.f32.mrf.mxu1  ;;  %v7580_v45 = vpop.f32.mrf.mxu0 }
 0x2fd   :  { %2236 = vmatprep.mubr.bf16.mxu0 %v6693_v8  ;;  %4724 = vmatpush2.bf16.msra.mxu0 %v6171_v12 }
 0x2fe   :  { %4683 = vmatpush2.bf16.msra.mxu1 %v6168_v13  ;;  %4725 = vmatprep.subr.bf16.mxu0 %v6179_v36  ;;  %v7583_v60 = vpop.f32.mrf.mxu1  ;;  %v7585_v23 = vpop.f32.mrf.mxu0 }
 0x2ff   :  { %4684 = vmatprep.subr.bf16.mxu1 %v6176_v29  ;;  %v2699_v29 = vmax.f32 %v2697_v31, %v2698_v61 }
 0x300   :  { %v7592_v5 = vpop.f32.mrf.mxu0 }
 0x301   :  { %4726 = vmatpush2.bf16.msra.mxu0 %v6177_v24 }
 0x302   :  { %4685 = vmatpush2.bf16.msra.mxu1 %v6174_v1  ;;  %4727 = vmatprep.subr.bf16.mxu0 %v6185_v56 }
 0x303   :  { %2044 = vmatmul.mubr.bf16.gmra.mxu1 %v7314_v43  ;;  %4686 = vmatprep.subr.bf16.mxu1 %v6182_v35 }
 0x304   :  { %2237 = vmatmul.mubr.bf16.gmra.mxu0 %v7314_v43  ;;  %2053 = vmatprep.mubr.bf16.mxu1 %v6693_v8  ;;  %v6180_v43 = vld [vmem:[#allocation7 + $0x100] ss:$16 sps:$4 sm:$0xff]  }
 0x305   :  { %2246 = vmatprep.mubr.bf16.mxu0 %v6693_v8  ;;  %4728 = vmatpush2.bf16.msra.mxu0 %v6183_v40 }
 0x306   :  { %4687 = vmatpush2.bf16.msra.mxu1 %v6180_v43  ;;  %v2700_v43 = vrot.slane %v2699_v29, 2 }
 0x308   :  { %v2701_v15 = vmax.f32 %v2699_v29, %v2700_v43 }
 0x30b   :  { %2054 = vmatmul.mubr.bf16.gmra.mxu1 %v7342_v42 }
 0x30c   :  { %2247 = vmatmul.mubr.bf16.gmra.mxu0 %v7342_v42  ;;  %2063 = vmatprep.mubr.bf16.mxu1 %v6693_v8  ;;  %v7590_v42 = vpop.f32.mrf.mxu1 }
 0x30d   :  { %2256 = vmatprep.mubr.bf16.mxu0 %v6693_v8 }
 0x30e   :  { %v7599_v63 = vpop.f32.mrf.mxu1 }
 0x313   :  { %2064 = vmatmul.mubr.bf16.gmra.mxu1 %v7355_v50 }
 0x314   :  { %2257 = vmatmul.mubr.bf16.gmra.mxu0 %v7355_v50  ;;  %2073 = vmatprep.mubr.bf16.mxu1 %v6693_v8  ;;  %v7601_v50 = vpop.f32.mrf.mxu0 }
 0x315   :  { %2266 = vmatprep.mubr.bf16.mxu0 %v6693_v8  ;;  %v7606_v38 = vpop.f32.mrf.mxu1 }
 0x316   :  { %v7608_v16 = vpop.f32.mrf.mxu0 }
 0x317   :  { %v7610_v49 = vpop.f32.mrf.mxu1 }
 0x318   :  { %v7612_v26 = vpop.f32.mrf.mxu0 }
 0x319   :  { %v7620_v55 = vpop.f32.mrf.mxu1 }
 0x31a   :  { %v7622_v3 = vpop.f32.mrf.mxu0 }
 0x31b   :  { %2074 = vmatmul.mubr.bf16.gmra.mxu1 %v7376_v0  ;;  %v7624_v19 = vpop.f32.mrf.mxu1 }
 0x31c   :  { %2267 = vmatmul.mubr.bf16.gmra.mxu0 %v7376_v0  ;;  %2083 = vmatprep.mubr.bf16.mxu1 %v6693_v8  ;;  %v2715_v0 = vrot.slane %v2714_v33, 4  ;;  %v7626_v57 = vpop.f32.mrf.mxu0 }
 0x31d   :  { %2276 = vmatprep.mubr.bf16.mxu0 %v6693_v8  ;;  %v2729_v8 = vunpack.i.l.bf16 %v7539_v21  ;;  %v7628_v12 = vpop.f32.mrf.mxu1 }
 0x31e   :  { %v2716_v27 = vmax.f32 %v2714_v33, %v2715_v0  ;;  %v7630_v21 = vpop.f32.mrf.mxu0 }
 0x31f   :  { %v2731_v53 = vmax.f32 %v2729_v8, %v2730_v58  ;;  %v7632_v24 = vpop.f32.mrf.mxu1  ;;  %v1177_v58 = vsub.s32 5, %v6926_v44 }
 0x320   :  { %v2717_v2 = vrot.slane %v2716_v27, 2  ;;  %v7634_v35 = vpop.f32.mrf.mxu0 }
 0x321   :  { %v2732_v13 = vrot.slane %v2731_v53, 4  ;;  %v7636_v9 = vpop.f32.mrf.mxu1 }
 0x322   :  { %v2718_v36 = vmax.f32 %v2716_v27, %v2717_v2  ;;  %v7638_v28 = vpop.f32.mrf.mxu0  ;;  %v2702_v27 = vrot.slane %v2701_v15, 1 }
 0x323   :  { %2084 = vmatmul.mubr.bf16.gmra.mxu1 %v7396_v14  ;;  %v2733_v1 = vmax.f32 %v2731_v53, %v2732_v13  ;;  %v7642_v0 = vpop.f32.mrf.mxu1  ;;  %v6570_v13 = vld [vmem:[%s8322_s6] sm:$0xff] }
 0x324   :  { %2277 = vmatmul.mubr.bf16.gmra.mxu0 %v7396_v14  ;;  %v2684_v14 = vmax.f32 %v2682_v54, %v2683_v20  ;;  %v2719_v40 = vrot.slane %v2718_v36, 1  ;;  %v7644_v8 = vpop.f32.mrf.mxu0  ;;  %v1185_v54 = vsub.s32 7, %v6926_v44  ;;  %v7657_v29 = vrot.slane %v6570_v13, %v1181_v22 }
 0x325   :  { %v2734_v34 = vrot.slane %v2733_v1, 2 }
 0x326   :  { %v2685_v56 = vrot.slane %v2684_v14, 1  ;;  %v2720_v33 = vmax.f32 %v2718_v36, %v2719_v40  ;;  %v1630_v36 = vadd.f32 %v7554_v30, %v7368_v11  ;;  %v7665_v43 = vrot.slane %v6570_v13, %v1185_v54 }
 0x327   :  { %v2735_v4 = vmax.f32 %v2733_v1, %v2734_v34  ;;  %v1823_v1 = vadd.f32 %v7556_v25, %v7327_v59  ;;  %v1644_v34 = vadd.f32 %v7590_v42, %v7368_v11  ;;  %v1634_v30 = vadd.f32 %v7566_v10, %v7368_v11 }
 0x328   :  { %v2686_v46 = vmax.f32 %v2684_v14, %v2685_v56  ;;  %v2721_v53 = vpack.i.bf16 %v2720_v33, %v2720_v33  ;;  %v7655_v14 = vrot.slane %v6570_v13, %v1173_v39  ;;  %v7663_v56 = vrot.slane %v6570_v13, %v1177_v58 }
 0x329   :  { %v2736_v2 = vrot.slane %v2735_v4, 1  ;;  %v7673_v33 = vmax.f32 %v2701_v15, %v2702_v27  ;;  %v1827_v25 = vadd.f32 %v7568_v37, %v7327_v59  ;;  %v1640_v42 = vadd.f32 %v7578_v17, %v7368_v11 }
 0x32a   :  { %v2687_v31 = vpack.i.bf16 %v2686_v46, %v2686_v46  ;;  %v1837_v46 = vadd.f32 %v7592_v5, %v7327_v59  ;;  %v7675_v39 = vunpack.c.l.b16 %v2721_v53  ;;  %v1833_v5 = vadd.f32 %v7580_v45, %v7327_v59 }
 0x32b   :  { %v7685_v54 = vmax.f32 %v2735_v4, %v2736_v2  ;;  %v1646_v15 = vadd.f32 %v7599_v63, %v7392_v32  ;;  %v1839_v10 = vadd.f32 %v7601_v50, %v7337_v18  ;;  %v2417_v37 = vmax.f32 %v1823_v1, 0.0 }
 0x32c   :  { %v7667_v40 = vunpack.c.l.b16 %v2687_v31  ;;  %v2415_v31 = vmax.f32 %v1630_v36, 0.0  ;;  %v1636_v27 = vadd.f32 %v7571_v41, %v7392_v32  ;;  %v1829_v4 = vadd.f32 %v7573_v47, %v7337_v18 }
 0x32d   :  { %v1642_v17 = vadd.f32 %v7583_v60, %v7392_v32  ;;  %v1835_v45 = vadd.f32 %v7585_v23, %v7337_v18  ;;  %v2439_v53 = vmax.f32 %v1644_v34, 0.0  ;;  %v2441_v2 = vmax.f32 %v1837_v46, 0.0 }
 0x32e   :  { %v1632_v63 = vadd.f32 %v7559_v62, %v7392_v32  ;;  %v1825_v50 = vadd.f32 %v7561_v6, %v7337_v18  ;;  %v2423_v13 = vmax.f32 %v1634_v30, 0.0  ;;  %v2425_v36 = vmax.f32 %v1827_v25, 0.0 }
 0x32f   :  { %v2431_v47 = vmax.f32 %v1640_v42, 0.0  ;;  %v2433_v7 = vmax.f32 %v1833_v5, 0.0  ;;  %v2440_v60 = vmax.f32 %v1646_v15, 0.0  ;;  %v2442_v44 = vmax.f32 %v1839_v10, 0.0 }
 0x330   :  { %v2424_v51 = vmax.f32 %v1636_v27, 0.0  ;;  %v2426_v23 = vmax.f32 %v1829_v4, 0.0  ;;  %v2738_v62 = vpack.i.bf16 %v7685_v54, %v7685_v54  ;;  %v2432_v46 = vmax.f32 %v1642_v17, 0.0 }
 0x331   :  { %v2434_v6 = vmax.f32 %v1835_v45, 0.0  ;;  %v2615_v30 = vpack.c.bf16 %v2439_v53, %v2431_v47  ;;  %v2617_v25 = vpack.c.bf16 %v2441_v2, %v2433_v7  ;;  %v2416_v48 = vmax.f32 %v1632_v63, 0.0 }
 0x332   :  { %v2418_v52 = vmax.f32 %v1825_v50, 0.0  ;;  %v1654_v42 = vadd.f32 %v7620_v55, %v7368_v11  ;;  %v1847_v5 = vadd.f32 %v7622_v3, %v7327_v59  ;;  %v2607_v27 = vpack.c.bf16 %v2423_v13, %v2415_v31 }
 0x333   :  { %v2609_v4 = vpack.c.bf16 %v2425_v36, %v2417_v37  ;;  %v7723_v34 = vpack.c.bf16 %v2440_v60, %v2432_v46  ;;  %v7725_v17 = vpack.c.bf16 %v2442_v44, %v2434_v6  ;;  %v1650_v7 = vadd.f32 %v7606_v38, %v7368_v11 }
 0x334   :  { %v1843_v45 = vadd.f32 %v7608_v16, %v7327_v59  ;;  %v1656_v55 = vadd.f32 %v7624_v19, %v7392_v32  ;;  %v1849_v3 = vadd.f32 %v7626_v57, %v7337_v18  ;;  %v2608_v53 = vpack.c.bf16 %v2424_v51, %v2416_v48 }
 0x335   :  { %v2610_v2 = vpack.c.bf16 %v2426_v23, %v2418_v52  ;;  %v2807_v31 = vmax.bf16 %v2615_v30, %v2607_v27  ;;  %v2841_v37 = vmax.bf16 %v2617_v25, %v2609_v4  ;;  %v1652_v44 = vadd.f32 %v7610_v49, %v7392_v32  ;;  %v6188_v27 = vld [vmem:[#allocation7 + $0x4e4] ss:$16 sps:$4 sm:$0xff]  }
 0x336   :  { %v1845_v63 = vadd.f32 %v7612_v26, %v7337_v18  ;;  %v2455_v38 = vmax.f32 %v1654_v42, 0.0  ;;  %v2457_v50 = vmax.f32 %v1847_v5, 0.0  ;;  %v2824_v19 = vmax.bf16 %v7723_v34, %v2608_v53  ;;  %4738 = vmatprep.subr.bf16.mxu1 %v6188_v27 }
 0x337   :  { %v2858_v57 = vmax.bf16 %v7725_v17, %v2610_v2  ;;  %v1664_v48 = vadd.f32 %v7636_v9, %v7368_v11  ;;  %v1857_v51 = vadd.f32 %v7638_v28, %v7327_v59  ;;  %v2447_v52 = vmax.f32 %v1650_v7, 0.0  ;;  %v6191_v7 = vld [vmem:[#allocation7 + $0x6e4] ss:$16 sps:$4 sm:$0xff]  }
 0x338   :  { %v2449_v49 = vmax.f32 %v1843_v45, 0.0  ;;  %v2456_v36 = vmax.f32 %v1656_v55, 0.0  ;;  %v2458_v26 = vmax.f32 %v1849_v3, 0.0  ;;  %v1660_v47 = vadd.f32 %v7628_v12, %v7368_v11  ;;  %4779 = vmatprep.subr.bf16.mxu0 %v6191_v7 }
 0x339   :  { %v1853_v60 = vadd.f32 %v7630_v21, %v7327_v59  ;;  %v1666_v23 = vadd.f32 %v7642_v0, %v7392_v32  ;;  %v1859_v34 = vadd.f32 %v7644_v8, %v7337_v18  ;;  %v2448_v9 = vmax.f32 %v1652_v44, 0.0 }
 0x33a   :  { %v7648_v20 = vpop.f32.mrf.mxu1  ;;  %v7650_v61 = vpop.f32.mrf.mxu0  ;;  %v2450_v46 = vmax.f32 %v1845_v63, 0.0  ;;  %v2623_v6 = vpack.c.bf16 %v2455_v38, %v2447_v52  ;;  %v2625_v28 = vpack.c.bf16 %v2457_v50, %v2449_v49  ;;  %v1662_v42 = vadd.f32 %v7632_v24, %v7392_v32 }
 0x33b   :  { %v1855_v12 = vadd.f32 %v7634_v35, %v7337_v18  ;;  %v2471_v5 = vmax.f32 %v1664_v48, 0.0  ;;  %v2473_v21 = vmax.f32 %v1857_v51, 0.0  ;;  %v2624_v4 = vpack.c.bf16 %v2456_v36, %v2448_v9 }
 0x33c   :  { %v7681_v22 = vpop.f32.mrf.mxu1  ;;  %v7683_v58 = vpop.f32.mrf.mxu0  ;;  %v2626_v0 = vpack.c.bf16 %v2458_v26, %v2450_v46  ;;  %v2463_v45 = vmax.f32 %v1660_v47, 0.0  ;;  %v2465_v55 = vmax.f32 %v1853_v60, 0.0  ;;  %v2472_v3 = vmax.f32 %v1666_v23, 0.0 }
 0x33d   :  { %v2474_v53 = vmax.f32 %v1859_v34, 0.0  ;;  %v2808_v24 = vmax.bf16 %v2807_v31, %v2623_v6  ;;  %v2842_v2 = vmax.bf16 %v2841_v37, %v2625_v28  ;;  %v1670_v35 = vadd.f32 %v7648_v20, %v7368_v11 }
 0x33e   :  { %v7707_v41 = vpop.f32.mrf.mxu1  ;;  %v7709_v1 = vpop.f32.mrf.mxu0  ;;  %v1863_v44 = vadd.f32 %v7650_v61, %v7327_v59  ;;  %v2466_v50 = vmax.f32 %v1855_v12, 0.0  ;;  %v2633_v48 = vpack.c.bf16 %v2473_v21, %v2465_v55  ;;  %v2825_v37 = vmax.bf16 %v2824_v19, %v2624_v4 }
 0x33f   :  { %v1674_v8 = vadd.f32 %v7707_v41, %v7368_v11  ;;  %v1867_v17 = vadd.f32 %v7709_v1, %v7327_v59  ;;  %v2464_v41 = vmax.f32 %v1662_v42, 0.0  ;;  %v2631_v1 = vpack.c.bf16 %v2471_v5, %v2463_v45 }
 0x340   :  { %v7719_v15 = vpop.f32.mrf.mxu1  ;;  %v7721_v10 = vpop.f32.mrf.mxu0  ;;  %v2859_v20 = vmax.bf16 %v2858_v57, %v2626_v0  ;;  %v2634_v26 = vpack.c.bf16 %v2474_v53, %v2466_v50  ;;  %v2479_v61 = vmax.f32 %v1670_v35, 0.0  ;;  %v2481_v47 = vmax.f32 %v1863_v44, 0.0 }
 0x341   :  { %v2487_v51 = vmax.f32 %v1674_v8, 0.0  ;;  %v2489_v52 = vmax.f32 %v1867_v17, 0.0  ;;  %v1676_v49 = vadd.f32 %v7719_v15, %v7392_v32  ;;  %v1869_v31 = vadd.f32 %v7721_v10, %v7337_v18 }
 0x342   :  { %v7739_v13 = vpop.f32.mrf.mxu1  ;;  %v7741_v16 = vpop.f32.mrf.mxu0  ;;  %v2632_v36 = vpack.c.bf16 %v2472_v3, %v2464_v41  ;;  %v1672_v60 = vadd.f32 %v7681_v22, %v7392_v32  ;;  %v1865_v23 = vadd.f32 %v7683_v58, %v7337_v18  ;;  %v2809_v46 = vmax.bf16 %v2808_v24, %v2631_v1 }
 0x343   :  { %v2843_v6 = vmax.bf16 %v2842_v2, %v2633_v48  ;;  %v2639_v19 = vpack.c.bf16 %v2487_v51, %v2479_v61  ;;  %v2641_v57 = vpack.c.bf16 %v2489_v52, %v2481_v47  ;;  %v2488_v28 = vmax.f32 %v1676_v49, 0.0 }
 0x344   :  { %v1681_v30 = vpop.f32.mrf.mxu1  ;;  %v1874_v25 = vpop.f32.mrf.mxu0  ;;  %v2490_v42 = vmax.f32 %v1869_v31, 0.0  ;;  %v1680_v12 = vadd.f32 %v7739_v13, %v7368_v11  ;;  %v1873_v22 = vadd.f32 %v7741_v16, %v7327_v59  ;;  %v2826_v4 = vmax.bf16 %v2825_v37, %v2632_v36 }
 0x345   :  { %v2860_v0 = vmax.bf16 %v2859_v20, %v2634_v26  ;;  %v2480_v8 = vmax.f32 %v1672_v60, 0.0  ;;  %v2482_v17 = vmax.f32 %v1865_v23, 0.0  ;;  %v1682_v7 = vadd.f32 %v1681_v30, %v7392_v32 }
 0x346   :  { %v1683_v63 = vpop.f32.mrf.mxu1  ;;  %v1876_v38 = vpop.f32.mrf.mxu0  ;;  %v1875_v45 = vadd.f32 %v1874_v25, %v7337_v18  ;;  %v7787_v24 = vmax.bf16 %v2809_v46, %v2639_v19  ;;  %v7789_v16 = vmax.bf16 %v2843_v6, %v2641_v57  ;;  %v2495_v44 = vmax.f32 %v1680_v12, 0.0 }
 0x347   :  { %v1684_v15 = vadd.f32 %v1683_v63, %v7368_v11  ;;  %v1877_v10 = vadd.f32 %v1876_v38, %v7327_v59  ;;  %v2640_v2 = vpack.c.bf16 %v2488_v28, %v2480_v8  ;;  %v2642_v35 = vpack.c.bf16 %v2490_v42, %v2482_v17 }
 0x348   :  { %v1685_v34 = vpop.f32.mrf.mxu1  ;;  %v1878_v9 = vpop.f32.mrf.mxu0  ;;  %v2497_v63 = vmax.f32 %v1873_v22, 0.0  ;;  %v2496_v52 = vmax.f32 %v1682_v7, 0.0  ;;  %v2498_v49 = vmax.f32 %v1875_v45, 0.0 }
 0x349   :  { %v1686_v58 = vadd.f32 %v1685_v34, %v7392_v32  ;;  %v1879_v5 = vadd.f32 %v1878_v9, %v7337_v18  ;;  %v2503_v55 = vmax.f32 %v1684_v15, 0.0  ;;  %v2505_v3 = vmax.f32 %v1877_v10, 0.0 }
 0x34a   :  { %v2827_v23 = vmax.bf16 %v2826_v4, %v2640_v2  ;;  %v2861_v34 = vmax.bf16 %v2860_v0, %v2642_v35 }
 0x34b   :  { %v2504_v38 = vmax.f32 %v1686_v58, 0.0  ;;  %v2506_v41 = vmax.f32 %v1879_v5, 0.0  ;;  %v2647_v31 = vpack.c.bf16 %v2503_v55, %v2495_v44  ;;  %v2649_v37 = vpack.c.bf16 %v2505_v3, %v2497_v63 }
 0x34d   :  { %v2648_v10 = vpack.c.bf16 %v2504_v38, %v2496_v52  ;;  %v2650_v19 = vpack.c.bf16 %v2506_v41, %v2498_v49  ;;  %v2845_v4 = vmax.bf16 %v7789_v16, %v2649_v37 }
 0x34f   :  { %v2862_v2 = vmax.bf16 %v2861_v34, %v2650_v19 }
 0x35b   :  { %v1689_v21 = vpop.f32.mrf.mxu1  ;;  %v1882_v27 = vpop.f32.mrf.mxu0 }
 0x35c   :  { %v1690_v30 = vadd.f32 %v1689_v21, %v7368_v11  ;;  %v1883_v25 = vadd.f32 %v1882_v27, %v7327_v59  ;;  %v2811_v27 = vmax.bf16 %v7787_v24, %v2647_v31 }
 0x35d   :  { %v1691_v13 = vpop.f32.mrf.mxu1  ;;  %v1884_v53 = vpop.f32.mrf.mxu0 }
 0x35e   :  { %v1692_v26 = vadd.f32 %v1691_v13, %v7392_v32  ;;  %v1885_v61 = vadd.f32 %v1884_v53, %v7337_v18  ;;  %v2511_v57 = vmax.f32 %v1690_v30, 0.0  ;;  %v2513_v28 = vmax.f32 %v1883_v25, 0.0 }
 0x35f   :  { %v1693_v50 = vpop.f32.mrf.mxu1  ;;  %v1886_v1 = vpop.f32.mrf.mxu0  ;;  %v2828_v53 = vmax.bf16 %v2827_v23, %v2648_v10 }
 0x360   :  { %v1694_v48 = vadd.f32 %v1693_v50, %v7368_v11  ;;  %v1887_v51 = vadd.f32 %v1886_v1, %v7327_v59  ;;  %v2512_v0 = vmax.f32 %v1692_v26, 0.0  ;;  %v2514_v8 = vmax.f32 %v1885_v61, 0.0 }
 0x361   :  { %v1695_v20 = vpop.f32.mrf.mxu1  ;;  %v1888_v36 = vpop.f32.mrf.mxu0 }
 0x362   :  { %v1696_v47 = vadd.f32 %v1695_v20, %v7392_v32  ;;  %v1889_v60 = vadd.f32 %v1888_v36, %v7337_v18  ;;  %v2519_v9 = vmax.f32 %v1694_v48, 0.0  ;;  %v2521_v46 = vmax.f32 %v1887_v51, 0.0 }
 0x363   :  { %v1699_v6 = vpop.f32.mrf.mxu1  ;;  %v1892_v15 = vpop.f32.mrf.mxu0 }
 0x364   :  { %v2520_v42 = vmax.f32 %v1696_v47, 0.0  ;;  %v2522_v12 = vmax.f32 %v1889_v60, 0.0  ;;  %v1700_v22 = vadd.f32 %v1699_v6, %v7368_v11  ;;  %v1893_v58 = vadd.f32 %v1892_v15, %v7327_v59 }
 0x365   :  { %v1701_v5 = vpop.f32.mrf.mxu1  ;;  %v1894_v21 = vpop.f32.mrf.mxu0  ;;  %v2655_v17 = vpack.c.bf16 %v2519_v9, %v2511_v57  ;;  %v2657_v7 = vpack.c.bf16 %v2521_v46, %v2513_v28 }
 0x366   :  { %v1702_v45 = vadd.f32 %v1701_v5, %v7392_v32  ;;  %v1895_v55 = vadd.f32 %v1894_v21, %v7337_v18  ;;  %v2656_v63 = vpack.c.bf16 %v2520_v42, %v2512_v0  ;;  %v2658_v24 = vpack.c.bf16 %v2522_v12, %v2514_v8 }
 0x367   :  { %v1703_v3 = vpop.f32.mrf.mxu1  ;;  %v1896_v13 = vpop.f32.mrf.mxu0  ;;  %v2527_v38 = vmax.f32 %v1700_v22, 0.0  ;;  %v2529_v16 = vmax.f32 %v1893_v58, 0.0  ;;  %v2812_v51 = vmax.bf16 %v2811_v27, %v2655_v17  ;;  %v2846_v52 = vmax.bf16 %v2845_v4, %v2657_v7 }
 0x368   :  { %v1704_v35 = vadd.f32 %v1703_v3, %v7368_v11  ;;  %v1897_v44 = vadd.f32 %v1896_v13, %v7327_v59  ;;  %v2528_v49 = vmax.f32 %v1702_v45, 0.0  ;;  %v2530_v31 = vmax.f32 %v1895_v55, 0.0 }
 0x369   :  { %v1705_v41 = vpop.f32.mrf.mxu1  ;;  %v1898_v50 = vpop.f32.mrf.mxu0  ;;  %v2829_v61 = vmax.bf16 %v2828_v53, %v2656_v63  ;;  %v2863_v47 = vmax.bf16 %v2862_v2, %v2658_v24 }
 0x36a   :  { %v2535_v1 = vmax.f32 %v1704_v35, 0.0  ;;  %v2537_v30 = vmax.f32 %v1897_v44, 0.0  ;;  %v1706_v25 = vadd.f32 %v1705_v41, %v7392_v32  ;;  %v1899_v48 = vadd.f32 %v1898_v50, %v7337_v18 }
 0x36b   :  { %v1935_v37 = vpop.f32.mrf.mxu1  ;;  %v2128_v11 = vpop.f32.mrf.mxu0 }
 0x36c   :  { %v2663_v20 = vpack.c.bf16 %v2535_v1, %v2527_v38  ;;  %v2665_v59 = vpack.c.bf16 %v2537_v30, %v2529_v16  ;;  %v2536_v36 = vmax.f32 %v1706_v25, 0.0  ;;  %v2538_v26 = vmax.f32 %v1899_v48, 0.0 }
 0x36d   :  { %v1936_v60 = vadd.f32 %v1935_v37, %v7655_v14  ;;  %v2129_v23 = vadd.f32 %v2128_v11, %v7657_v29  ;;  %v1937_v34 = vpop.f32.mrf.mxu1  ;;  %v2130_v32 = vpop.f32.mrf.mxu0 }
 0x36e   :  { %v2813_v9 = vmax.bf16 %v2812_v51, %v2663_v20  ;;  %v2847_v18 = vmax.bf16 %v2846_v52, %v2665_v59  ;;  %v2664_v46 = vpack.c.bf16 %v2536_v36, %v2528_v49  ;;  %v2666_v6 = vpack.c.bf16 %v2538_v26, %v2530_v31 }
 0x36f   :  { %v2291_v15 = vmax.f32 %v1936_v60, 0.0  ;;  %v2293_v10 = vmax.f32 %v2129_v23, 0.0  ;;  %v1938_v19 = vadd.f32 %v1937_v34, %v7663_v56  ;;  %v2131_v57 = vadd.f32 %v2130_v32, %v7665_v43  ;;  %v1939_v28 = vpop.f32.mrf.mxu1  ;;  %v2132_v42 = vpop.f32.mrf.mxu0 }
 0x370   :  { %v2814_v12 = vunpack.i.l.bf16 %v2813_v9  ;;  %v2815_v22 = vunpack.i.h.bf16 %v2813_v9  ;;  %v2848_v58 = vunpack.i.l.bf16 %v2847_v18  ;;  %v2849_v5 = vunpack.i.h.bf16 %v2847_v18 }
 0x371   :  { %v2830_v21 = vmax.bf16 %v2829_v61, %v2664_v46  ;;  %v2864_v27 = vmax.bf16 %v2863_v47, %v2666_v6  ;;  %v2292_v4 = vmax.f32 %v1938_v19, 0.0  ;;  %v2294_v0 = vmax.f32 %v2131_v57, 0.0  ;;  %v1941_v8 = vpop.f32.mrf.mxu1  ;;  %v2134_v17 = vpop.f32.mrf.mxu0 }
 0x372   :  { %v2816_v7 = vmax.f32 %v2814_v12, %v2815_v22  ;;  %v2850_v45 = vmax.f32 %v2848_v58, %v2849_v5  ;;  %v1940_v55 = vadd.f32 %v1939_v28, %v7655_v14  ;;  %v2133_v3 = vadd.f32 %v2132_v42, %v7657_v29 }
 0x373   :  { %v2831_v13 = vunpack.i.l.bf16 %v2830_v21  ;;  %v2832_v53 = vunpack.i.h.bf16 %v2830_v21  ;;  %v2865_v2 = vunpack.i.l.bf16 %v2864_v27  ;;  %v2866_v35 = vunpack.i.h.bf16 %v2864_v27  ;;  %v1945_v44 = vpop.f32.mrf.mxu1  ;;  %v2138_v63 = vpop.f32.mrf.mxu0 }
 0x374   :  { %v2817_v24 = vrot.slane %v2816_v7, 4  ;;  %v2851_v38 = vrot.slane %v2850_v45, 4  ;;  %v2299_v16 = vmax.f32 %v1940_v55, 0.0  ;;  %v2301_v41 = vmax.f32 %v2133_v3, 0.0 }
 0x375   :  { %v2833_v50 = vmax.f32 %v2831_v13, %v2832_v53  ;;  %v2867_v1 = vmax.f32 %v2865_v2, %v2866_v35  ;;  %v1942_v30 = vadd.f32 %v1941_v8, %v7663_v56  ;;  %v2135_v25 = vadd.f32 %v2134_v17, %v7665_v43  ;;  %v1947_v48 = vpop.f32.mrf.mxu1  ;;  %v2140_v51 = vpop.f32.mrf.mxu0 }
 0x376   :  { %v2818_v52 = vmax.f32 %v2816_v7, %v2817_v24  ;;  %v2852_v49 = vmax.f32 %v2850_v45, %v2851_v38  ;;  %v7817_v31 = vpack.c.bf16 %v2299_v16, %v2291_v15  ;;  %v7819_v37 = vpack.c.bf16 %v2301_v41, %v2293_v10 }
 0x377   :  { %v2834_v11 = vrot.slane %v2833_v50, 4  ;;  %v2868_v20 = vrot.slane %v2867_v1, 4  ;;  %v2300_v59 = vmax.f32 %v1942_v30, 0.0  ;;  %v2302_v36 = vmax.f32 %v2135_v25, 0.0  ;;  %v1949_v26 = vpop.f32.mrf.mxu1  ;;  %v2142_v61 = vpop.f32.mrf.mxu0 }
 0x378   :  { %v2819_v47 = vrot.slane %v2818_v52, 2  ;;  %v2853_v60 = vrot.slane %v2852_v49, 2  ;;  %v1946_v23 = vadd.f32 %v1945_v44, %v7655_v14  ;;  %v2139_v34 = vadd.f32 %v2138_v63, %v7657_v29 }
 0x379   :  { %v7823_v32 = vmax.f32 %v2833_v50, %v2834_v11  ;;  %v7825_v9 = vmax.f32 %v2867_v1, %v2868_v20  ;;  %v7827_v18 = vpack.c.bf16 %v2300_v59, %v2292_v4  ;;  %v7829_v46 = vpack.c.bf16 %v2302_v36, %v2294_v0  ;;  %v1951_v6 = vpop.f32.mrf.mxu1  ;;  %v2144_v15 = vpop.f32.mrf.mxu0 }
 0x37a   :  { %v2820_v10 = vmax.f32 %v2818_v52, %v2819_v47  ;;  %v2854_v19 = vmax.f32 %v2852_v49, %v2853_v60  ;;  %v2307_v57 = vmax.f32 %v1946_v23, 0.0  ;;  %v2309_v28 = vmax.f32 %v2139_v34, 0.0 }
 0x37b   :  { %v2836_v42 = vrot.slane %v7823_v32, 2  ;;  %v2870_v12 = vrot.slane %v7825_v9, 2  ;;  %v1948_v22 = vadd.f32 %v1947_v48, %v7663_v56  ;;  %v2141_v58 = vadd.f32 %v2140_v51, %v7665_v43  ;;  %v1955_v5 = vpop.f32.mrf.mxu1 }
 0x37c   :  { %v2821_v21 = vrot.slane %v2820_v10, 1  ;;  %v2855_v27 = vrot.slane %v2854_v19, 1  ;;  %v1950_v4 = vadd.f32 %v1949_v26, %v7655_v14  ;;  %v2143_v0 = vadd.f32 %v2142_v61, %v7657_v29  ;;  %v2148_v8 = vpop.f32.mrf.mxu0 }
 0x37d   :  { %v2308_v17 = vmax.f32 %v1948_v22, 0.0  ;;  %v2310_v7 = vmax.f32 %v2141_v58, 0.0  ;;  %v1952_v45 = vadd.f32 %v1951_v6, %v7663_v56  ;;  %v2145_v55 = vadd.f32 %v2144_v15, %v7665_v43  ;;  %v1957_v3 = vpop.f32.mrf.mxu1 }
 0x37e   :  { %v2822_v13 = vmax.f32 %v2820_v10, %v2821_v21  ;;  %v2856_v53 = vmax.f32 %v2854_v19, %v2855_v27  ;;  %v2315_v2 = vmax.f32 %v1950_v4, 0.0  ;;  %v2317_v35 = vmax.f32 %v2143_v0, 0.0  ;;  %v2150_v44 = vpop.f32.mrf.mxu0 }
 0x37f   :  { %v2316_v63 = vmax.f32 %v1952_v45, 0.0  ;;  %v2318_v24 = vmax.f32 %v2145_v55, 0.0  ;;  %v1956_v38 = vadd.f32 %v1955_v5, %v7655_v14  ;;  %v2149_v16 = vadd.f32 %v2148_v8, %v7657_v29  ;;  %v1959_v41 = vpop.f32.mrf.mxu1 }
 0x380   :  { %v2823_v50 = vpack.i.bf16 %v2822_v13, %v2822_v13  ;;  %v2857_v1 = vpack.i.bf16 %v2856_v53, %v2856_v53  ;;  %v2555_v30 = vpack.c.bf16 %v2315_v2, %v2307_v57  ;;  %v2557_v25 = vpack.c.bf16 %v2317_v35, %v2309_v28  ;;  %v2152_v48 = vpop.f32.mrf.mxu0 }
 0x381   :  { %v2556_v51 = vpack.c.bf16 %v2316_v63, %v2308_v17  ;;  %v2558_v52 = vpack.c.bf16 %v2318_v24, %v2310_v7  ;;  %v2323_v49 = vmax.f32 %v1956_v38, 0.0  ;;  %v2325_v11 = vmax.f32 %v2149_v16, 0.0  ;;  %v1961_v20 = vpop.f32.mrf.mxu1 }
 0x382   :  { %v3343_v59 = vunpack.c.l.b16 %v2823_v50  ;;  %v3345_v36 = vunpack.c.l.b16 %v2857_v1  ;;  %v2739_v26 = vmax.bf16 %v2555_v30, %v7817_v31  ;;  %v2773_v61 = vmax.bf16 %v2557_v25, %v7819_v37  ;;  %v2154_v47 = vpop.f32.mrf.mxu0 }
 0x383   :  { %v2756_v60 = vmax.bf16 %v2556_v51, %v7827_v18  ;;  %v2790_v23 = vmax.bf16 %v2558_v52, %v7829_v46  ;;  %v1958_v34 = vadd.f32 %v1957_v3, %v7663_v56  ;;  %v2151_v6 = vadd.f32 %v2150_v44, %v7665_v43  ;;  %v1965_v15 = vpop.f32.mrf.mxu1 }
 0x384   :  { %v1960_v10 = vadd.f32 %v1959_v41, %v7655_v14  ;;  %v2153_v19 = vadd.f32 %v2152_v48, %v7657_v29  ;;  %v1962_v57 = vadd.f32 %v1961_v20, %v7663_v56  ;;  %v2155_v31 = vadd.f32 %v2154_v47, %v7665_v43  ;;  %v2158_v28 = vpop.f32.mrf.mxu0 }
 0x385   :  { %v2324_v37 = vmax.f32 %v1958_v34, 0.0  ;;  %v2326_v22 = vmax.f32 %v2151_v6, 0.0  ;;  %v1966_v18 = vadd.f32 %v1965_v15, %v7655_v14  ;;  %v2159_v46 = vadd.f32 %v2158_v28, %v7657_v29  ;;  %v1967_v58 = vpop.f32.mrf.mxu1 }
 0x386   :  { %v2331_v5 = vmax.f32 %v1960_v10, 0.0  ;;  %v2333_v21 = vmax.f32 %v2153_v19, 0.0  ;;  %v2332_v27 = vmax.f32 %v1962_v57, 0.0  ;;  %v2334_v4 = vmax.f32 %v2155_v31, 0.0  ;;  %v2160_v0 = vpop.f32.mrf.mxu0 }
 0x387   :  { %v2339_v8 = vmax.f32 %v1966_v18, 0.0  ;;  %v2341_v17 = vmax.f32 %v2159_v46, 0.0  ;;  %v1968_v7 = vadd.f32 %v1967_v58, %v7663_v56  ;;  %v2161_v45 = vadd.f32 %v2160_v0, %v7665_v43  ;;  %v1969_v55 = vpop.f32.mrf.mxu1 }
 0x388   :  { %v2563_v3 = vpack.c.bf16 %v2331_v5, %v2323_v49  ;;  %v2565_v13 = vpack.c.bf16 %v2333_v21, %v2325_v11  ;;  %v2564_v53 = vpack.c.bf16 %v2332_v27, %v2324_v37  ;;  %v2566_v2 = vpack.c.bf16 %v2334_v4, %v2326_v22  ;;  %v2162_v35 = vpop.f32.mrf.mxu0 }
 0x389   :  { %v2340_v44 = vmax.f32 %v1968_v7, 0.0  ;;  %v2342_v63 = vmax.f32 %v2161_v45, 0.0  ;;  %v1970_v24 = vadd.f32 %v1969_v55, %v7655_v14  ;;  %v2163_v38 = vadd.f32 %v2162_v35, %v7657_v29  ;;  %v1971_v16 = vpop.f32.mrf.mxu1 }
 0x38a   :  { %v7857_v41 = vmax.bf16 %v2739_v26, %v2563_v3  ;;  %v7859_v50 = vmax.bf16 %v2773_v61, %v2565_v13  ;;  %v7861_v1 = vmax.bf16 %v2756_v60, %v2564_v53  ;;  %v7863_v30 = vmax.bf16 %v2790_v23, %v2566_v2  ;;  %v2164_v25 = vpop.f32.mrf.mxu0 }
 0x38b   :  { %v2347_v48 = vmax.f32 %v1970_v24, 0.0  ;;  %v2349_v51 = vmax.f32 %v2163_v38, 0.0  ;;  %v1972_v52 = vadd.f32 %v1971_v16, %v7663_v56  ;;  %v2165_v49 = vadd.f32 %v2164_v25, %v7665_v43  ;;  %v1975_v11 = vpop.f32.mrf.mxu1 }
 0x38c   :  { %v2837_v20 = vmax.f32 %v7823_v32, %v2836_v42  ;;  %v2871_v26 = vmax.f32 %v7825_v9, %v2870_v12  ;;  %v3352_v61 = vsel %vm3351_vm0, %v3343_v59, %v7667_v40  ;;  %v3354_v47 = vsel %vm3351_vm0, %v3345_v36, %v7675_v39  ;;  %v2168_v60 = vpop.f32.mrf.mxu0 }
 0x38d   :  { %v7877_v23 = vpack.c.bf16 %v2347_v48, %v2339_v8  ;;  %v7879_v34 = vpack.c.bf16 %v2349_v51, %v2341_v17  ;;  %v2348_v6 = vmax.f32 %v1972_v52, 0.0  ;;  %v2350_v15 = vmax.f32 %v2165_v49, 0.0  ;;  %v1977_v10 = vpop.f32.mrf.mxu1 }
 0x38e   :  { %v2838_v19 = vrot.slane %v2837_v20, 1  ;;  %v8341_v32 = vpack.i.bf16 %v7673_v33, %v7673_v33  ;;  %v2872_v9 = vrot.slane %v2871_v26, 1  ;;  %v3338_v40 = vunpack.c.l.b16 %v2738_v62  ;;  %v2170_v12 = vpop.f32.mrf.mxu0 }
 0x38f   :  { %v2741_v39 = vmax.bf16 %v7857_v41, %v7877_v23  ;;  %v2775_v59 = vmax.bf16 %v7859_v50, %v7879_v34  ;;  %v2572_v36 = vpack.c.bf16 %v2348_v6, %v2340_v44  ;;  %v2574_v57 = vpack.c.bf16 %v2350_v15, %v2342_v63  ;;  %v1979_v31 = vpop.f32.mrf.mxu1  ;;  %v6194_v15 = vld [vmem:[#allocation7 + $0x4c4] ss:$16 sps:$4 sm:$0xff]  }
 0x390   :  { %v3336_v42 = vunpack.c.l.b16 %v8341_v32  ;;  %v2839_v28 = vmax.f32 %v2837_v20, %v2838_v19  ;;  %v2873_v37 = vmax.f32 %v2871_v26, %v2872_v9  ;;  %v1976_v33 = vadd.f32 %v1975_v11, %v7655_v14  ;;  %v2172_v18 = vpop.f32.mrf.mxu0  ;;  %v6186_v26 = vld [vmem:[#allocation7 + $0x4e0] ss:$16 sps:$4 sm:$0xff]  }
 0x391   :  { %v2169_v22 = vadd.f32 %v2168_v60, %v7657_v29  ;;  %v2758_v54 = vmax.bf16 %v7861_v1, %v2572_v36  ;;  %v2792_v62 = vmax.bf16 %v7863_v30, %v2574_v57  ;;  %v1978_v46 = vadd.f32 %v1977_v10, %v7663_v56  ;;  %v1981_v5 = vpop.f32.mrf.mxu1  ;;  %v6197_v10 = vld [vmem:[#allocation7 + $0x6c4] ss:$16 sps:$4 sm:$0xff]  }
 0x392   :  { %v2171_v58 = vadd.f32 %v2170_v12, %v7665_v43  ;;  %v2840_v21 = vpack.i.bf16 %v2839_v28, %v2839_v28  ;;  %v2874_v27 = vpack.i.bf16 %v2873_v37, %v2873_v37  ;;  %v7897_v4 = vpack.c.b16 %v3352_v61, %v3352_v61  ;;  %v2174_v8 = vpop.f32.mrf.mxu0  ;;  %v6189_v61 = vld [vmem:[#allocation7 + $0x6e0] ss:$16 sps:$4 sm:$0xff]  }
 0x393   :  { %v7899_v0 = vpack.c.b16 %v3354_v47, %v3354_v47  ;;  %v2355_v17 = vmax.f32 %v1976_v33, 0.0  ;;  %v2357_v7 = vmax.f32 %v2169_v22, 0.0  ;;  %v1980_v45 = vadd.f32 %v1979_v31, %v7655_v14  ;;  %v1985_v3 = vpop.f32.mrf.mxu1  ;;  %v6192_v37 = vld [vmem:[#allocation7 + $0x4c0] ss:$16 sps:$4 sm:$0xff]   ;;  %v6200_v22 = vld [vmem:[#allocation7 + $0x4a4] ss:$16 sps:$4 sm:$0xff]  }
 0x394   :  { %v2173_v55 = vadd.f32 %v2172_v18, %v7657_v29  ;;  %v3344_v13 = vunpack.c.l.b16 %v2840_v21  ;;  %v3346_v53 = vunpack.c.l.b16 %v2874_v27  ;;  %v1982_v2 = vadd.f32 %v1981_v5, %v7663_v56  ;;  %v2178_v44 = vpop.f32.mrf.mxu0  ;;  %v6195_v33 = vld [vmem:[#allocation7 + $0x6c0] ss:$16 sps:$4 sm:$0xff]   ;;  %v6203_v5 = vld [vmem:[#allocation7 + $0x6a4] ss:$16 sps:$4 sm:$0xff]  }
 0x395   :  { %v2175_v35 = vadd.f32 %v2174_v8, %v7665_v43  ;;  %v2356_v63 = vmax.f32 %v1978_v46, 0.0  ;;  %v2358_v24 = vmax.f32 %v2171_v58, 0.0  ;;  %v2363_v38 = vmax.f32 %v1980_v45, 0.0  ;;  %v1987_v41 = vpop.f32.mrf.mxu1 }
 0x396   :  { %v2365_v16 = vmax.f32 %v2173_v55, 0.0  ;;  %v3353_v50 = vsel %vm3351_vm0, %v3344_v13, %v3336_v42  ;;  %v3355_v1 = vsel %vm3351_vm0, %v3346_v53, %v3338_v40  ;;  %v2364_v30 = vmax.f32 %v1982_v2, 0.0  ;;  %v2180_v48 = vpop.f32.mrf.mxu0 }
 0x397   :  { %v2366_v25 = vmax.f32 %v2175_v35, 0.0  ;;  %v7907_v51 = vpack.c.b16 %v3353_v50, %v3353_v50  ;;  %v7909_v52 = vpack.c.b16 %v3355_v1, %v3355_v1  ;;  %v2579_v49 = vpack.c.bf16 %v2363_v38, %v2355_v17  ;;  %v1989_v20 = vpop.f32.mrf.mxu1  ;;  %v6201_v38 = vld [vmem:[#allocation7 + $0x6a0] ss:$16 sps:$4 sm:$0xff]  }
 0x398   :  { %v2581_v11 = vpack.c.bf16 %v2365_v16, %v2357_v7  ;;  %v2580_v47 = vpack.c.bf16 %v2364_v30, %v2356_v63  ;;  %v1986_v23 = vadd.f32 %v1985_v3, %v7655_v14  ;;  %v2179_v34 = vadd.f32 %v2178_v44, %v7657_v29  ;;  %v2182_v6 = vpop.f32.mrf.mxu0  ;;  %v6206_v30 = vld [vmem:[#allocation7 + $0x484] ss:$16 sps:$4 sm:$0xff]  }
 0x399   :  { %v2582_v60 = vpack.c.bf16 %v2366_v25, %v2358_v24  ;;  %4688 = vmatprep.mubr.bf16.mxu1 %v7907_v51  ;;  %4729 = vmatprep.mubr.bf16.mxu0 %v7909_v52  ;;  %v7915_v19 = vmax.bf16 %v2741_v39, %v2579_v49  ;;  %v1988_v42 = vadd.f32 %v1987_v41, %v7663_v56  ;;  %v1991_v9 = vpop.f32.mrf.mxu1  ;;  %v6198_v24 = vld [vmem:[#allocation7 + $0x4a0] ss:$16 sps:$4 sm:$0xff]   ;;  %v6209_v25 = vld [vmem:[#allocation7 + $0x684] ss:$16 sps:$4 sm:$0xff]  }
 0x39a   :  { %v7917_v32 = vmax.bf16 %v2775_v59, %v2581_v11  ;;  %4689 = vmatmul.mubr.bf16.vlgmr.msra.gmra.mxu1 %v7897_v4  ;;  %4730 = vmatmul.mubr.bf16.vlgmr.msra.gmra.mxu0 %v7899_v0  ;;  %v7922_v40 = vmax.bf16 %v2758_v54, %v2580_v47  ;;  %v2181_v36 = vadd.f32 %v2180_v48, %v7665_v43  ;;  %v2184_v57 = vpop.f32.mrf.mxu0  ;;  %v2371_v18 = vmax.f32 %v1986_v23, 0.0 }
 0x39b   :  { %v7924_v12 = vmax.bf16 %v2792_v62, %v2582_v60  ;;  %v1990_v31 = vadd.f32 %v1989_v20, %v7655_v14  ;;  %v2183_v39 = vadd.f32 %v2182_v6, %v7657_v29  ;;  %v1992_v59 = vadd.f32 %v1991_v9, %v7663_v56  ;;  %v1995_v28 = vpop.f32.mrf.mxu1  ;;  %4739 = vmatpush1.bf16.msra.mxu1 %v6186_v26 }
 0x39c   :  { %4780 = vmatpush1.bf16.msra.mxu0 %v6189_v61  ;;  %v2373_v54 = vmax.f32 %v2179_v34, 0.0  ;;  %v2372_v46 = vmax.f32 %v1988_v42, 0.0  ;;  %v2185_v62 = vadd.f32 %v2184_v57, %v7665_v43  ;;  %v2188_v58 = vpop.f32.mrf.mxu0  ;;  %4740 = vmatprep.subr.bf16.mxu1 %v6194_v15  ;;  %v2374_v21 = vmax.f32 %v2181_v36, 0.0 }
 0x39d   :  { %4781 = vmatprep.subr.bf16.mxu0 %v6197_v10  ;;  %v2379_v27 = vmax.f32 %v1990_v31, 0.0  ;;  %v2381_v8 = vmax.f32 %v2183_v39, 0.0  ;;  %v2380_v17 = vmax.f32 %v1992_v59, 0.0  ;;  %v1997_v7 = vpop.f32.mrf.mxu1  ;;  %v1996_v55 = vadd.f32 %v1995_v28, %v7655_v14  ;;  %v6215_v31 = vld [vmem:[#allocation7 + $0x664] ss:$16 sps:$4 sm:$0xff]  }
 0x39e   :  { %v2382_v45 = vmax.f32 %v2185_v62, 0.0  ;;  %v2189_v3 = vadd.f32 %v2188_v58, %v7657_v29  ;;  %v1998_v13 = vadd.f32 %v1997_v7, %v7663_v56  ;;  %v2190_v53 = vpop.f32.mrf.mxu0 }
 0x39f   :  { %v2587_v2 = vpack.c.bf16 %v2379_v27, %v2371_v18  ;;  %v2589_v35 = vpack.c.bf16 %v2381_v8, %v2373_v54  ;;  %v2588_v44 = vpack.c.bf16 %v2380_v17, %v2372_v46  ;;  %v1999_v63 = vpop.f32.mrf.mxu1  ;;  %4741 = vmatpush1.bf16.msra.mxu1 %v6192_v37  ;;  %v2191_v41 = vadd.f32 %v2190_v53, %v7665_v43  ;;  %v6213_v27 = vld [vmem:[#allocation7 + $0x660] ss:$16 sps:$4 sm:$0xff]  }
 0x3a0   :  { %4782 = vmatpush1.bf16.msra.mxu0 %v6195_v33  ;;  %v2590_v16 = vpack.c.bf16 %v2382_v45, %v2374_v21  ;;  %v2000_v50 = vadd.f32 %v1999_v63, %v7655_v14  ;;  %v2192_v1 = vpop.f32.mrf.mxu0  ;;  %4742 = vmatprep.subr.bf16.mxu1 %v6200_v22  ;;  %v2387_v47 = vmax.f32 %v1996_v55, 0.0  ;;  %v2389_v6 = vmax.f32 %v2189_v3, 0.0  ;;  %v6210_v21 = vld [vmem:[#allocation7 + $0x460] ss:$16 sps:$4 sm:$0xff]   ;;  %v6218_v55 = vld [vmem:[#allocation7 + $0x444] ss:$16 sps:$4 sm:$0xff]  }
 0x3a1   :  { %4783 = vmatprep.subr.bf16.mxu0 %v6203_v5  ;;  %v2743_v48 = vmax.bf16 %v7915_v19, %v2587_v2  ;;  %v2777_v49 = vmax.bf16 %v7917_v32, %v2589_v35  ;;  %v2760_v11 = vmax.bf16 %v7922_v40, %v2588_v44  ;;  %v2193_v20 = vadd.f32 %v2192_v1, %v7657_v29  ;;  %v2001_v26 = vpop.f32.mrf.mxu1  ;;  %v6204_v19 = vld [vmem:[#allocation7 + $0x480] ss:$16 sps:$4 sm:$0xff]   ;;  %v6221_v3 = vld [vmem:[#allocation7 + $0x644] ss:$16 sps:$4 sm:$0xff]  }
 0x3a2   :  { %v2794_v61 = vmax.bf16 %v7924_v12, %v2590_v16  ;;  %v2395_v60 = vmax.f32 %v2000_v50, 0.0  ;;  %v2002_v23 = vadd.f32 %v2001_v26, %v7663_v56  ;;  %v2194_v34 = vpop.f32.mrf.mxu0  ;;  %v6207_v32 = vld [vmem:[#allocation7 + $0x680] ss:$16 sps:$4 sm:$0xff]   ;;  %v2388_v9 = vmax.f32 %v1998_v13, 0.0  ;;  %v6212_v12 = vld [vmem:[#allocation7 + $0x464] ss:$16 sps:$4 sm:$0xff]  }
 0x3a3   :  { %v2397_v15 = vmax.f32 %v2193_v20, 0.0  ;;  %v2195_v10 = vadd.f32 %v2194_v34, %v7665_v43  ;;  %v2005_v42 = vpop.f32.mrf.mxu1  ;;  %4743 = vmatpush1.bf16.msra.mxu1 %v6198_v24  ;;  %v2390_v39 = vmax.f32 %v2191_v41, 0.0  ;;  %v6224_v26 = vld [vmem:[#allocation7 + $0x424] ss:$16 sps:$4 sm:$0xff]  }
 0x3a4   :  { %4784 = vmatpush1.bf16.msra.mxu0 %v6201_v38  ;;  %v2595_v40 = vpack.c.bf16 %v2395_v60, %v2387_v47  ;;  %v2396_v36 = vmax.f32 %v2002_v23, 0.0  ;;  %v2198_v57 = vpop.f32.mrf.mxu0  ;;  %4744 = vmatprep.subr.bf16.mxu1 %v6206_v30  ;;  %v2006_v18 = vadd.f32 %v2005_v42, %v7655_v14  ;;  %v6216_v30 = vld [vmem:[#allocation7 + $0x440] ss:$16 sps:$4 sm:$0xff]  }
 0x3a5   :  { %4785 = vmatprep.subr.bf16.mxu0 %v6209_v25  ;;  %v2597_v59 = vpack.c.bf16 %v2397_v15, %v2389_v6  ;;  %v2398_v28 = vmax.f32 %v2195_v10, 0.0  ;;  %v2007_v37 = vpop.f32.mrf.mxu1  ;;  %v2199_v58 = vadd.f32 %v2198_v57, %v7657_v29  ;;  %v6219_v25 = vld [vmem:[#allocation7 + $0x640] ss:$16 sps:$4 sm:$0xff]  }
 0x3a6   :  { %v2744_v33 = vmax.bf16 %v2743_v48, %v2595_v40  ;;  %v2596_v22 = vpack.c.bf16 %v2396_v36, %v2388_v9  ;;  %v2200_v54 = vpop.f32.mrf.mxu0  ;;  %v2008_v17 = vadd.f32 %v2007_v37, %v7663_v56  ;;  %v2403_v44 = vmax.f32 %v2006_v18, 0.0  ;;  %v6222_v9 = vld [vmem:[#allocation7 + $0x420] ss:$16 sps:$4 sm:$0xff]  }
 0x3a7   :  { %v2778_v46 = vmax.bf16 %v2777_v49, %v2597_v59  ;;  %v2598_v62 = vpack.c.bf16 %v2398_v28, %v2390_v39  ;;  %v2009_v5 = vpop.f32.mrf.mxu1  ;;  %4745 = vmatpush1.bf16.msra.mxu1 %v6204_v19  ;;  %v2201_v53 = vadd.f32 %v2200_v54, %v7665_v43  ;;  %v2405_v16 = vmax.f32 %v2199_v58, 0.0  ;;  %v6225_v40 = vld [vmem:[#allocation7 + $0x620] ss:$16 sps:$4 sm:$0xff]   ;;  %v6236_v54 = vld [vmem:[#allocation7 + $0x5e4] ss:$16 sps:$4 sm:$0xff]  }
 0x3a8   :  { %4786 = vmatpush1.bf16.msra.mxu0 %v6207_v32  ;;  %v2761_v8 = vmax.bf16 %v2760_v11, %v2596_v22  ;;  %v2010_v7 = vadd.f32 %v2009_v5, %v7655_v14  ;;  %v2202_v45 = vpop.f32.mrf.mxu0  ;;  %4746 = vmatprep.subr.bf16.mxu1 %v6212_v12  ;;  %v2404_v48 = vmax.f32 %v2008_v17, 0.0  ;;  %v6230_v12 = vld [vmem:[#allocation7 + $0x404] ss:$16 sps:$4 sm:$0xff]   ;;  %v6231_v22 = vld [vmem:[#allocation7 + $0x600] ss:$16 sps:$4 sm:$0xff]  }
 0x3a9   :  { %4787 = vmatprep.subr.bf16.mxu0 %v6215_v31  ;;  %v2795_v13 = vmax.bf16 %v2794_v61, %v2598_v62  ;;  %v2203_v2 = vadd.f32 %v2202_v45, %v7657_v29  ;;  %v2011_v35 = vpop.f32.mrf.mxu1  ;;  %v6227_v61 = vld [vmem:[#allocation7 + $0x624] ss:$16 sps:$4 sm:$0xff]   ;;  %v2406_v47 = vmax.f32 %v2201_v53, 0.0 }
 0x3aa   :  { %v2411_v63 = vmax.f32 %v2010_v7, 0.0  ;;  %v2012_v24 = vadd.f32 %v2011_v35, %v7663_v56  ;;  %v2204_v38 = vpop.f32.mrf.mxu0  ;;  %v6233_v31 = vld [vmem:[#allocation7 + $0x604] ss:$16 sps:$4 sm:$0xff]  }
 0x3ab   :  { %v2413_v41 = vmax.f32 %v2203_v2, 0.0  ;;  %v2205_v50 = vadd.f32 %v2204_v38, %v7665_v43  ;;  %v7951_v1 = vpop.f32.mrf.mxu1  ;;  %4747 = vmatpush1.bf16.msra.mxu1 %v6210_v21  ;;  %v6234_v21 = vld [vmem:[#allocation7 + $0x5e0] ss:$16 sps:$4 sm:$0xff]   ;;  %v6242_v45 = vld [vmem:[#allocation7 + $0x5c4] ss:$16 sps:$4 sm:$0xff]  }
 0x3ac   :  { %4788 = vmatpush1.bf16.msra.mxu0 %v6213_v27  ;;  %v2603_v49 = vpack.c.bf16 %v2411_v63, %v2403_v44  ;;  %v2412_v11 = vmax.f32 %v2012_v24, 0.0  ;;  %v7953_v20 = vpop.f32.mrf.mxu0  ;;  %4748 = vmatprep.subr.bf16.mxu1 %v6218_v55  ;;  %v6237_v27 = vld [vmem:[#allocation7 + $0x7e0] ss:$16 sps:$4 sm:$0xff]   ;;  %v6245_v55 = vld [vmem:[#allocation7 + $0x7c4] ss:$16 sps:$4 sm:$0xff]  }
 0x3ad   :  { %4789 = vmatprep.subr.bf16.mxu0 %v6221_v3  ;;  %v2605_v60 = vpack.c.bf16 %v2413_v41, %v2405_v16  ;;  %v2414_v23 = vmax.f32 %v2205_v50, 0.0  ;;  %v7955_v34 = vpop.f32.mrf.mxu1  ;;  %v6240_v24 = vld [vmem:[#allocation7 + $0x5c0] ss:$16 sps:$4 sm:$0xff]  }
 0x3ae   :  { %v2745_v6 = vmax.bf16 %v2744_v33, %v2603_v49  ;;  %v2604_v15 = vpack.c.bf16 %v2412_v11, %v2404_v48  ;;  %v7957_v10 = vpop.f32.mrf.mxu0  ;;  %v6228_v33 = vld [vmem:[#allocation7 + $0x400] ss:$16 sps:$4 sm:$0xff]   ;;  %v6251_v48 = vld [vmem:[#allocation7 + $0x7a4] ss:$16 sps:$4 sm:$0xff]   ;;  %v2016_v49 = vadd.f32 %v7951_v1, %v7655_v14  ;;  %v2209_v11 = vadd.f32 %v7953_v20, %v7657_v29 }
 0x3af   :  { %v7959_v42 = vmax.bf16 %v2778_v46, %v2605_v60  ;;  %v2606_v19 = vpack.c.bf16 %v2414_v23, %v2406_v47  ;;  %v2019_v32 = vpop.f32.mrf.mxu1  ;;  %4749 = vmatpush1.bf16.msra.mxu1 %v6216_v30  ;;  %v6239_v46 = vld [vmem:[#allocation7 + $0x7e4] ss:$16 sps:$4 sm:$0xff]   ;;  %v6243_v38 = vld [vmem:[#allocation7 + $0x7c0] ss:$16 sps:$4 sm:$0xff]   ;;  %v2018_v60 = vadd.f32 %v7955_v34, %v7663_v56 }
 0x3b0   :  { %4790 = vmatpush1.bf16.msra.mxu0 %v6219_v25  ;;  %v2762_v36 = vmax.bf16 %v2761_v8, %v2604_v15  ;;  %v2212_v57 = vpop.f32.mrf.mxu0  ;;  %4750 = vmatprep.subr.bf16.mxu1 %v6224_v26  ;;  %v2746_v8 = vunpack.i.l.bf16 %v2745_v6  ;;  %v2747_v17 = vunpack.i.h.bf16 %v2745_v6  ;;  %v6248_v25 = vld [vmem:[#allocation7 + $0x5a4] ss:$16 sps:$4 sm:$0xff]   ;;  %v2020_v26 = vadd.f32 %v2019_v32, %v7655_v14  ;;  %v6249_v32 = vld [vmem:[#allocation7 + $0x7a0] ss:$16 sps:$4 sm:$0xff]  }
 0x3b1   :  { %4791 = vmatprep.subr.bf16.mxu0 %v6227_v61  ;;  %v7961_v39 = vmax.bf16 %v2795_v13, %v2606_v19  ;;  %v2021_v59 = vpop.f32.mrf.mxu1  ;;  %v2780_v13 = vunpack.i.l.bf16 %v7959_v42  ;;  %v2781_v53 = vunpack.i.h.bf16 %v7959_v42  ;;  %v2213_v23 = vadd.f32 %v2212_v57, %v7657_v29  ;;  %v6246_v19 = vld [vmem:[#allocation7 + $0x5a0] ss:$16 sps:$4 sm:$0xff]   ;;  %v6257_v57 = vld [vmem:[#allocation7 + $0x784] ss:$16 sps:$4 sm:$0xff]  }
 0x3b2   :  { %v7963_v28 = vpop.f32.mrf.mxu0  ;;  %v2763_v35 = vunpack.i.l.bf16 %v2762_v36  ;;  %v2764_v44 = vunpack.i.h.bf16 %v2762_v36  ;;  %v2748_v16 = vmax.f32 %v2746_v8, %v2747_v17  ;;  %v7999_v42 = vadd.f32 %v7957_v10, %v7665_v43  ;;  %v6254_v36 = vld [vmem:[#allocation7 + $0x584] ss:$16 sps:$4 sm:$0xff]  }
 0x3b3   :  { %v7965_v37 = vpop.f32.mrf.mxu1  ;;  %4751 = vmatpush1.bf16.msra.mxu1 %v6222_v9  ;;  %v2797_v41 = vunpack.i.l.bf16 %v7961_v39  ;;  %v2798_v50 = vunpack.i.h.bf16 %v7961_v39  ;;  %v2782_v47 = vmax.f32 %v2780_v13, %v2781_v53  ;;  %v2022_v1 = vadd.f32 %v2021_v59, %v7663_v56 }
 0x3b4   :  { %4792 = vmatpush1.bf16.msra.mxu0 %v6225_v40  ;;  %v7967_v18 = vpop.f32.mrf.mxu0  ;;  %4752 = vmatprep.subr.bf16.mxu1 %v6230_v12  ;;  %v2765_v15 = vmax.f32 %v2763_v35, %v2764_v44  ;;  %v2749_v9 = vrot.slane %v2748_v16, 4  ;;  %v2419_v12 = vmax.f32 %v2016_v49, 0.0  ;;  %v2427_v10 = vmax.f32 %v2020_v26, 0.0 }
 0x3b5   :  { %4793 = vmatprep.subr.bf16.mxu0 %v6233_v31  ;;  %v7969_v62 = vpop.f32.mrf.mxu1  ;;  %v2799_v40 = vmax.f32 %v2797_v41, %v2798_v50  ;;  %v2421_v31 = vmax.f32 %v2209_v11, 0.0  ;;  %v2215_v39 = vadd.f32 %v7963_v28, %v7665_v43  ;;  %v2422_v17 = vmax.f32 %v7999_v42, 0.0  ;;  %v6255_v28 = vld [vmem:[#allocation7 + $0x780] ss:$16 sps:$4 sm:$0xff]  }
 0x3b6   :  { %v7971_v58 = vpop.f32.mrf.mxu0  ;;  %v2766_v8 = vrot.slane %v2765_v15, 4  ;;  %v8015_v53 = vmax.f32 %v2748_v16, %v2749_v9  ;;  %v2026_v44 = vadd.f32 %v7965_v37, %v7655_v14  ;;  %v8023_v41 = vpack.c.bf16 %v2427_v10, %v2419_v12 }
 0x3b7   :  { %v2029_v5 = vpop.f32.mrf.mxu1  ;;  %4753 = vmatpush1.bf16.msra.mxu1 %v6228_v33  ;;  %v2783_v33 = vrot.slane %v2782_v47, 4  ;;  %v2800_v35 = vrot.slane %v2799_v40, 4  ;;  %v2430_v50 = vmax.f32 %v2215_v39, 0.0  ;;  %v2219_v16 = vadd.f32 %v7967_v18, %v7657_v29 }
 0x3b8   :  { %4794 = vmatpush1.bf16.msra.mxu0 %v6231_v22  ;;  %v2222_v7 = vpop.f32.mrf.mxu0  ;;  %4754 = vmatprep.subr.bf16.mxu1 %v6236_v54  ;;  %v2420_v22 = vmax.f32 %v2018_v60, 0.0  ;;  %v2429_v54 = vmax.f32 %v2213_v23, 0.0  ;;  %v2028_v49 = vadd.f32 %v7969_v62, %v7663_v56  ;;  %v8039_v60 = vmax.f32 %v2765_v15, %v2766_v8 }
 0x3b9   :  { %4795 = vmatprep.subr.bf16.mxu0 %v6239_v46  ;;  %v7973_v3 = vpop.f32.mrf.mxu1  ;;  %v2030_v46 = vadd.f32 %v2029_v5, %v7655_v14  ;;  %v8031_v37 = vmax.f32 %v2782_v47, %v2783_v33  ;;  %v2221_v18 = vadd.f32 %v7971_v58, %v7665_v43  ;;  %v6258_v47 = vld [vmem:[#allocation7 + $0x560] ss:$16 sps:$4 sm:$0xff]   ;;  %v8051_v58 = vpack.c.bf16 %v2430_v50, %v2422_v17 }
 0x3ba   :  { %v7977_v2 = vpop.f32.mrf.mxu0  ;;  %v2032_v5 = vadd.f32 %v7973_v3, %v7663_v56  ;;  %v8033_v3 = vpack.c.bf16 %v2429_v54, %v2421_v31  ;;  %v2437_v12 = vmax.f32 %v2219_v16, 0.0  ;;  %v2436_v39 = vmax.f32 %v2028_v49, 0.0 }
 0x3bb   :  { %v7979_v63 = vpop.f32.mrf.mxu1  ;;  %4755 = vmatpush2.bf16.msra.mxu1 %v6234_v21  ;;  %v2443_v11 = vmax.f32 %v2030_v46, 0.0  ;;  %v2438_v46 = vmax.f32 %v2221_v18, 0.0 }
 0x3bc   :  { %4796 = vmatpush2.bf16.msra.mxu0 %v6237_v27  ;;  %v7983_v30 = vpop.f32.mrf.mxu0  ;;  %4756 = vmatprep.subr.bf16.mxu1 %v6242_v45  ;;  %v6252_v27 = vld [vmem:[#allocation7 + $0x580] ss:$16 sps:$4 sm:$0xff]   ;;  %v2428_v45 = vmax.f32 %v2022_v1, 0.0  ;;  %v2444_v62 = vmax.f32 %v2032_v5, 0.0  ;;  %v8049_v9 = vadd.f32 %v7979_v63, %v7655_v14 }
 0x3bd   :  { %4797 = vmatprep.subr.bf16.mxu0 %v6245_v55  ;;  %v7990_v61 = vpop.f32.mrf.mxu1  ;;  %v2223_v55 = vadd.f32 %v2222_v7, %v7657_v29  ;;  %v6263_v7 = vld [vmem:[#allocation7 + $0x764] ss:$16 sps:$4 sm:$0xff]   ;;  %v6261_v1 = vld [vmem:[#allocation7 + $0x760] ss:$16 sps:$4 sm:$0xff]   ;;  %v2229_v10 = vadd.f32 %v7983_v30, %v7657_v29 }
 0x3be   :  { %v7995_v6 = vpop.f32.mrf.mxu0  ;;  %v8041_v23 = vpack.c.bf16 %v2428_v45, %v2420_v22  ;;  %v6264_v45 = vld [vmem:[#allocation7 + $0x540] ss:$16 sps:$4 sm:$0xff]  }
 0x3bf   :  { %v8002_v20 = vpop.f32.mrf.mxu1  ;;  %4757 = vmatpush2.bf16.msra.mxu1 %v6240_v24 }
 0x3c0   :  { %4798 = vmatpush2.bf16.msra.mxu0 %v6243_v38  ;;  %v8004_v34 = vpop.f32.mrf.mxu0  ;;  %4758 = vmatprep.subr.bf16.mxu1 %v6248_v25  ;;  %v6260_v38 = vld [vmem:[#allocation7 + $0x564] ss:$16 sps:$4 sm:$0xff]   ;;  %v2225_v25 = vadd.f32 %v7977_v2, %v7665_v43  ;;  %v2445_v2 = vmax.f32 %v2223_v55, 0.0  ;;  %v2040_v63 = vadd.f32 %v8002_v20, %v7655_v14  ;;  %v6267_v55 = vld [vmem:[#allocation7 + $0x740] ss:$16 sps:$4 sm:$0xff]   ;;  %v2451_v20 = vmax.f32 %v8049_v9, 0.0 }
 0x3c1   :  { %4799 = vmatprep.subr.bf16.mxu0 %v6251_v48  ;;  %v8008_v59 = vpop.f32.mrf.mxu1  ;;  %v2233_v22 = vadd.f32 %v8004_v34, %v7657_v29  ;;  %v2038_v34 = vadd.f32 %v7990_v61, %v7663_v56 }
 0x3c2   :  { %v2234_v21 = vpop.f32.mrf.mxu0  ;;  %v2446_v31 = vmax.f32 %v2225_v25, 0.0  ;;  %v2042_v8 = vadd.f32 %v8008_v59, %v7663_v56  ;;  %v6272_v59 = vld [vmem:[#allocation7 + $0x524] ss:$16 sps:$4 sm:$0xff]   ;;  %v2459_v25 = vmax.f32 %v2040_v63, 0.0 }
 0x3c3   :  { %v8013_v13 = vpop.f32.mrf.mxu1  ;;  %4759 = vmatpush2.bf16.msra.mxu1 %v6246_v19  ;;  %v8045_v19 = vmax.f32 %v2799_v40, %v2800_v35  ;;  %v2235_v17 = vadd.f32 %v2234_v21, %v7665_v43  ;;  %v2231_v35 = vadd.f32 %v7995_v6, %v7665_v43  ;;  %v6275_v21 = vld [vmem:[#allocation7 + $0x724] ss:$16 sps:$4 sm:$0xff]   ;;  %v2461_v6 = vmax.f32 %v2233_v22, 0.0 }
 0x3c4   :  { %4800 = vmatpush2.bf16.msra.mxu0 %v6249_v32  ;;  %v8021_v24 = vpop.f32.mrf.mxu0  ;;  %4760 = vmatprep.subr.bf16.mxu1 %v6254_v36  ;;  %v2435_v32 = vmax.f32 %v2026_v44, 0.0  ;;  %v6266_v36 = vld [vmem:[#allocation7 + $0x544] ss:$16 sps:$4 sm:$0xff]   ;;  %v8077_v5 = vpack.c.bf16 %v2446_v31, %v2438_v46  ;;  %v2046_v49 = vadd.f32 %v8013_v13, %v7655_v14  ;;  %v2627_v63 = vpack.c.bf16 %v2459_v25, %v2451_v20  ;;  %v6284_v20 = vld [vmem:[#allocation7 + $0xec] ss:$16 sps:$4 sm:$0xff]  }
 0x3c5   :  { %4801 = vmatprep.subr.bf16.mxu0 %v6257_v57  ;;  %v8029_v48 = vpop.f32.mrf.mxu1  ;;  %v6269_v57 = vld [vmem:[#allocation7 + $0x744] ss:$16 sps:$4 sm:$0xff]   ;;  %v2454_v9 = vmax.f32 %v2231_v35, 0.0 }
 0x3c6   :  { %v8037_v26 = vpop.f32.mrf.mxu0  ;;  %v8055_v33 = vpack.c.bf16 %v2443_v11, %v2435_v32  ;;  %v6270_v32 = vld [vmem:[#allocation7 + $0x520] ss:$16 sps:$4 sm:$0xff]   ;;  %v2048_v13 = vadd.f32 %v8029_v48, %v7663_v56  ;;  %v2467_v22 = vmax.f32 %v2046_v49, 0.0 }
 0x3c7   :  { %v2049_v42 = vpop.f32.mrf.mxu1  ;;  %4761 = vmatpush2.bf16.msra.mxu1 %v6252_v27  ;;  %v8061_v27 = vpack.c.bf16 %v2445_v2, %v2437_v12  ;;  %v2460_v2 = vmax.f32 %v2042_v8, 0.0 }
 0x3c8   :  { %4802 = vmatpush2.bf16.msra.mxu0 %v6255_v28  ;;  %v2242_v15 = vpop.f32.mrf.mxu0  ;;  %4762 = vmatprep.subr.bf16.mxu1 %v6260_v38  ;;  %v8068_v28 = vpack.c.bf16 %v2444_v62, %v2436_v39  ;;  %v2453_v38 = vmax.f32 %v2229_v10, 0.0  ;;  %v2875_v61 = vmax.bf16 %v8055_v33, %v8023_v41  ;;  %v6273_v41 = vld [vmem:[#allocation7 + $0x720] ss:$16 sps:$4 sm:$0xff]   ;;  %v2452_v62 = vmax.f32 %v2038_v34, 0.0 }
 0x3c9   :  { %4803 = vmatprep.subr.bf16.mxu0 %v6263_v7  ;;  %v2051_v40 = vpop.f32.mrf.mxu1  ;;  %v2050_v7 = vadd.f32 %v2049_v42, %v7655_v14  ;;  %v2243_v50 = vadd.f32 %v2242_v15, %v7657_v29  ;;  %v2909_v18 = vmax.bf16 %v8061_v27, %v8033_v3  ;;  %v2239_v42 = vadd.f32 %v8021_v24, %v7657_v29  ;;  %v6278_v3 = vld [vmem:[#allocation7 + $0x504] ss:$16 sps:$4 sm:$0xff]  }
 0x3ca   :  { %v2244_v54 = vpop.f32.mrf.mxu0  ;;  %v2052_v15 = vadd.f32 %v2051_v40, %v7663_v56  ;;  %v2241_v24 = vadd.f32 %v8037_v26, %v7665_v43  ;;  %v2892_v33 = vmax.bf16 %v8068_v28, %v8041_v23  ;;  %v2629_v48 = vpack.c.bf16 %v2461_v6, %v2453_v38  ;;  %v6276_v26 = vld [vmem:[#allocation7 + $0x500] ss:$16 sps:$4 sm:$0xff]  }
 0x3cb   :  { %v8066_v30 = vpop.f32.mrf.mxu1  ;;  %4763 = vmatpush2.bf16.msra.mxu1 %v6258_v47  ;;  %v2462_v47 = vmax.f32 %v2235_v17, 0.0  ;;  %v2475_v12 = vmax.f32 %v2050_v7, 0.0  ;;  %v2477_v31 = vmax.f32 %v2243_v50, 0.0  ;;  %v2245_v10 = vadd.f32 %v2244_v54, %v7665_v43 }
 0x3cc   :  { %4804 = vmatpush2.bf16.msra.mxu0 %v6261_v1  ;;  %v8075_v44 = vpop.f32.mrf.mxu0  ;;  %4764 = vmatprep.subr.bf16.mxu1 %v6266_v36  ;;  %v2628_v46 = vpack.c.bf16 %v2460_v2, %v2452_v62  ;;  %v2469_v8 = vmax.f32 %v2239_v42, 0.0  ;;  %v2926_v54 = vmax.bf16 %v8077_v5, %v8051_v58  ;;  %v2468_v34 = vmax.f32 %v2048_v13, 0.0 }
 0x3cd   :  { %4805 = vmatprep.subr.bf16.mxu0 %v6269_v57  ;;  %v8081_v16 = vpop.f32.mrf.mxu1  ;;  %v6281_v57 = vld [vmem:[#allocation7 + $0x704] ss:$16 sps:$4 sm:$0xff]   ;;  %v2630_v27 = vpack.c.bf16 %v2462_v47, %v2454_v9  ;;  %v2476_v35 = vmax.f32 %v2052_v15, 0.0  ;;  %v2056_v23 = vadd.f32 %v8066_v30, %v7655_v14  ;;  %v2635_v38 = vpack.c.bf16 %v2475_v12, %v2467_v22 }
 0x3ce   :  { %v8087_v11 = vpop.f32.mrf.mxu0  ;;  %v8106_v7 = vpack.c.bf16 %v2477_v31, %v2469_v8  ;;  %v2478_v50 = vmax.f32 %v2245_v10, 0.0  ;;  %v2876_v6 = vmax.bf16 %v2875_v61, %v2627_v63  ;;  %v8108_v49 = vmax.bf16 %v2909_v18, %v2629_v48 }
 0x3cf   :  { %v2059_v1 = vpop.f32.mrf.mxu1  ;;  %4765 = vmatpush2.bf16.msra.mxu1 %v6264_v45  ;;  %v2249_v58 = vadd.f32 %v8075_v44, %v7657_v29  ;;  %v8113_v2 = vmax.bf16 %v2892_v33, %v2628_v46  ;;  %v8115_v47 = vmax.bf16 %v2926_v54, %v2630_v27  ;;  %v2483_v61 = vmax.f32 %v2056_v23, 0.0 }
 0x3d0   :  { %4806 = vmatpush2.bf16.msra.mxu0 %v6267_v55  ;;  %v2252_v36 = vpop.f32.mrf.mxu0  ;;  %4766 = vmatprep.subr.bf16.mxu1 %v6272_v59  ;;  %v2060_v17 = vadd.f32 %v2059_v1, %v7655_v14  ;;  %v6279_v55 = vld [vmem:[#allocation7 + $0x700] ss:$16 sps:$4 sm:$0xff]   ;;  %v6287_v59 = vld [vmem:[#allocation7 + $0x2ec] ss:$16 sps:$4 sm:$0xff]   ;;  %v2058_v18 = vadd.f32 %v8081_v16, %v7663_v56  ;;  %v2877_v9 = vmax.bf16 %v2876_v6, %v2635_v38 }
 0x3d1   :  { %4807 = vmatprep.subr.bf16.mxu0 %v6275_v21  ;;  %v2061_v39 = vpop.f32.mrf.mxu1  ;;  %v2470_v21 = vmax.f32 %v2241_v24, 0.0  ;;  %v2253_v5 = vadd.f32 %v2252_v36, %v7657_v29  ;;  %v2911_v13 = vmax.bf16 %v8108_v49, %v8106_v7  ;;  %v2251_v24 = vadd.f32 %v8087_v11, %v7665_v43 }
 0x3d2   :  { %v2254_v40 = vpop.f32.mrf.mxu0  ;;  %v2491_v42 = vmax.f32 %v2060_v17, 0.0  ;;  %v2062_v1 = vadd.f32 %v2061_v39, %v7663_v56  ;;  %v2484_v17 = vmax.f32 %v2058_v18, 0.0 }
 0x3d3   :  { %v2065_v45 = vpop.f32.mrf.mxu1  ;;  %4767 = vmatpush2.bf16.msra.mxu1 %v6270_v32  ;;  %v2255_v44 = vadd.f32 %v2254_v40, %v7665_v43  ;;  %v2638_v15 = vpack.c.bf16 %v2478_v50, %v2470_v21  ;;  %v2493_v12 = vmax.f32 %v2253_v5, 0.0 }
 0x3d4   :  { %4808 = vmatpush2.bf16.msra.mxu0 %v6273_v41  ;;  %v2258_v28 = vpop.f32.mrf.mxu0  ;;  %4768 = vmatprep.subr.bf16.mxu1 %v6278_v3  ;;  %v8118_v41 = vpack.c.bf16 %v2476_v35, %v2468_v34  ;;  %v2643_v10 = vpack.c.bf16 %v2491_v42, %v2483_v61  ;;  %v2492_v39 = vmax.f32 %v2062_v1, 0.0  ;;  %v2066_v33 = vadd.f32 %v2065_v45, %v7655_v14 }
 0x3d5   :  { %4809 = vmatprep.subr.bf16.mxu0 %v6281_v57  ;;  %v2067_v25 = vpop.f32.mrf.mxu1  ;;  %v2485_v57 = vmax.f32 %v2249_v58, 0.0  ;;  %v2494_v40 = vmax.f32 %v2255_v44, 0.0  ;;  %v2259_v46 = vadd.f32 %v2258_v28, %v7657_v29  ;;  %v2928_v8 = vmax.bf16 %v8115_v47, %v2638_v15 }
 0x3d6   :  { %v2260_v30 = vpop.f32.mrf.mxu0  ;;  %v2894_v22 = vmax.bf16 %v8113_v2, %v8118_v41  ;;  %v2486_v45 = vmax.f32 %v2251_v24, 0.0  ;;  %v2644_v21 = vpack.c.bf16 %v2492_v39, %v2484_v17  ;;  %v2499_v28 = vmax.f32 %v2066_v33, 0.0 }
 0x3d7   :  { %v2069_v32 = vpop.f32.mrf.mxu1  ;;  %4769 = vmatpush2.bf16.msra.mxu1 %v6276_v26  ;;  %v2068_v26 = vadd.f32 %v2067_v25, %v7663_v56  ;;  %v2645_v34 = vpack.c.bf16 %v2493_v12, %v2485_v57  ;;  %v2261_v35 = vadd.f32 %v2260_v30, %v7665_v43  ;;  %v2501_v6 = vmax.f32 %v2259_v46, 0.0 }
 0x3d8   :  { %4810 = vmatpush2.bf16.msra.mxu0 %v6279_v55  ;;  %v2262_v62 = vpop.f32.mrf.mxu0  ;;  %4820 = vmatprep.subr.bf16.mxu1 %v6284_v20  ;;  %v2070_v36 = vadd.f32 %v2069_v32, %v7655_v14  ;;  %v2646_v50 = vpack.c.bf16 %v2494_v40, %v2486_v45 }
 0x3d9   :  { %4861 = vmatprep.subr.bf16.mxu0 %v6287_v59  ;;  %v2071_v3 = vpop.f32.mrf.mxu1  ;;  %v2263_v16 = vadd.f32 %v2262_v62, %v7657_v29  ;;  %v8138_v59 = vmax.bf16 %v2877_v9, %v2643_v10  ;;  %v2500_v5 = vmax.f32 %v2068_v26, 0.0  ;;  %v2502_v1 = vmax.f32 %v2261_v35, 0.0 }
 0x3da   :  { %v2264_v31 = vpop.f32.mrf.mxu0  ;;  %v2072_v63 = vadd.f32 %v2071_v3, %v7663_v56  ;;  %v2507_v55 = vmax.f32 %v2070_v36, 0.0  ;;  %v2912_v44 = vmax.bf16 %v2911_v13, %v2645_v34  ;;  %v2895_v3 = vmax.bf16 %v2894_v22, %v2644_v21 }
 0x3db   :  { %v2075_v48 = vpop.f32.mrf.mxu1  ;;  %v2265_v27 = vadd.f32 %v2264_v31, %v7665_v43  ;;  %v2509_v23 = vmax.f32 %v2263_v16, 0.0  ;;  %v2929_v57 = vmax.bf16 %v2928_v8, %v2646_v50 }
 0x3dc   :  { %v2268_v11 = vpop.f32.mrf.mxu0  ;;  %v2508_v38 = vmax.f32 %v2072_v63, 0.0  ;;  %v2651_v2 = vpack.c.bf16 %v2507_v55, %v2499_v28  ;;  %v2076_v47 = vadd.f32 %v2075_v48, %v7655_v14 }
 0x3dd   :  { %v2077_v54 = vpop.f32.mrf.mxu1  ;;  %v2510_v49 = vmax.f32 %v2265_v27, 0.0  ;;  %v2653_v32 = vpack.c.bf16 %v2509_v23, %v2501_v6  ;;  %v2269_v41 = vadd.f32 %v2268_v11, %v7657_v29 }
 0x3de   :  { %v2270_v20 = vpop.f32.mrf.mxu0  ;;  %v2652_v62 = vpack.c.bf16 %v2508_v38, %v2500_v5  ;;  %v2078_v9 = vadd.f32 %v2077_v54, %v7663_v56  ;;  %v2879_v31 = vmax.bf16 %v8138_v59, %v2651_v2  ;;  %v2515_v10 = vmax.f32 %v2076_v47, 0.0 }
 0x3df   :  { %v2079_v7 = vpop.f32.mrf.mxu1  ;;  %v2654_v24 = vpack.c.bf16 %v2510_v49, %v2502_v1  ;;  %v2271_v39 = vadd.f32 %v2270_v20, %v7665_v43  ;;  %v2913_v48 = vmax.bf16 %v2912_v44, %v2653_v32  ;;  %v2517_v13 = vmax.f32 %v2269_v41, 0.0 }
 0x3e0   :  { %v2080_v58 = vadd.f32 %v2079_v7, %v7655_v14  ;;  %v2272_v25 = vpop.f32.mrf.mxu0  ;;  %v2896_v11 = vmax.bf16 %v2895_v3, %v2652_v62  ;;  %v2516_v17 = vmax.f32 %v2078_v9, 0.0 }
 0x3e1   :  { %v2273_v30 = vadd.f32 %v2272_v25, %v7657_v29  ;;  %v2081_v42 = vpop.f32.mrf.mxu1  ;;  %v2930_v55 = vmax.bf16 %v2929_v57, %v2654_v24  ;;  %v2518_v23 = vmax.f32 %v2271_v39, 0.0 }
 0x3e2   :  { %v2082_v61 = vadd.f32 %v2081_v42, %v7663_v56  ;;  %v2274_v18 = vpop.f32.mrf.mxu0  ;;  %v2523_v12 = vmax.f32 %v2080_v58, 0.0 }
 0x3e3   :  { %v2275_v15 = vadd.f32 %v2274_v18, %v7665_v43  ;;  %v2085_v36 = vpop.f32.mrf.mxu1  ;;  %v2525_v33 = vmax.f32 %v2273_v30, 0.0 }
 0x3e4   :  { %v2278_v16 = vpop.f32.mrf.mxu0  ;;  %v2524_v40 = vmax.f32 %v2082_v61, 0.0  ;;  %v2086_v46 = vadd.f32 %v2085_v36, %v7655_v14  ;;  %v2659_v54 = vpack.c.bf16 %v2523_v12, %v2515_v10  ;;  %v2751_v61 = vrot.slane %v8015_v53, 2 }
 0x3e5   :  { %v2087_v63 = vpop.f32.mrf.mxu1  ;;  %v2526_v22 = vmax.f32 %v2275_v15, 0.0  ;;  %v2279_v8 = vadd.f32 %v2278_v16, %v7657_v29  ;;  %v2661_v20 = vpack.c.bf16 %v2525_v33, %v2517_v13  ;;  %v2802_v12 = vrot.slane %v8045_v19, 2 }
 0x3e6   :  { %v2280_v27 = vpop.f32.mrf.mxu0  ;;  %v2088_v45 = vadd.f32 %v2087_v63, %v7663_v56  ;;  %v2660_v38 = vpack.c.bf16 %v2524_v40, %v2516_v17  ;;  %v2531_v7 = vmax.f32 %v2086_v46, 0.0 }
 0x3e7   :  { %v2089_v26 = vpop.f32.mrf.mxu1  ;;  %v2281_v59 = vadd.f32 %v2280_v27, %v7665_v43  ;;  %v2662_v58 = vpack.c.bf16 %v2526_v22, %v2518_v23  ;;  %v2533_v25 = vmax.f32 %v2279_v8, 0.0  ;;  %v2914_v1 = vmax.bf16 %v2913_v48, %v2661_v20 }
 0x3e8   :  { %v2090_v34 = vadd.f32 %v2089_v26, %v7655_v14  ;;  %v2282_v35 = vpop.f32.mrf.mxu0  ;;  %v2880_v14 = vmax.bf16 %v2879_v31, %v2659_v54  ;;  %v2532_v47 = vmax.f32 %v2088_v45, 0.0  ;;  %v2897_v18 = vmax.bf16 %v2896_v11, %v2660_v38 }
 0x3e9   :  { %v2283_v21 = vadd.f32 %v2282_v35, %v7657_v29  ;;  %v2091_v28 = vpop.f32.mrf.mxu1  ;;  %v2534_v32 = vmax.f32 %v2281_v59, 0.0  ;;  %v2931_v9 = vmax.bf16 %v2930_v55, %v2662_v58  ;;  %v2752_v48 = vmax.f32 %v8015_v53, %v2751_v61 }
 0x3ea   :  { %v2539_v50 = vmax.f32 %v2090_v34, 0.0  ;;  %v2092_v6 = vadd.f32 %v2091_v28, %v7663_v56  ;;  %v2284_v49 = vpop.f32.mrf.mxu0  ;;  %v2785_v56 = vrot.slane %v8031_v37, 2  ;;  %v2803_v55 = vmax.f32 %v8045_v19, %v2802_v12 }
 0x3eb   :  { %v2541_v5 = vmax.f32 %v2283_v21, 0.0  ;;  %v2285_v2 = vadd.f32 %v2284_v49, %v7665_v43  ;;  %v2768_v43 = vrot.slane %v8039_v60, 2  ;;  %v2753_v34 = vrot.slane %v2752_v48, 1 }
 0x3ec   :  { %v2667_v30 = vpack.c.bf16 %v2539_v50, %v2531_v7  ;;  %v2540_v42 = vmax.f32 %v2092_v6, 0.0  ;;  %v2786_v27 = vmax.f32 %v8031_v37, %v2785_v56  ;;  %v2804_v37 = vrot.slane %v2803_v55, 1 }
 0x3ed   :  { %v2669_v41 = vpack.c.bf16 %v2541_v5, %v2533_v25  ;;  %v2542_v29 = vmax.f32 %v2285_v2, 0.0  ;;  %v2769_v22 = vmax.f32 %v8039_v60, %v2768_v43  ;;  %v2754_v6 = vmax.f32 %v2752_v48, %v2753_v34  ;;  %v6294_v34 = vld [vmem:[#allocation7 + $0xa8] ss:$16 sps:$4 sm:$0xff]  }
 0x3ee   :  { %v2881_v44 = vmax.bf16 %v2880_v14, %v2667_v30  ;;  %v2668_v62 = vpack.c.bf16 %v2540_v42, %v2532_v47  ;;  %v2787_v20 = vrot.slane %v2786_v27, 1  ;;  %v2805_v14 = vmax.f32 %v2803_v55, %v2804_v37  ;;  %v6291_v55 = vld [vmem:[#allocation7 + $0x2c8] ss:$16 sps:$4 sm:$0xff]   ;;  %v6317_v37 = vld [vmem:[#allocation7 + $0x24c] ss:$16 sps:$4 sm:$0xff]  }
 0x3ef   :  { %v2915_v15 = vmax.bf16 %v2914_v1, %v2669_v41  ;;  %v2670_v36 = vpack.c.bf16 %v2542_v29, %v2534_v32  ;;  %v2770_v21 = vrot.slane %v2769_v22, 1  ;;  %v2755_v1 = vpack.i.bf16 %v2754_v6, %v2754_v6  ;;  %v6320_v6 = vld [vmem:[#allocation7 + $0x2c] ss:$16 sps:$4 sm:$0xff]  }
 0x3f0   :  { %v2882_v3 = vunpack.i.l.bf16 %v2881_v44  ;;  %v2883_v57 = vunpack.i.h.bf16 %v2881_v44  ;;  %v2898_v24 = vmax.bf16 %v2897_v18, %v2668_v62  ;;  %v2788_v58 = vmax.f32 %v2786_v27, %v2787_v20  ;;  %v6285_v27 = vld [vmem:[#allocation7 + $0x2e8] ss:$16 sps:$4 sm:$0xff]   ;;  %v6305_v20 = vld [vmem:[#allocation7 + $0x28c] ss:$16 sps:$4 sm:$0xff]  }
 0x3f1   :  { %v2916_v16 = vunpack.i.l.bf16 %v2915_v15  ;;  %v2917_v31 = vunpack.i.h.bf16 %v2915_v15  ;;  %v2932_v10 = vmax.bf16 %v2931_v9, %v2670_v36  ;;  %v2771_v19 = vmax.f32 %v2769_v22, %v2770_v21  ;;  %v6290_v22 = vld [vmem:[#allocation7 + $0xcc] ss:$16 sps:$4 sm:$0xff]  }
 0x3f2   :  { %v2884_v39 = vmax.f32 %v2882_v3, %v2883_v57  ;;  %v2899_v33 = vunpack.i.l.bf16 %v2898_v24  ;;  %v2900_v63 = vunpack.i.h.bf16 %v2898_v24  ;;  %v2789_v29 = vpack.i.bf16 %v2788_v58, %v2788_v58  ;;  %v6311_v21 = vld [vmem:[#allocation7 + $0x26c] ss:$16 sps:$4 sm:$0xff]   ;;  %v6321_v58 = vld [vmem:[#allocation7 + $0x228] ss:$16 sps:$4 sm:$0xff]  }
 0x3f3   :  { %v2918_v13 = vmax.f32 %v2916_v16, %v2917_v31  ;;  %v2933_v40 = vunpack.i.l.bf16 %v2932_v10  ;;  %v2934_v46 = vunpack.i.h.bf16 %v2932_v10  ;;  %v2772_v18 = vpack.i.bf16 %v2771_v19, %v2771_v19  ;;  %v6329_v19 = vld [vmem:[#allocation7 + $0x20c] ss:$16 sps:$4 sm:$0xff]  }
 0x3f4   :  { %v2885_v11 = vrot.slane %v2884_v39, 4  ;;  %v2901_v17 = vmax.f32 %v2899_v33, %v2900_v63  ;;  %v2806_v56 = vpack.i.bf16 %v2805_v14, %v2805_v14  ;;  %v3339_v43 = vunpack.c.l.b16 %v2755_v1  ;;  %v6332_v14 = vld [vmem:[#allocation7 + $0x1ec] ss:$16 sps:$4 sm:$0xff]  }
 0x3f5   :  { %v2919_v8 = vrot.slane %v2918_v13, 4  ;;  %v2935_v26 = vmax.f32 %v2933_v40, %v2934_v46  ;;  %v3341_v24 = vunpack.c.l.b16 %v2789_v29  ;;  %v3340_v12 = vunpack.c.l.b16 %v2772_v18  ;;  %v6282_v40 = vld [vmem:[#allocation7 + $0xe8] ss:$16 sps:$4 sm:$0xff]   ;;  %v6338_v1 = vld [vmem:[#allocation7 + $0x1cc] ss:$16 sps:$4 sm:$0xff]  }
 0x3f6   :  { %v2886_v54 = vmax.f32 %v2884_v39, %v2885_v11  ;;  %v2902_v45 = vrot.slane %v2901_v17, 4  ;;  %v3342_v31 = vunpack.c.l.b16 %v2806_v56  ;;  %v6339_v29 = vld [vmem:[#allocation7 + $0x3c8] ss:$16 sps:$4 sm:$0xff]   ;;  %v6347_v18 = vld [vmem:[#allocation7 + $0x3ac] ss:$16 sps:$4 sm:$0xff]  }
 0x3f7   :  { %v2920_v35 = vmax.f32 %v2918_v13, %v2919_v8  ;;  %v2936_v23 = vrot.slane %v2935_v26, 4  ;;  %v6293_v8 = vld [vmem:[#allocation7 + $0x2cc] ss:$16 sps:$4 sm:$0xff]  }
 0x3f8   :  { %v2887_v53 = vrot.slane %v2886_v54, 2  ;;  %v2903_v59 = vmax.f32 %v2901_v17, %v2902_v45  ;;  %v6299_v45 = vld [vmem:[#allocation7 + $0x2ac] ss:$16 sps:$4 sm:$0xff]  }
 0x3f9   :  { %v2921_v28 = vrot.slane %v2920_v35, 2  ;;  %v2937_v38 = vmax.f32 %v2935_v26, %v2936_v23  ;;  %v6288_v26 = vld [vmem:[#allocation7 + $0xc8] ss:$16 sps:$4 sm:$0xff]   ;;  %v6302_v23 = vld [vmem:[#allocation7 + $0x8c] ss:$16 sps:$4 sm:$0xff]  }
 0x3fa   :  { %v2888_v7 = vmax.f32 %v2886_v54, %v2887_v53  ;;  %v2904_v50 = vrot.slane %v2903_v59, 2  ;;  %v6296_v54 = vld [vmem:[#allocation7 + $0xac] ss:$16 sps:$4 sm:$0xff]   ;;  %v6300_v53 = vld [vmem:[#allocation7 + $0x88] ss:$16 sps:$4 sm:$0xff]  }
 0x3fb   :  { %v2922_v60 = vmax.f32 %v2920_v35, %v2921_v28  ;;  %v2938_v49 = vrot.slane %v2937_v38, 2  ;;  %v6297_v35 = vld [vmem:[#allocation7 + $0x2a8] ss:$16 sps:$4 sm:$0xff]   ;;  %v6350_v56 = vld [vmem:[#allocation7 + $0x18c] ss:$16 sps:$4 sm:$0xff]  }
 0x3fc   :  { %v2889_v25 = vrot.slane %v2888_v7, 1  ;;  %v2905_v5 = vmax.f32 %v2903_v59, %v2904_v50  ;;  %v6308_v59 = vld [vmem:[#allocation7 + $0x6c] ss:$16 sps:$4 sm:$0xff]   ;;  %v6309_v28 = vld [vmem:[#allocation7 + $0x268] ss:$16 sps:$4 sm:$0xff]  }
 0x3fd   :  { %v2923_v2 = vrot.slane %v2922_v60, 1  ;;  %v2939_v47 = vmax.f32 %v2937_v38, %v2938_v49  ;;  %v6314_v38 = vld [vmem:[#allocation7 + $0x4c] ss:$16 sps:$4 sm:$0xff]   ;;  %v6315_v50 = vld [vmem:[#allocation7 + $0x248] ss:$16 sps:$4 sm:$0xff]  }
 0x3fe   :  { %v2890_v30 = vmax.f32 %v2888_v7, %v2889_v25  ;;  %v2906_v42 = vrot.slane %v2905_v5, 1  ;;  %v6312_v7 = vld [vmem:[#allocation7 + $0x48] ss:$16 sps:$4 sm:$0xff]   ;;  %v6326_v25 = vld [vmem:[#allocation7 + $0xc] ss:$16 sps:$4 sm:$0xff]  }
 0x3ff   :  { %v2924_v32 = vmax.f32 %v2922_v60, %v2923_v2  ;;  %v2940_v41 = vrot.slane %v2939_v47, 1  ;;  %v6323_v60 = vld [vmem:[#allocation7 + $0x22c] ss:$16 sps:$4 sm:$0xff]   ;;  %v6318_v49 = vld [vmem:[#allocation7 + $0x28] ss:$16 sps:$4 sm:$0xff]  }
 0x400   :  { %v2891_v61 = vpack.i.bf16 %v2890_v30, %v2890_v30  ;;  %v2907_v44 = vmax.f32 %v2905_v5, %v2906_v42  ;;  %v6324_v5 = vld [vmem:[#allocation7 + $0x8] ss:$16 sps:$4 sm:$0xff]  }
 0x401   :  { %v2925_v62 = vpack.i.bf16 %v2924_v32, %v2924_v32  ;;  %v2941_v9 = vmax.f32 %v2939_v47, %v2940_v41  ;;  %v6327_v2 = vld [vmem:[#allocation7 + $0x208] ss:$16 sps:$4 sm:$0xff]   ;;  %v6335_v47 = vld [vmem:[#allocation7 + $0x3ec] ss:$16 sps:$4 sm:$0xff]  }
 0x402   :  { %v3347_v15 = vunpack.c.l.b16 %v2891_v61  ;;  %v2908_v36 = vpack.i.bf16 %v2907_v44, %v2907_v44  ;;  %v6330_v30 = vld [vmem:[#allocation7 + $0x1e8] ss:$16 sps:$4 sm:$0xff]   ;;  %v6341_v32 = vld [vmem:[#allocation7 + $0x3cc] ss:$16 sps:$4 sm:$0xff]  }
 0x403   :  { %v3349_v3 = vunpack.c.l.b16 %v2925_v62  ;;  %v2942_v57 = vpack.i.bf16 %v2941_v9, %v2941_v9  ;;  %v6333_v42 = vld [vmem:[#allocation7 + $0x3e8] ss:$16 sps:$4 sm:$0xff]   ;;  %v6344_v61 = vld [vmem:[#allocation7 + $0x1ac] ss:$16 sps:$4 sm:$0xff]  }
 0x404   :  { %v3348_v16 = vunpack.c.l.b16 %v2908_v36  ;;  %v3356_v39 = vsel %vm3351_vm0, %v3347_v15, %v3339_v43  ;;  %v6336_v41 = vld [vmem:[#allocation7 + $0x1c8] ss:$16 sps:$4 sm:$0xff]   ;;  %v6353_v9 = vld [vmem:[#allocation7 + $0x38c] ss:$16 sps:$4 sm:$0xff]  }
 0x405   :  { %v3350_v10 = vunpack.c.l.b16 %v2942_v57  ;;  %v3358_v63 = vsel %vm3351_vm0, %v3349_v3, %v3341_v24  ;;  %v8173_v11 = vpack.c.b16 %v3356_v39, %v3356_v39  ;;  %v6342_v44 = vld [vmem:[#allocation7 + $0x1a8] ss:$16 sps:$4 sm:$0xff]   ;;  %v6356_v43 = vld [vmem:[#allocation7 + $0x16c] ss:$16 sps:$4 sm:$0xff]  }
 0x406   :  { %v3357_v33 = vsel %vm3351_vm0, %v3348_v16, %v3340_v12  ;;  %v8176_v17 = vpack.c.b16 %v3358_v63, %v3358_v63  ;;  %v6345_v62 = vld [vmem:[#allocation7 + $0x3a8] ss:$16 sps:$4 sm:$0xff]   ;;  %v6359_v3 = vld [vmem:[#allocation7 + $0x36c] ss:$16 sps:$4 sm:$0xff]  }
 0x407   :  { %v8168_v48 = vpack.c.b16 %v3357_v33, %v3357_v33  ;;  %v3359_v13 = vsel %vm3351_vm0, %v3350_v10, %v3342_v31  ;;  %v6348_v15 = vld [vmem:[#allocation7 + $0x188] ss:$16 sps:$4 sm:$0xff]   ;;  %v6362_v12 = vld [vmem:[#allocation7 + $0x14c] ss:$16 sps:$4 sm:$0xff]  }
 0x408   :  { %v8171_v46 = vpack.c.b16 %v3359_v13, %v3359_v13  ;;  %v6351_v36 = vld [vmem:[#allocation7 + $0x388] ss:$16 sps:$4 sm:$0xff]   ;;  %v6365_v16 = vld [vmem:[#allocation7 + $0x34c] ss:$16 sps:$4 sm:$0xff]  }
 0x409   :  { %4770 = vmatprep.mubr.bf16.mxu1 %v8168_v48  ;;  %v6354_v57 = vld [vmem:[#allocation7 + $0x168] ss:$16 sps:$4 sm:$0xff]   ;;  %v6368_v39 = vld [vmem:[#allocation7 + $0x12c] ss:$16 sps:$4 sm:$0xff]  }
 0x40a   :  { %4811 = vmatprep.mubr.bf16.mxu0 %v8171_v46  ;;  %4771 = vmatmul.mubr.bf16.vlgmr.msra.gmra.mxu1 %v8173_v11  ;;  %v6357_v24 = vld [vmem:[#allocation7 + $0x368] ss:$16 sps:$4 sm:$0xff]   ;;  %v6371_v33 = vld [vmem:[#allocation7 + $0x32c] ss:$16 sps:$4 sm:$0xff]  }
 0x40b   :  { %4812 = vmatmul.mubr.bf16.vlgmr.msra.gmra.mxu0 %v8176_v17  ;;  %4821 = vmatpush1.bf16.msra.mxu1 %v6282_v40  ;;  %v6360_v31 = vld [vmem:[#allocation7 + $0x148] ss:$16 sps:$4 sm:$0xff]   ;;  %v6374_v40 = vld [vmem:[#allocation7 + $0x10c] ss:$16 sps:$4 sm:$0xff]  }
 0x40c   :  { %4862 = vmatpush1.bf16.msra.mxu0 %v6285_v27  ;;  %4852 = vmatprep.mubr.bf16.mxu1 %v7907_v51  ;;  %v6303_v51 = vld [vmem:[#allocation7 + $0x288] ss:$16 sps:$4 sm:$0xff]   ;;  %v6377_v27 = vld [vmem:[#allocation7 + $0x30c] ss:$16 sps:$4 sm:$0xff]  }
 0x40d   :  { %4893 = vmatprep.mubr.bf16.mxu0 %v7909_v52  ;;  %4822 = vmatprep.subr.bf16.mxu1 %v6290_v22  ;;  %v6306_v52 = vld [vmem:[#allocation7 + $0x68] ss:$16 sps:$4 sm:$0xff]  }
 0x40e   :  { %4863 = vmatprep.subr.bf16.mxu0 %v6293_v8  ;;  %v6363_v10 = vld [vmem:[#allocation7 + $0x348] ss:$16 sps:$4 sm:$0xff]  }
 0x40f   :  { %4823 = vmatpush1.bf16.msra.mxu1 %v6288_v26  ;;  %v6366_v63 = vld [vmem:[#allocation7 + $0x128] ss:$16 sps:$4 sm:$0xff]   ;;  %v6380_v26 = vld [vmem:[#allocation7 + $0x4ec] ss:$16 sps:$4 sm:$0xff]  }
 0x410   :  { %4864 = vmatpush1.bf16.msra.mxu0 %v6291_v55  ;;  %4824 = vmatprep.subr.bf16.mxu1 %v6296_v54  ;;  %v6369_v13 = vld [vmem:[#allocation7 + $0x328] ss:$16 sps:$4 sm:$0xff]   ;;  %v6383_v55 = vld [vmem:[#allocation7 + $0x6ec] ss:$16 sps:$4 sm:$0xff]  }
 0x411   :  { %4865 = vmatprep.subr.bf16.mxu0 %v6299_v45  ;;  %v6372_v22 = vld [vmem:[#allocation7 + $0x108] ss:$16 sps:$4 sm:$0xff]  }
 0x412   :  { %v6375_v8 = vld [vmem:[#allocation7 + $0x308] ss:$16 sps:$4 sm:$0xff]  }
 0x413   :  { %4825 = vmatpush1.bf16.msra.mxu1 %v6294_v34  ;;  %v6378_v54 = vld [vmem:[#allocation7 + $0x4e8] ss:$16 sps:$4 sm:$0xff]   ;;  %v6386_v34 = vld [vmem:[#allocation7 + $0x4cc] ss:$16 sps:$4 sm:$0xff]  }
 0x414   :  { %4866 = vmatpush1.bf16.msra.mxu0 %v6297_v35  ;;  %4826 = vmatprep.subr.bf16.mxu1 %v6302_v23  ;;  %v6381_v45 = vld [vmem:[#allocation7 + $0x6e8] ss:$16 sps:$4 sm:$0xff]   ;;  %v6389_v35 = vld [vmem:[#allocation7 + $0x6cc] ss:$16 sps:$4 sm:$0xff]  }
 0x415   :  { %4867 = vmatprep.subr.bf16.mxu0 %v6305_v20  ;;  %v6384_v23 = vld [vmem:[#allocation7 + $0x4c8] ss:$16 sps:$4 sm:$0xff]  }
 0x416   :  { %v6387_v20 = vld [vmem:[#allocation7 + $0x6c8] ss:$16 sps:$4 sm:$0xff]  }
 0x417   :  { %4827 = vmatpush1.bf16.msra.mxu1 %v6300_v53  ;;  %v6392_v53 = vld [vmem:[#allocation7 + $0x4ac] ss:$16 sps:$4 sm:$0xff]  }
 0x418   :  { %4868 = vmatpush1.bf16.msra.mxu0 %v6303_v51  ;;  %4828 = vmatprep.subr.bf16.mxu1 %v6308_v59  ;;  %v6395_v51 = vld [vmem:[#allocation7 + $0x6ac] ss:$16 sps:$4 sm:$0xff]   ;;  %v6390_v59 = vld [vmem:[#allocation7 + $0x4a8] ss:$16 sps:$4 sm:$0xff]  }
 0x419   :  { %4869 = vmatprep.subr.bf16.mxu0 %v6311_v21  ;;  %v6398_v21 = vld [vmem:[#allocation7 + $0x48c] ss:$16 sps:$4 sm:$0xff]  }
 0x41b   :  { %4829 = vmatpush1.bf16.msra.mxu1 %v6306_v52  ;;  %v6396_v52 = vld [vmem:[#allocation7 + $0x488] ss:$16 sps:$4 sm:$0xff]  }
 0x41c   :  { %4870 = vmatpush1.bf16.msra.mxu0 %v6309_v28  ;;  %4830 = vmatprep.subr.bf16.mxu1 %v6314_v38  ;;  %v6404_v28 = vld [vmem:[#allocation7 + $0x46c] ss:$16 sps:$4 sm:$0xff]  }
 0x41d   :  { %4871 = vmatprep.subr.bf16.mxu0 %v6317_v37  ;;  %v6407_v38 = vld [vmem:[#allocation7 + $0x66c] ss:$16 sps:$4 sm:$0xff]  }
 0x41e   :  { %v8342_v37 = vld [vmem:[#allocation18_spill] sm:$0xff] }
 0x41f   :  { %4831 = vmatpush1.bf16.msra.mxu1 %v6312_v7 }
 0x420   :  { %4872 = vmatpush1.bf16.msra.mxu0 %v6315_v50  ;;  %4832 = vmatprep.subr.bf16.mxu1 %v6320_v6  ;;  %v6402_v50 = vld [vmem:[#allocation7 + $0x468] ss:$16 sps:$4 sm:$0xff]  }
 0x421   :  { %4873 = vmatprep.subr.bf16.mxu0 %v6323_v60  ;;  %v6405_v6 = vld [vmem:[#allocation7 + $0x668] ss:$16 sps:$4 sm:$0xff]   ;;  %v6410_v60 = vld [vmem:[#allocation7 + $0x44c] ss:$16 sps:$4 sm:$0xff]  }
 0x423   :  { %4833 = vmatpush1.bf16.msra.mxu1 %v6318_v49  ;;  %v8343_v49 = vld [vmem:[#allocation16_spill] sm:$0xff] }
 0x424   :  { %4874 = vmatpush1.bf16.msra.mxu0 %v6321_v58  ;;  %4834 = vmatprep.subr.bf16.mxu1 %v6326_v25  ;;  %v6413_v25 = vld [vmem:[#allocation7 + $0x64c] ss:$16 sps:$4 sm:$0xff]  }
 0x425   :  { %4875 = vmatprep.subr.bf16.mxu0 %v6329_v19 }
 0x427   :  { %4835 = vmatpush1.bf16.msra.mxu1 %v6324_v5 }
 0x428   :  { %4876 = vmatpush1.bf16.msra.mxu0 %v6327_v2  ;;  %4836 = vmatprep.subr.bf16.mxu1 %v6332_v14  ;;  %v6408_v14 = vld [vmem:[#allocation7 + $0x448] ss:$16 sps:$4 sm:$0xff]  }
 0x429   :  { %4877 = vmatprep.subr.bf16.mxu0 %v6335_v47 }
 0x42b   :  { %4837 = vmatpush2.bf16.msra.mxu1 %v6330_v30 }
 0x42c   :  { %4878 = vmatpush2.bf16.msra.mxu0 %v6333_v42  ;;  %4838 = vmatprep.subr.bf16.mxu1 %v6338_v1  ;;  %v6411_v42 = vld [vmem:[#allocation7 + $0x648] ss:$16 sps:$4 sm:$0xff]   ;;  %v6416_v1 = vld [vmem:[#allocation7 + $0x42c] ss:$16 sps:$4 sm:$0xff]  }
 0x42d   :  { %4879 = vmatprep.subr.bf16.mxu0 %v6341_v32 }
 0x42f   :  { %4839 = vmatpush2.bf16.msra.mxu1 %v6336_v41 }
 0x430   :  { %4880 = vmatpush2.bf16.msra.mxu0 %v6339_v29  ;;  %4840 = vmatprep.subr.bf16.mxu1 %v6344_v61  ;;  %v6419_v29 = vld [vmem:[#allocation7 + $0x62c] ss:$16 sps:$4 sm:$0xff]  }
 0x431   :  { %4881 = vmatprep.subr.bf16.mxu0 %v6347_v18 }
 0x433   :  { %4841 = vmatpush2.bf16.msra.mxu1 %v6342_v44 }
 0x434   :  { %4882 = vmatpush2.bf16.msra.mxu0 %v6345_v62  ;;  %4842 = vmatprep.subr.bf16.mxu1 %v6350_v56  ;;  %v6414_v62 = vld [vmem:[#allocation7 + $0x428] ss:$16 sps:$4 sm:$0xff]  }
 0x435   :  { %4883 = vmatprep.subr.bf16.mxu0 %v6353_v9 }
 0x437   :  { %4843 = vmatpush2.bf16.msra.mxu1 %v6348_v15  ;;  %v6417_v15 = vld [vmem:[#allocation7 + $0x628] ss:$16 sps:$4 sm:$0xff]  }
 0x438   :  { %4884 = vmatpush2.bf16.msra.mxu0 %v6351_v36  ;;  %4844 = vmatprep.subr.bf16.mxu1 %v6356_v43  ;;  %v6422_v36 = vld [vmem:[#allocation7 + $0x40c] ss:$16 sps:$4 sm:$0xff]  }
 0x439   :  { %4885 = vmatprep.subr.bf16.mxu0 %v6359_v3  ;;  %v6425_v43 = vld [vmem:[#allocation7 + $0x60c] ss:$16 sps:$4 sm:$0xff]   ;;  %v6420_v3 = vld [vmem:[#allocation7 + $0x408] ss:$16 sps:$4 sm:$0xff]  }
 0x43b   :  { %4845 = vmatpush2.bf16.msra.mxu1 %v6354_v57  ;;  %v6423_v57 = vld [vmem:[#allocation7 + $0x608] ss:$16 sps:$4 sm:$0xff]  }
 0x43c   :  { %4886 = vmatpush2.bf16.msra.mxu0 %v6357_v24  ;;  %4846 = vmatprep.subr.bf16.mxu1 %v6362_v12  ;;  %v6428_v24 = vld [vmem:[#allocation7 + $0x5ec] ss:$16 sps:$4 sm:$0xff]  }
 0x43d   :  { %4887 = vmatprep.subr.bf16.mxu0 %v6365_v16  ;;  %v6431_v12 = vld [vmem:[#allocation7 + $0x7ec] ss:$16 sps:$4 sm:$0xff]   ;;  %v6426_v16 = vld [vmem:[#allocation7 + $0x5e8] ss:$16 sps:$4 sm:$0xff]  }
 0x43f   :  { %4847 = vmatpush2.bf16.msra.mxu1 %v6360_v31  ;;  %v6429_v31 = vld [vmem:[#allocation7 + $0x7e8] ss:$16 sps:$4 sm:$0xff]  }
 0x440   :  { %4888 = vmatpush2.bf16.msra.mxu0 %v6363_v10  ;;  %4848 = vmatprep.subr.bf16.mxu1 %v6368_v39  ;;  %v6434_v10 = vld [vmem:[#allocation7 + $0x5cc] ss:$16 sps:$4 sm:$0xff]  }
 0x441   :  { %4889 = vmatprep.subr.bf16.mxu0 %v6371_v33  ;;  %v6437_v39 = vld [vmem:[#allocation7 + $0x7cc] ss:$16 sps:$4 sm:$0xff]   ;;  %v6432_v33 = vld [vmem:[#allocation7 + $0x5c8] ss:$16 sps:$4 sm:$0xff]  }
 0x443   :  { %4849 = vmatpush2.bf16.msra.mxu1 %v6366_v63  ;;  %v6435_v63 = vld [vmem:[#allocation7 + $0x7c8] ss:$16 sps:$4 sm:$0xff]  }
 0x444   :  { %4890 = vmatpush2.bf16.msra.mxu0 %v6369_v13  ;;  %4850 = vmatprep.subr.bf16.mxu1 %v6374_v40  ;;  %v6440_v13 = vld [vmem:[#allocation7 + $0x5ac] ss:$16 sps:$4 sm:$0xff]  }
 0x445   :  { %4891 = vmatprep.subr.bf16.mxu0 %v6377_v27  ;;  %v6443_v40 = vld [vmem:[#allocation7 + $0x7ac] ss:$16 sps:$4 sm:$0xff]   ;;  %v6438_v27 = vld [vmem:[#allocation7 + $0x5a8] ss:$16 sps:$4 sm:$0xff]  }
 0x447   :  { %4851 = vmatpush2.bf16.msra.mxu1 %v6372_v22  ;;  %v6441_v22 = vld [vmem:[#allocation7 + $0x7a8] ss:$16 sps:$4 sm:$0xff]  }
 0x448   :  { %4892 = vmatpush2.bf16.msra.mxu0 %v6375_v8  ;;  %4902 = vmatprep.subr.bf16.mxu1 %v6380_v26  ;;  %v6446_v8 = vld [vmem:[#allocation7 + $0x58c] ss:$16 sps:$4 sm:$0xff]  }
 0x449   :  { %4943 = vmatprep.subr.bf16.mxu0 %v6383_v55  ;;  %v6449_v26 = vld [vmem:[#allocation7 + $0x78c] ss:$16 sps:$4 sm:$0xff]   ;;  %v6444_v55 = vld [vmem:[#allocation7 + $0x588] ss:$16 sps:$4 sm:$0xff]  }
 0x44a   :  { %4853 = vmatmul.mubr.bf16.vlgmr.msra.gmra.mxu1 %v7897_v4  ;;  %v6393_v4 = vld [vmem:[#allocation7 + $0x6a8] ss:$16 sps:$4 sm:$0xff]  }
 0x44b   :  { %4894 = vmatmul.mubr.bf16.vlgmr.msra.gmra.mxu0 %v7899_v0  ;;  %4903 = vmatpush1.bf16.msra.mxu1 %v6378_v54  ;;  %v6401_v0 = vld [vmem:[#allocation7 + $0x68c] ss:$16 sps:$4 sm:$0xff]   ;;  %v6447_v54 = vld [vmem:[#allocation7 + $0x788] ss:$16 sps:$4 sm:$0xff]  }
 0x44c   :  { %4934 = vmatprep.mubr.bf16.mxu1 %v8168_v48  ;;  %4944 = vmatpush1.bf16.msra.mxu0 %v6381_v45  ;;  %v8190_v48 = vld [vmem:[%s8324_s8] sm:$0xf]  ;;  %v6452_v45 = vld [vmem:[#allocation7 + $0x56c] ss:$16 sps:$4 sm:$0xff]  }
 0x44d   :  { %4975 = vmatprep.mubr.bf16.mxu0 %v8171_v46  ;;  %4904 = vmatprep.subr.bf16.mxu1 %v6386_v34  ;;  %v6399_v46 = vld [vmem:[#allocation7 + $0x688] ss:$16 sps:$4 sm:$0xff]   ;;  %v3302_v7 = vrot.slane %v8190_v48, %v8342_v37  ;;  %v3306_v58 = vrot.slane %v8190_v48, %v8343_v49  ;;  %v6455_v34 = vld [vmem:[#allocation7 + $0x76c] ss:$16 sps:$4 sm:$0xff]  }
 0x44e   :  { %4945 = vmatprep.subr.bf16.mxu0 %v6389_v35  ;;  %v6450_v35 = vld [vmem:[#allocation7 + $0x568] ss:$16 sps:$4 sm:$0xff]  }
 0x44f   :  { %4905 = vmatpush1.bf16.msra.mxu1 %v6384_v23  ;;  %v6453_v23 = vld [vmem:[#allocation7 + $0x768] ss:$16 sps:$4 sm:$0xff]  }
 0x450   :  { %4946 = vmatpush1.bf16.msra.mxu0 %v6387_v20  ;;  %4906 = vmatprep.subr.bf16.mxu1 %v6392_v53  ;;  %v6458_v20 = vld [vmem:[#allocation7 + $0x54c] ss:$16 sps:$4 sm:$0xff]  }
 0x451   :  { %4947 = vmatprep.subr.bf16.mxu0 %v6395_v51  ;;  %v6461_v53 = vld [vmem:[#allocation7 + $0x74c] ss:$16 sps:$4 sm:$0xff]   ;;  %v6456_v51 = vld [vmem:[#allocation7 + $0x548] ss:$16 sps:$4 sm:$0xff]  }
 0x453   :  { %4907 = vmatpush1.bf16.msra.mxu1 %v6390_v59  ;;  %v6459_v59 = vld [vmem:[#allocation7 + $0x748] ss:$16 sps:$4 sm:$0xff]  }
 0x454   :  { %4948 = vmatpush1.bf16.msra.mxu0 %v6393_v4  ;;  %4908 = vmatprep.subr.bf16.mxu1 %v6398_v21  ;;  %v6464_v4 = vld [vmem:[#allocation7 + $0x52c] ss:$16 sps:$4 sm:$0xff]  }
 0x455   :  { %4949 = vmatprep.subr.bf16.mxu0 %v6401_v0  ;;  %v6467_v21 = vld [vmem:[#allocation7 + $0x72c] ss:$16 sps:$4 sm:$0xff]   ;;  %v6462_v0 = vld [vmem:[#allocation7 + $0x528] ss:$16 sps:$4 sm:$0xff]  }
 0x457   :  { %4909 = vmatpush1.bf16.msra.mxu1 %v6396_v52  ;;  %v6465_v52 = vld [vmem:[#allocation7 + $0x728] ss:$16 sps:$4 sm:$0xff]  }
 0x458   :  { %4950 = vmatpush1.bf16.msra.mxu0 %v6399_v46  ;;  %4910 = vmatprep.subr.bf16.mxu1 %v6404_v28  ;;  %v6470_v46 = vld [vmem:[#allocation7 + $0x50c] ss:$16 sps:$4 sm:$0xff]  }
 0x459   :  { %4951 = vmatprep.subr.bf16.mxu0 %v6407_v38  ;;  %v6473_v28 = vld [vmem:[#allocation7 + $0x70c] ss:$16 sps:$4 sm:$0xff]   ;;  %v6468_v38 = vld [vmem:[#allocation7 + $0x508] ss:$16 sps:$4 sm:$0xff]  }
 0x45a   :  { %v4690_v19 = vpop.f32.mrf.mxu1  ;;  %v4731_v5 = vpop.f32.mrf.mxu0 }
 0x45b   :  { %v4691_v2 = vadd.f32 %v4690_v19, %v3302_v7  ;;  %4911 = vmatpush1.bf16.msra.mxu1 %v6402_v50  ;;  %v6471_v7 = vld [vmem:[#allocation7 + $0x708] ss:$16 sps:$4 sm:$0xff]   ;;  %v6476_v50 = vld [vmem:[#allocation8 + $0x74] ss:$8 sps:$4 sm:$0xff]  }
 0x45c   :  { %v4692_v47 = vpop.f32.mrf.mxu1  ;;  %v4733_v30 = vpop.f32.mrf.mxu0  ;;  %4952 = vmatpush1.bf16.msra.mxu0 %v6405_v6  ;;  %4912 = vmatprep.subr.bf16.mxu1 %v6410_v60  ;;  %v6474_v6 = vld [vmem:[#allocation8 + $0x70] ss:$8 sps:$4 sm:$0xff]   ;;  %v6479_v60 = vld [vmem:[#allocation8 + $0x64] ss:$8 sps:$4 sm:$0xff]  }
 0x45d   :  { %v8196_v32 = vadd.f32 %v4731_v5, %v4691_v2  ;;  %v4693_v41 = vadd.f32 %v4692_v47, %v3306_v58  ;;  %4953 = vmatprep.subr.bf16.mxu0 %v6413_v25  ;;  %v6477_v58 = vld [vmem:[#allocation8 + $0x60] ss:$8 sps:$4 sm:$0xff]   ;;  %v6482_v25 = vld [vmem:[#allocation8 + $0x54] ss:$8 sps:$4 sm:$0xff]   ;;  %v6480_v19 = vld [vmem:[#allocation8 + $0x50] ss:$8 sps:$4 sm:$0xff]  }
 0x45e   :  { %v4694_v61 = vpop.f32.mrf.mxu1  ;;  %v4735_v18 = vpop.f32.mrf.mxu0  ;;  %v6485_v5 = vld [vmem:[#allocation8 + $0x44] ss:$8 sps:$4 sm:$0xff]   ;;  %v6522_v2 = vld [vmem:[#allocation8 + $0x170] ss:$8 sps:$4 sm:$0xff]  }
 0x45f   :  { %v8198_v44 = vadd.f32 %v4733_v30, %v4693_v41  ;;  %4913 = vmatpush1.bf16.msra.mxu1 %v6408_v14  ;;  %v6524_v14 = vld [vmem:[#allocation8 + $0x174] ss:$8 sps:$4 sm:$0xff]   ;;  %v6527_v47 = vld [vmem:[#allocation8 + $0x164] ss:$8 sps:$4 sm:$0xff]   ;;  %v6483_v30 = vld [vmem:[#allocation8 + $0x40] ss:$8 sps:$4 sm:$0xff]  }
 0x460   :  { %v4695_v56 = vpop.f32.mrf.mxu1  ;;  %v4736_v9 = vpop.f32.mrf.mxu0  ;;  %4954 = vmatpush1.bf16.msra.mxu0 %v6411_v42  ;;  %4914 = vmatprep.subr.bf16.mxu1 %v6416_v1  ;;  %v6488_v42 = vld [vmem:[#allocation8 + $0x34] ss:$8 sps:$4 sm:$0xff]   ;;  %v6486_v1 = vld [vmem:[#allocation8 + $0x30] ss:$8 sps:$4 sm:$0xff]   ;;  %v6491_v41 = vld [vmem:[#allocation8 + $0x24] ss:$8 sps:$4 sm:$0xff]  }
 0x461   :  { %4955 = vmatprep.subr.bf16.mxu0 %v6419_v29  ;;  %v6528_v29 = vld [vmem:[#allocation8 + $0x150] ss:$8 sps:$4 sm:$0xff]   ;;  %v6533_v61 = vld [vmem:[#allocation8 + $0x144] ss:$8 sps:$4 sm:$0xff]   ;;  %v6489_v18 = vld [vmem:[#allocation8 + $0x20] ss:$8 sps:$4 sm:$0xff]  }
 0x462   :  { %v6531_v56 = vld [vmem:[#allocation8 + $0x140] ss:$8 sps:$4 sm:$0xff]   ;;  %v6536_v9 = vld [vmem:[#allocation8 + $0x134] ss:$8 sps:$4 sm:$0xff]  }
 0x463   :  { %4915 = vmatpush1.bf16.msra.mxu1 %v6414_v62  ;;  %v6494_v62 = vld [vmem:[#allocation8 + $0x14] ss:$8 sps:$4 sm:$0xff]  }
 0x464   :  { %4956 = vmatpush1.bf16.msra.mxu0 %v6417_v15  ;;  %4916 = vmatprep.subr.bf16.mxu1 %v6422_v36  ;;  %v6492_v15 = vld [vmem:[#allocation8 + $0x10] ss:$8 sps:$4 sm:$0xff]   ;;  %v6497_v36 = vld [vmem:[#allocation8 + $0x4] ss:$8 sps:$4 sm:$0xff]  }
 0x465   :  { %4957 = vmatprep.subr.bf16.mxu0 %v6425_v43  ;;  %v6534_v43 = vld [vmem:[#allocation8 + $0x130] ss:$8 sps:$4 sm:$0xff]  }
 0x467   :  { %4917 = vmatpush1.bf16.msra.mxu1 %v6420_v3  ;;  %v6539_v3 = vld [vmem:[#allocation8 + $0x124] ss:$8 sps:$4 sm:$0xff]  }
 0x468   :  { %4958 = vmatpush1.bf16.msra.mxu0 %v6423_v57  ;;  %4918 = vmatprep.subr.bf16.mxu1 %v6428_v24  ;;  %v6495_v57 = vld [vmem:[#allocation8] ss:$8 sps:$4 sm:$0xff]   ;;  %v6500_v24 = vld [vmem:[#allocation8 + $0xf4] ss:$8 sps:$4 sm:$0xff]  }
 0x469   :  { %4959 = vmatprep.subr.bf16.mxu0 %v6431_v12  ;;  %v6537_v12 = vld [vmem:[#allocation8 + $0x120] ss:$8 sps:$4 sm:$0xff]  }
 0x46b   :  { %4919 = vmatpush2.bf16.msra.mxu1 %v6426_v16  ;;  %v6542_v16 = vld [vmem:[#allocation8 + $0x114] ss:$8 sps:$4 sm:$0xff]  }
 0x46c   :  { %4960 = vmatpush2.bf16.msra.mxu0 %v6429_v31  ;;  %4920 = vmatprep.subr.bf16.mxu1 %v6434_v10  ;;  %v6498_v31 = vld [vmem:[#allocation8 + $0xf0] ss:$8 sps:$4 sm:$0xff]   ;;  %v6503_v10 = vld [vmem:[#allocation8 + $0xe4] ss:$8 sps:$4 sm:$0xff]  }
 0x46d   :  { %4961 = vmatprep.subr.bf16.mxu0 %v6437_v39  ;;  %v6540_v39 = vld [vmem:[#allocation8 + $0x110] ss:$8 sps:$4 sm:$0xff]  }
 0x46f   :  { %4921 = vmatpush2.bf16.msra.mxu1 %v6432_v33  ;;  %v6545_v33 = vld [vmem:[#allocation8 + $0x104] ss:$8 sps:$4 sm:$0xff]  }
 0x470   :  { %4962 = vmatpush2.bf16.msra.mxu0 %v6435_v63  ;;  %4922 = vmatprep.subr.bf16.mxu1 %v6440_v13  ;;  %v6501_v63 = vld [vmem:[#allocation8 + $0xe0] ss:$8 sps:$4 sm:$0xff]   ;;  %v6506_v13 = vld [vmem:[#allocation8 + $0xd4] ss:$8 sps:$4 sm:$0xff]  }
 0x471   :  { %4963 = vmatprep.subr.bf16.mxu0 %v6443_v40  ;;  %v6543_v40 = vld [vmem:[#allocation8 + $0x100] ss:$8 sps:$4 sm:$0xff]  }
 0x473   :  { %4923 = vmatpush2.bf16.msra.mxu1 %v6438_v27  ;;  %v6548_v27 = vld [vmem:[#allocation8 + $0x1f4] ss:$8 sps:$4 sm:$0xff]  }
 0x474   :  { %4964 = vmatpush2.bf16.msra.mxu0 %v6441_v22  ;;  %4924 = vmatprep.subr.bf16.mxu1 %v6446_v8  ;;  %v6504_v22 = vld [vmem:[#allocation8 + $0xd0] ss:$8 sps:$4 sm:$0xff]   ;;  %v6509_v8 = vld [vmem:[#allocation8 + $0xc4] ss:$8 sps:$4 sm:$0xff]  }
 0x475   :  { %4965 = vmatprep.subr.bf16.mxu0 %v6449_v26  ;;  %v6546_v26 = vld [vmem:[#allocation8 + $0x1f0] ss:$8 sps:$4 sm:$0xff]  }
 0x477   :  { %4925 = vmatpush2.bf16.msra.mxu1 %v6444_v55  ;;  %v6551_v55 = vld [vmem:[#allocation8 + $0x1e4] ss:$8 sps:$4 sm:$0xff]  }
 0x478   :  { %4966 = vmatpush2.bf16.msra.mxu0 %v6447_v54  ;;  %4926 = vmatprep.subr.bf16.mxu1 %v6452_v45  ;;  %v6507_v54 = vld [vmem:[#allocation8 + $0xc0] ss:$8 sps:$4 sm:$0xff]   ;;  %v6512_v45 = vld [vmem:[#allocation8 + $0xb4] ss:$8 sps:$4 sm:$0xff]  }
 0x479   :  { %4967 = vmatprep.subr.bf16.mxu0 %v6455_v34  ;;  %v6549_v34 = vld [vmem:[#allocation8 + $0x1e0] ss:$8 sps:$4 sm:$0xff]  }
 0x47b   :  { %4927 = vmatpush2.bf16.msra.mxu1 %v6450_v35  ;;  %v6554_v35 = vld [vmem:[#allocation8 + $0x1d4] ss:$8 sps:$4 sm:$0xff]  }
 0x47c   :  { %4968 = vmatpush2.bf16.msra.mxu0 %v6453_v23  ;;  %4928 = vmatprep.subr.bf16.mxu1 %v6458_v20  ;;  %v6510_v23 = vld [vmem:[#allocation8 + $0xb0] ss:$8 sps:$4 sm:$0xff]   ;;  %v6515_v20 = vld [vmem:[#allocation8 + $0xa4] ss:$8 sps:$4 sm:$0xff]  }
 0x47d   :  { %4969 = vmatprep.subr.bf16.mxu0 %v6461_v53  ;;  %v6552_v53 = vld [vmem:[#allocation8 + $0x1d0] ss:$8 sps:$4 sm:$0xff]  }
 0x47f   :  { %4929 = vmatpush2.bf16.msra.mxu1 %v6456_v51  ;;  %v6557_v51 = vld [vmem:[#allocation8 + $0x1c4] ss:$8 sps:$4 sm:$0xff]  }
 0x480   :  { %4970 = vmatpush2.bf16.msra.mxu0 %v6459_v59  ;;  %4930 = vmatprep.subr.bf16.mxu1 %v6464_v4  ;;  %v6513_v59 = vld [vmem:[#allocation8 + $0xa0] ss:$8 sps:$4 sm:$0xff]   ;;  %v6518_v4 = vld [vmem:[#allocation8 + $0x94] ss:$8 sps:$4 sm:$0xff]  }
 0x481   :  { %4971 = vmatprep.subr.bf16.mxu0 %v6467_v21  ;;  %v6555_v21 = vld [vmem:[#allocation8 + $0x1c0] ss:$8 sps:$4 sm:$0xff]  }
 0x483   :  { %4931 = vmatpush2.bf16.msra.mxu1 %v6462_v0  ;;  %v6560_v0 = vld [vmem:[#allocation8 + $0x1b4] ss:$8 sps:$4 sm:$0xff]  }
 0x484   :  { %4972 = vmatpush2.bf16.msra.mxu0 %v6465_v52  ;;  %4932 = vmatprep.subr.bf16.mxu1 %v6470_v46  ;;  %v6516_v52 = vld [vmem:[#allocation8 + $0x90] ss:$8 sps:$4 sm:$0xff]   ;;  %v6521_v46 = vld [vmem:[#allocation8 + $0x84] ss:$8 sps:$4 sm:$0xff]  }
 0x485   :  { %4973 = vmatprep.subr.bf16.mxu0 %v6473_v28  ;;  %v6558_v28 = vld [vmem:[#allocation8 + $0x1b0] ss:$8 sps:$4 sm:$0xff]  }
 0x487   :  { %4933 = vmatpush2.bf16.msra.mxu1 %v6468_v38  ;;  %v6519_v38 = vld [vmem:[#allocation8 + $0x80] ss:$8 sps:$4 sm:$0xff]  }
 0x488   :  { %4974 = vmatpush2.bf16.msra.mxu0 %v6471_v7  ;;  %5323 = vmatprep.subr.bf16.mxu1 %v6476_v50 }
 0x489   :  { %5364 = vmatprep.subr.bf16.mxu0 %v6524_v14 }
 0x48a   :  { %4935 = vmatmul.mubr.bf16.vlgmr.msra.gmra.mxu1 %v8173_v11  ;;  %v6525_v11 = vld [vmem:[#allocation8 + $0x160] ss:$8 sps:$4 sm:$0xff]  }
 0x48b   :  { %4976 = vmatmul.mubr.bf16.vlgmr.msra.gmra.mxu0 %v8176_v17  ;;  %5324 = vmatpush1.bf16.msra.mxu1 %v6474_v6  ;;  %v6530_v17 = vld [vmem:[#allocation8 + $0x154] ss:$8 sps:$4 sm:$0xff]  }
 0x48c   :  { %5325 = vmatprep.subr.bf16.mxu1 %v6479_v60  ;;  %5365 = vmatpush1.bf16.msra.mxu0 %v6522_v2 }
 0x48d   :  { %5366 = vmatprep.subr.bf16.mxu0 %v6527_v47 }
 0x48f   :  { %5326 = vmatpush1.bf16.msra.mxu1 %v6477_v58 }
 0x490   :  { %5327 = vmatprep.subr.bf16.mxu1 %v6482_v25  ;;  %5367 = vmatpush1.bf16.msra.mxu0 %v6525_v11 }
 0x491   :  { %5368 = vmatprep.subr.bf16.mxu0 %v6530_v17  ;;  %v6561_v17 = vld [vmem:[#allocation8 + $0x1a0] ss:$8 sps:$4 sm:$0xff]  }
 0x493   :  { %5328 = vmatpush1.bf16.msra.mxu1 %v6480_v19 }
 0x494   :  { %5329 = vmatprep.subr.bf16.mxu1 %v6485_v5  ;;  %5369 = vmatpush1.bf16.msra.mxu0 %v6528_v29  ;;  %v6566_v29 = vld [vmem:[#allocation8 + $0x194] ss:$8 sps:$4 sm:$0xff]  }
 0x495   :  { %5370 = vmatprep.subr.bf16.mxu0 %v6533_v61 }
 0x497   :  { %5330 = vmatpush1.bf16.msra.mxu1 %v6483_v30 }
 0x498   :  { %5331 = vmatprep.subr.bf16.mxu1 %v6488_v42  ;;  %5371 = vmatpush1.bf16.msra.mxu0 %v6531_v56 }
 0x499   :  { %5372 = vmatprep.subr.bf16.mxu0 %v6536_v9 }
 0x49b   :  { %5332 = vmatpush1.bf16.msra.mxu1 %v6486_v1  ;;  %v6563_v1 = vld [vmem:[#allocation8 + $0x1a4] ss:$8 sps:$4 sm:$0xff]  }
 0x49c   :  { %5333 = vmatprep.subr.bf16.mxu1 %v6491_v41  ;;  %5373 = vmatpush1.bf16.msra.mxu0 %v6534_v43 }
 0x49d   :  { %5374 = vmatprep.subr.bf16.mxu0 %v6539_v3 }
 0x49f   :  { %5334 = vmatpush1.bf16.msra.mxu1 %v6489_v18  ;;  %v6569_v18 = vld [vmem:[#allocation8 + $0x184] ss:$8 sps:$4 sm:$0xff]  }
 0x4a0   :  { %5335 = vmatprep.subr.bf16.mxu1 %v6494_v62  ;;  %5375 = vmatpush1.bf16.msra.mxu0 %v6537_v12  ;;  %v3280_v12 = vld [vmem:[%s8327_s11 + $0x78] sm:$0xff] }
 0x4a1   :  { %5376 = vmatprep.subr.bf16.mxu0 %v6542_v16  ;;  %v3295_v16 = vld [vmem:[%s8327_s11 + $0xf0] sm:$0xff] }
 0x4a3   :  { %5336 = vmatpush1.bf16.msra.mxu1 %v6492_v15 }
 0x4a4   :  { %5337 = vmatprep.subr.bf16.mxu1 %v6497_v36  ;;  %5377 = vmatpush1.bf16.msra.mxu0 %v6540_v39  ;;  %v3278_v39 = vld [vmem:[%s8327_s11 + $0x68] sm:$0xff] }
 0x4a5   :  { %5378 = vmatprep.subr.bf16.mxu0 %v6545_v33  ;;  %v3293_v33 = vld [vmem:[%s8327_s11 + $0xe0] sm:$0xff] }
 0x4a7   :  { %5338 = vmatpush1.bf16.msra.mxu1 %v6495_v57 }
 0x4a8   :  { %5339 = vmatprep.subr.bf16.mxu1 %v6500_v24  ;;  %5379 = vmatpush1.bf16.msra.mxu0 %v6543_v40  ;;  %v3296_v24 = vld [vmem:[%s8327_s11 + $0xf8] sm:$0xff] }
 0x4a9   :  { %5380 = vmatprep.subr.bf16.mxu0 %v6548_v27  ;;  %v3276_v40 = vld [vmem:[%s8327_s11 + $0x58] sm:$0xff]  ;;  %v3291_v27 = vld [vmem:[%s8327_s11 + $0xd0] sm:$0xff] }
 0x4ab   :  { %5340 = vmatpush2.bf16.msra.mxu1 %v6498_v31  ;;  %v3279_v31 = vld [vmem:[%s8327_s11 + $0x70] sm:$0xff] }
 0x4ac   :  { %5341 = vmatprep.subr.bf16.mxu1 %v6503_v10  ;;  %5381 = vmatpush2.bf16.msra.mxu0 %v6546_v26  ;;  %v3294_v10 = vld [vmem:[%s8327_s11 + $0xe8] sm:$0xff] }
 0x4ad   :  { %5382 = vmatprep.subr.bf16.mxu0 %v6551_v55  ;;  %v3274_v26 = vld [vmem:[%s8327_s11 + $0x48] sm:$0xff]  ;;  %v3289_v55 = vld [vmem:[%s8327_s11 + $0xc0] sm:$0xff] }
 0x4af   :  { %5342 = vmatpush2.bf16.msra.mxu1 %v6501_v63  ;;  %v3277_v63 = vld [vmem:[%s8327_s11 + $0x60] sm:$0xff] }
 0x4b0   :  { %5343 = vmatprep.subr.bf16.mxu1 %v6506_v13  ;;  %5383 = vmatpush2.bf16.msra.mxu0 %v6549_v34  ;;  %v3292_v13 = vld [vmem:[%s8327_s11 + $0xd8] sm:$0xff] }
 0x4b1   :  { %5384 = vmatprep.subr.bf16.mxu0 %v6554_v35  ;;  %v3272_v34 = vld [vmem:[%s8327_s11 + $0x38] sm:$0xff]  ;;  %v3287_v35 = vld [vmem:[%s8327_s11 + $0xb0] sm:$0xff] }
 0x4b3   :  { %5344 = vmatpush2.bf16.msra.mxu1 %v6504_v22  ;;  %v3275_v22 = vld [vmem:[%s8327_s11 + $0x50] sm:$0xff] }
 0x4b4   :  { %5345 = vmatprep.subr.bf16.mxu1 %v6509_v8  ;;  %5385 = vmatpush2.bf16.msra.mxu0 %v6552_v53  ;;  %v3290_v8 = vld [vmem:[%s8327_s11 + $0xc8] sm:$0xff] }
 0x4b5   :  { %5386 = vmatprep.subr.bf16.mxu0 %v6557_v51  ;;  %v3270_v53 = vld [vmem:[%s8327_s11 + $0x28] sm:$0xff]  ;;  %v3285_v51 = vld [vmem:[%s8327_s11 + $0xa0] sm:$0xff] }
 0x4b7   :  { %5346 = vmatpush2.bf16.msra.mxu1 %v6507_v54  ;;  %v3273_v54 = vld [vmem:[%s8327_s11 + $0x40] sm:$0xff] }
 0x4b8   :  { %5347 = vmatprep.subr.bf16.mxu1 %v6512_v45  ;;  %5387 = vmatpush2.bf16.msra.mxu0 %v6555_v21  ;;  %v3288_v45 = vld [vmem:[%s8327_s11 + $0xb8] sm:$0xff] }
 0x4b9   :  { %5388 = vmatprep.subr.bf16.mxu0 %v6560_v0  ;;  %v8345_v0 = vld [vmem:[#allocation15_spill] sm:$0xff] }
 0x4bb   :  { %5348 = vmatpush2.bf16.msra.mxu1 %v6510_v23  ;;  %v3271_v23 = vld [vmem:[%s8327_s11 + $0x30] sm:$0xff] }
 0x4bc   :  { %5349 = vmatprep.subr.bf16.mxu1 %v6515_v20  ;;  %5389 = vmatpush2.bf16.msra.mxu0 %v6558_v28  ;;  %v3286_v20 = vld [vmem:[%s8327_s11 + $0xa8] sm:$0xff] }
 0x4bd   :  { %5390 = vmatprep.subr.bf16.mxu0 %v6563_v1 }
 0x4bf   :  { %5350 = vmatpush2.bf16.msra.mxu1 %v6513_v59  ;;  %v3269_v59 = vld [vmem:[%s8327_s11 + $0x20] sm:$0xff] }
 0x4c0   :  { %5351 = vmatprep.subr.bf16.mxu1 %v6518_v4  ;;  %5391 = vmatpush2.bf16.msra.mxu0 %v6561_v17  ;;  %v8344_v4 = vld [vmem:[#allocation17_spill] sm:$0xff] }
 0x4c1   :  { %5392 = vmatprep.subr.bf16.mxu0 %v6566_v29  ;;  %v3310_v21 = vrot.slane %v8190_v48, %v8344_v4 }
 0x4c3   :  { %5352 = vmatpush2.bf16.msra.mxu1 %v6516_v52  ;;  %v8346_v52 = vsub.s32 3, %v8345_v0 }
 0x4c4   :  { %5353 = vmatprep.subr.bf16.mxu1 %v6521_v46 }
 0x4c5   :  { %v3314_v46 = vrot.slane %v8190_v48, %v8346_v52 }
 0x4c7   :  { %5354 = vmatpush2.bf16.msra.mxu1 %v6519_v38 }
 0x4c8   :  { %5920 = vmatprep.subr.mxu1 %v3296_v24 }
 0x4ca   :  { %v4772_v7 = vpop.f32.mrf.mxu1 }
 0x4cb   :  { %v4773_v50 = vadd.f32 %v4772_v7, %v8196_v32  ;;  %v4813_v6 = vpop.f32.mrf.mxu0  ;;  %v6564_v32 = vld [vmem:[#allocation8 + $0x190] ss:$8 sps:$4 sm:$0xff]  }
 0x4cc   :  { %v4774_v60 = vpop.f32.mrf.mxu1  ;;  %5393 = vmatpush2.bf16.msra.mxu0 %v6564_v32  ;;  %v3284_v32 = vld [vmem:[%s8327_s11 + $0x98] sm:$0xff] }
 0x4cd   :  { %v4814_v58 = vadd.f32 %v4813_v6, %v4773_v50  ;;  %v4775_v25 = vadd.f32 %v4774_v60, %v8198_v44  ;;  %v4815_v19 = vpop.f32.mrf.mxu0  ;;  %v6567_v44 = vld [vmem:[#allocation8 + $0x180] ss:$8 sps:$4 sm:$0xff]   ;;  %5394 = vmatprep.subr.bf16.mxu0 %v6569_v18  ;;  %v3268_v18 = vld [vmem:[%s8327_s11 + $0x18] sm:$0xff] }
 0x4ce   :  { %v4776_v5 = vpop.f32.mrf.mxu1 }
 0x4cf   :  { %v4816_v2 = vadd.f32 %v4815_v19, %v4775_v25  ;;  %v4817_v14 = vpop.f32.mrf.mxu0  ;;  %v4984_v47 = vmax.f32 %v4814_v58, 0.0 }
 0x4d0   :  { %v4777_v30 = vpop.f32.mrf.mxu1  ;;  %5395 = vmatpush2.bf16.msra.mxu0 %v6567_v44 }
 0x4d1   :  { %v4985_v42 = vmax.f32 %v4816_v2, 0.0  ;;  %v4818_v11 = vpop.f32.mrf.mxu0  ;;  %v4988_v61 = vpack.c.bf16 %v4984_v47, %v4984_v47 }
 0x4d3   :  { %v4989_v41 = vpack.c.bf16 %v4985_v42, %v4985_v42 }
 0x4d5   :  { %5355 = vmatprep.mubr.bf16.mxu1 %v4989_v41 }
 0x4d6   :  { %5356 = vmatmul.mubr.bf16.vlgmr.msra.gmra.mxu1 %v4988_v61 }
 0x4d7   :  { %5921 = vmatpush3.msra.mxu1 %v3280_v12 }
 0x4d8   :  { %5922 = vmatprep.subr.mxu1 %v3295_v16 }
 0x4d9   :  { %5923 = vmatpush3.msra.mxu1 %v3279_v31 }
 0x4da   :  { %5924 = vmatprep.subr.mxu1 %v3294_v10 }
 0x4db   :  { %5925 = vmatpush3.msra.mxu1 %v3278_v39 }
 0x4dc   :  { %5926 = vmatprep.subr.mxu1 %v3293_v33 }
 0x4dd   :  { %5927 = vmatpush3.msra.mxu1 %v3277_v63 }
 0x4de   :  { %5928 = vmatprep.subr.mxu1 %v3292_v13 }
 0x4df   :  { %5929 = vmatpush3.msra.mxu1 %v3276_v40 }
 0x4e0   :  { %5930 = vmatprep.subr.mxu1 %v3291_v27 }
 0x4e1   :  { %5931 = vmatpush3.msra.mxu1 %v3275_v22 }
 0x4e2   :  { %5932 = vmatprep.subr.mxu1 %v3290_v8 }
 0x4e3   :  { %5933 = vmatpush3.msra.mxu1 %v3274_v26  ;;  %v5895_v26 = vld [vmem:[%s8328_s12] ss:$0 sm:$0xff] }
 0x4e4   :  { %5934 = vmatprep.subr.mxu1 %v3289_v55 }
 0x4e5   :  { %5935 = vmatpush3.msra.mxu1 %v3273_v54 }
 0x4e6   :  { %5936 = vmatprep.subr.mxu1 %v3288_v45 }
 0x4e7   :  { %5937 = vmatpush3.msra.mxu1 %v3272_v34 }
 0x4e8   :  { %5938 = vmatprep.subr.mxu1 %v3287_v35 }
 0x4e9   :  { %5939 = vmatpush3.msra.mxu1 %v3271_v23 }
 0x4ea   :  { %5940 = vmatprep.subr.mxu1 %v3286_v20 }
 0x4eb   :  { %5941 = vmatpush3.msra.mxu1 %v3270_v53 }
 0x4ec   :  { %5942 = vmatprep.subr.mxu1 %v3285_v51 }
 0x4ed   :  { %5943 = vmatpush3.msra.mxu1 %v3269_v59 }
 0x4ee   :  { %5944 = vmatprep.subr.mxu1 %v3284_v32 }
 0x4ef   :  { %5945 = vmatpush3.msra.mxu1 %v3268_v18 }
 0x50a   :  { %v4854_v62 = vpop.f32.mrf.mxu1 }
 0x50b   :  { %v4895_v56 = vpop.f32.mrf.mxu0  ;;  %v4855_v28 = vadd.f32 %v4854_v62, %v3310_v21  ;;  %v3283_v62 = vld [vmem:[%s8327_s11 + $0x90] sm:$0xff] }
 0x50c   :  { %v4856_v9 = vpop.f32.mrf.mxu1  ;;  %5946 = vmatprep.subr.mxu1 %v3283_v62 }
 0x50d   :  { %v4897_v15 = vpop.f32.mrf.mxu0  ;;  %v4857_v38 = vadd.f32 %v4856_v9, %v3314_v46  ;;  %v4896_v7 = vadd.f32 %v4895_v56, %v4855_v28  ;;  %v3267_v56 = vld [vmem:[%s8327_s11 + $0x10] sm:$0xff]  ;;  %v3282_v9 = vld [vmem:[%s8327_s11 + $0x88] sm:$0xff] }
 0x50e   :  { %v4858_v36 = vpop.f32.mrf.mxu1  ;;  %5947 = vmatpush3.msra.mxu1 %v3267_v56 }
 0x50f   :  { %v4899_v43 = vpop.f32.mrf.mxu0  ;;  %v4898_v6 = vadd.f32 %v4897_v15, %v4857_v38  ;;  %v3266_v36 = vld [vmem:[%s8327_s11 + $0x8] sm:$0xff]  ;;  %5948 = vmatprep.subr.mxu1 %v3282_v9 }
 0x510   :  { %v4859_v3 = vpop.f32.mrf.mxu1  ;;  %v3281_v43 = vld [vmem:[%s8327_s11 + $0x80] sm:$0xff]  ;;  %5949 = vmatpush3.msra.mxu1 %v3266_v36 }
 0x511   :  { %v4900_v57 = vpop.f32.mrf.mxu0  ;;  %v3265_v3 = vld [vmem:[%s8327_s11] sm:$0xff]  ;;  %5950 = vmatprep.subr.mxu1 %v3281_v43 }
 0x512   :  { %5951 = vmatpush3.msra.mxu1 %v3265_v3  ;;  %v3264_v57 = vld [vmem:[%s8326_s10] sm:$0x3]  ;;  %s6694_s10 = smov [#allocation10]  }
 0x513   :  { %v4996_v24 = vrot.slane %v3264_v57, %v8342_v37  ;;  %v5000_v12 = vrot.slane %v3264_v57, %v8343_v49  ;;  %s5490_s15 = sshll.u32 %s6694_s10, 4  ;;  %s5491_s15 = int_to_ptr.vmem [resolvable:$true] %s5490_s15 }
 0x514   :  { %s6651_s16 = scalar_lea.vmem %s5491_s15, 32  ;;  %p6656_p7 = scmp.lt.s32.totalorder %s5491_s15, %s5491_s15 }
 0x515   :  { %p6652_p6 = scmp.ne.s32.totalorder %s5491_s15, %s6651_s16  ;;  %p6657_p8 = scmp.lt.s32.totalorder %s6651_s16, %s6651_s16 }
 0x517   :  { %p6658_p9 = por %p6657_p8, %p6656_p7 }
 0x519   :  { %p6659_p10 = pnand %p6658_p9, %p6652_p6 }
 0x54a   :  { %v4936_v50 = vpop.f32.mrf.mxu1 }
 0x54b   :  { %v4937_v60 = vadd.f32 %v4936_v50, %v4896_v7  ;;  %v4977_v58 = vpop.f32.mrf.mxu0 }
 0x54c   :  { %v4938_v25 = vpop.f32.mrf.mxu1 }
 0x54d   :  { %v4978_v19 = vadd.f32 %v4977_v58, %v4937_v60  ;;  %v4939_v5 = vadd.f32 %v4938_v25, %v4898_v6  ;;  %v4979_v2 = vpop.f32.mrf.mxu0 }
 0x54e   :  { %v4940_v14 = vpop.f32.mrf.mxu1 }
 0x54f   :  { %v4980_v47 = vadd.f32 %v4979_v2, %v4939_v5  ;;  %v4981_v30 = vpop.f32.mrf.mxu0  ;;  %v4986_v42 = vmax.f32 %v4978_v19, 0.0 }
 0x550   :  { %v4941_v11 = vpop.f32.mrf.mxu1 }
 0x551   :  { %v4987_v17 = vmax.f32 %v4980_v47, 0.0  ;;  %v4982_v1 = vpop.f32.mrf.mxu0  ;;  %v4990_v48 = vpack.c.bf16 %v4986_v42, %v4986_v42 }
 0x553   :  { %v4991_v41 = vpack.c.bf16 %v4987_v17, %v4987_v17 }
 0x555   :  { %5396 = vmatprep.mubr.bf16.mxu0 %v4991_v41 }
 0x556   :  { %5397 = vmatmul.mubr.bf16.vlgmr.msra.gmra.mxu0 %v4990_v48 }
 0x596   :  { %v5357_v29 = vpop.f32.mrf.mxu1 }
 0x597   :  { %v5358_v16 = vadd.f32 %v5357_v29, %v4996_v24 }
 0x598   :  { %v5359_v61 = vpop.f32.mrf.mxu1 }
 0x599   :  { %v5360_v10 = vadd.f32 %v5359_v61, %v5000_v12 }
 0x59a   :  { %v5361_v44 = vpop.f32.mrf.mxu1 }
 0x59c   :  { %v5362_v15 = vpop.f32.mrf.mxu1 }
 0x616   :  { %v5398_v31 = vpop.f32.mrf.mxu0 }
 0x617   :  { %v5399_v39 = vadd.f32 %v5398_v31, %v5358_v16 }
 0x618   :  { %v5400_v33 = vpop.f32.mrf.mxu0 }
 0x619   :  { %v5401_v63 = vadd.f32 %v5400_v33, %v5360_v10  ;;  %v5405_v27 = vmax.f32 %v5399_v39, 0.0 }
 0x61a   :  { %v5402_v13 = vpop.f32.mrf.mxu0 }
 0x61b   :  { %v5406_v40 = vmax.f32 %v5401_v63, 0.0 }
 0x61c   :  { %v5403_v22 = vpop.f32.mrf.mxu0 }
 0x61d   :  { %5477 = vmatprep.mubr.f32.mxu1 %v5406_v40 }
 0x61e   :  { %5478 = vmatmul.mubr.f32.vlgmr.msra.gmra.mxu1 %v5405_v27 }
 0x6de   :  { %v5952_v8 = vpop.f32.mrf.mxu1 }
 0x6e0   :  { %v5953_v37 = vpop.f32.mrf.mxu1 }
 0x6e1   :  { %v5954_v49 = vadd.f32 %v5953_v37, %v5952_v8 }
 0x6e3   :  { %v5480_v55 = vadd.f32 %v5954_v49, %v5895_v26 }
 0x6e5   :  { %5483 = vst [vmem:[#allocation10] sm:$0x3] %v5480_v55 }
 0x6e6   :  { %6662 = shalt.err (!%p6659_p10)
}
 0x6e7   :  { %5493 = dma.vmem_to_hbm [thread:$0]  %s5491_s15, 32, %s8329_s13, [#allocation4]  }
 0x6e8   :  { %6677 = dma.done.wait [#allocation4], 32  }
 0x6e9   :  { %6678 = vsyncadd [#allocation4], 4294967264 }
 0x6ea   :  { %5497 = vsyncpa [#allocation3], 1 }
 0x6eb   :  { %5498 = vsyncpa [#allocation6], 1 }
 0x6ec   :  { %5499 = vsyncpa [#allocation9], 1 }
 0x6ed   :  { %5500 = vsyncpa [#allocation4], 1 }

</bundles_post_ra>
